<compile_context>
chip_gen: v5e
topology: v5e:2x2
jax: 0.10.0
libtpu: 0.0.40
codegen_flags: <defaults>
</compile_context>

<pallas_src>
import functools

import jax
import jax.numpy as jnp
from jax.experimental import pallas as pl
from jax.experimental.pallas import tpu as pltpu

BN_EPS = 1e-5


def _cdiv(a, b):
    return (a + b - 1) // b


def _ru(x, m):
    return _cdiv(x, m) * m


@functools.lru_cache(maxsize=1)
def _hw_config():
    """(vmem_budget_bytes, tm_max, bf16_valu_ok) per TPU generation."""
    try:
        kind = jax.devices()[0].device_kind.lower()
    except Exception:  # pragma: no cover - defensive
        kind = ""
    if "v7" in kind:                       # 64 MiB VMEM per TensorCore: cap hard
        return 40 * 2**20, 512, True
    if "v6" in kind:                       # 128 MiB physical VMEM
        return 80 * 2**20, 1024, True
    if "v4" in kind or "v5" in kind:       # 128 MiB physical VMEM, no bf16 VALU
        return 64 * 2**20, 1024, False
    if "v2" in kind or "v3" in kind:       # small VMEM generations
        return 12 * 2**20, 512, False
    return 40 * 2**20, 512, True           # unknown: v7x-safe defaults


# ----------------------------------------------------------------------------
# Pallas kernels
# ----------------------------------------------------------------------------
def _gemm_resident_kernel(*refs, n_in, has_res, relu):
    """Resident-weight GEMM. refs = (p0, w0, ..., p_{n-1}, w_{n-1}, bias, [res], out).

    Weights / bias blocks are grid-invariant (DMA'd once); the whole K
    reduction happens inside a single jnp.dot per operand pair, so there is no
    accumulator scratch and no K grid axis.
    """
    o_ref = refs[-1]
    acc = None
    for t in range(n_in):
        d = jnp.dot(refs[2 * t][...], refs[2 * t + 1][...],
                    preferred_element_type=jnp.float32)
        acc = d if acc is None else acc + d
    acc = acc + refs[2 * n_in][...]                     # folded-BN shift / bias
    if has_res:
        acc = acc + refs[2 * n_in + 1][...].astype(jnp.float32)
    if relu:
        acc = jnp.maximum(acc, 0.0)
    o_ref[...] = acc.astype(o_ref.dtype)


def _gemm_ktiled_kernel(*refs, has_res, relu):
    """Fallback K-tiled GEMM. refs = (p, w, bias, [res], out, acc_scratch)."""
    acc_ref = refs[-1]
    o_ref = refs[-2]
    p_ref, w_ref, b_ref = refs[0], refs[1], refs[2]
    k = pl.program_id(2)

    @pl.when(k == 0)
    def _():
        acc_ref[...] = jnp.zeros_like(acc_ref)

    acc_ref[...] += jnp.dot(p_ref[...], w_ref[...],
                            preferred_element_type=jnp.float32)

    @pl.when(k == pl.num_programs(2) - 1)
    def _():
        out = acc_ref[...] + b_ref[...]
        if has_res:
            out = out + refs[3][...].astype(jnp.float32)
        if relu:
            out = jnp.maximum(out, 0.0)
        o_ref[...] = out.astype(o_ref.dtype)


# ----------------------------------------------------------------------------
# Fused GEMM wrapper
# ----------------------------------------------------------------------------
def _plan_resident(M, Ks, N, out_bytes, has_res, vmem_budget, tm_max):
    """Pick tm / padded M for the resident-weight kernel, or None if it can't fit."""
    budget = int(vmem_budget * 0.85)              # headroom for Mosaic scratch
    w_bytes = sum(k * N * 2 for k in Ks) + N * 4  # resident bf16 weights + f32 bias
    if w_bytes > budget:
        return None

    def per_m(t):
        b = sum(t * k * 2 * 2 for k in Ks)        # double-buffered bf16 patch tiles
        b += t * N * out_bytes * 2                # double-buffered output tile
        if has_res:
            b += t * N * 2 * 2                    # double-buffered bf16 residual
        return b

    Mr = _ru(M, 8)
    tm = min(tm_max, Mr)
    if Mr > 8:
        # >= 2 M blocks: overlap DMA with compute and feed both v7x TensorCores.
        nblk = max(2, _cdiv(Mr, tm))
        tm = _ru(_cdiv(Mr, nblk), 8)              # never a block of pure padding
    while tm > 8 and w_bytes + per_m(tm) > budget:
        tm = _ru(tm // 2, 8)
    if w_bytes + per_m(tm) > budget:
        return None
    return tm, _ru(Mr, tm)


def fused_gemm(patches_list, weight_list, shift, residual=None, relu=False,
               out_dtype=jnp.bfloat16):
    """out[M,N] = f( sum_i patches_i[M,Ki] @ weight_i[Ki,N] + shift (+ residual) )."""
    M = int(patches_list[0].shape[0])
    N = int(weight_list[0].shape[1])
    Ks = [int(w.shape[0]) for w in weight_list]
    vmem_budget, tm_max, _ = _hw_config()
    out_bytes = jnp.dtype(out_dtype).itemsize
    has_res = residual is not None

    plan = _plan_resident(M, Ks, N, out_bytes, has_res, vmem_budget, tm_max)
    if plan is not None:
        tm, Mp = plan
        operands, in_specs = [], []
        for p, w in zip(patches_list, weight_list):
            K = int(w.shape[0])
            p = p.astype(jnp.bfloat16)
            if Mp != M:
                p = jnp.pad(p, ((0, Mp - M), (0, 0)))
            operands += [p, w.astype(jnp.bfloat16)]
            in_specs += [pl.BlockSpec((tm, K), lambda i: (i, 0)),
                         pl.BlockSpec((K, N), lambda i: (0, 0))]   # resident weight
        operands.append(shift.astype(jnp.float32).reshape(1, N))
        in_specs.append(pl.BlockSpec((1, N), lambda i: (0, 0)))    # resident bias
        if has_res:
            r = residual.astype(jnp.bfloat16)
            if Mp != M:
                r = jnp.pad(r, ((0, Mp - M), (0, 0)))
            operands.append(r)
            in_specs.append(pl.BlockSpec((tm, N), lambda i: (i, 0)))

        out = pl.pallas_call(
            functools.partial(_gemm_resident_kernel, n_in=len(patches_list),
                              has_res=has_res, relu=relu),
            out_shape=jax.ShapeDtypeStruct((Mp, N), out_dtype),
            grid_spec=pltpu.PrefetchScalarGridSpec(
                num_scalar_prefetch=0,
                grid=(Mp // tm,),
                in_specs=in_specs,
                out_specs=pl.BlockSpec((tm, N), lambda i: (i, 0))),
            compiler_params=pltpu.CompilerParams(
                dimension_semantics=("parallel",),
                vmem_limit_bytes=vmem_budget),
        )(*operands)
        return out if Mp == M else out[:M]

    # ---------------- fallback: weights exceed VMEM -> K-tiled --------------
    patches = (patches_list[0] if len(patches_list) == 1
               else jnp.concatenate(patches_list, axis=1))
    weight = (weight_list[0] if len(weight_list) == 1
              else jnp.concatenate(weight_list, axis=0))
    K = int(weight.shape[0])
    Mr, Kr, Nr = _ru(M, 128), _ru(K, 128), _ru(N, 128)
    tm, tn, tk = min(tm_max, Mr), min(512, Nr), min(512, Kr)
    if Mr > 128 and _cdiv(Mr, tm) < 2:
        tm = _ru(_cdiv(Mr, 2), 128)
    Mp, Kp, Np = _ru(M, tm), _ru(K, tk), _ru(N, tn)

    p = jnp.pad(patches.astype(jnp.bfloat16), ((0, Mp - M), (0, Kp - K)))
    w = jnp.pad(weight.astype(jnp.bfloat16), ((0, Kp - K), (0, Np - N)))
    b = jnp.pad(shift.astype(jnp.float32), (0, Np - N)).reshape(1, Np)
    in_specs = [pl.BlockSpec((tm, tk), lambda i, j, k: (i, k)),
                pl.BlockSpec((tk, tn), lambda i, j, k: (k, j)),
                pl.BlockSpec((1, tn), lambda i, j, k: (0, j))]
    operands = [p, w, b]
    if has_res:
        r = jnp.pad(residual.astype(jnp.bfloat16), ((0, Mp - M), (0, Np - N)))
        operands.append(r)
        in_specs.append(pl.BlockSpec((tm, tn), lambda i, j, k: (i, j)))

    out = pl.pallas_call(
        functools.partial(_gemm_ktiled_kernel, has_res=has_res, relu=relu),
        out_shape=jax.ShapeDtypeStruct((Mp, Np), out_dtype),
        grid_spec=pltpu.PrefetchScalarGridSpec(
            num_scalar_prefetch=0,
            grid=(Mp // tm, Np // tn, Kp // tk),
            in_specs=in_specs,
            out_specs=pl.BlockSpec((tm, tn), lambda i, j, k: (i, j)),
            scratch_shapes=[pltpu.VMEM((tm, tn), jnp.float32)]),
        compiler_params=pltpu.CompilerParams(
            dimension_semantics=("parallel", "parallel", "arbitrary"),
            vmem_limit_bytes=vmem_budget),
    )(*operands)
    return out[:M, :N]


# ----------------------------------------------------------------------------
# Conv / ConvTranspose / Blur built on the fused GEMM kernel
# ----------------------------------------------------------------------------
def _extract_patches(x, kh, kw, stride, pad):
    """NHWC (bf16) -> im2col patches [N*Ho*Wo, kh*kw*C], column order (di, dj, c).

    TODO(synk): replace with an implicit GEMM (element-offset index_maps over
    the padded NHWC tensor) to kill the kh*kw HBM amplification.
    """
    N, H, W, C = x.shape
    xp = x if pad == 0 else jnp.pad(x, ((0, 0), (pad, pad), (pad, pad), (0, 0)))
    Ho = (H + 2 * pad - kh) // stride + 1
    Wo = (W + 2 * pad - kw) // stride + 1
    if kh == 1 and kw == 1 and stride == 1:
        return xp.reshape(N * Ho * Wo, C), (N, Ho, Wo)
    cols = [xp[:, di:di + (Ho - 1) * stride + 1:stride,
               dj:dj + (Wo - 1) * stride + 1:stride, :]
            for di in range(kh) for dj in range(kw)]
    patches = jnp.concatenate(cols, axis=-1)
    return patches.reshape(N * Ho * Wo, kh * kw * C), (N, Ho, Wo)


def conv2d(x, cw, stride=1, pad=0, relu=False, residual=None,
           out_dtype=jnp.bfloat16):
    """Conv2d with pre-folded BN scale/shift, optional fused residual + ReLU."""
    patches, (n, ho, wo) = _extract_patches(x, cw["kh"], cw["kw"], stride, pad)
    res = None if residual is None else residual.reshape(-1, cw["n"])
    y = fused_gemm([patches], [cw["wm"]], cw["shift"], residual=res, relu=relu,
                   out_dtype=out_dtype)
    return y.reshape(n, ho, wo, cw["n"])


def conv2d_dual(xa, xb, cw, stride=1, pad=0, relu=False, residual=None,
                out_dtype=jnp.bfloat16):
    """Conv2d over channel-concat(xa, xb) WITHOUT materializing the concat:
    two GEMM operands accumulate into one output inside the kernel."""
    pa, (n, ho, wo) = _extract_patches(xa, cw["kh"], cw["kw"], stride, pad)
    pb, _ = _extract_patches(xb, cw["kh"], cw["kw"], stride, pad)
    res = None if residual is None else residual.reshape(-1, cw["n"])
    y = fused_gemm([pa, pb], [cw["wma"], cw["wmb"]], cw["shift"], residual=res,
                   relu=relu, out_dtype=out_dtype)
    return y.reshape(n, ho, wo, cw["n"])


def conv_transpose_2x2(x, ct):
    """ConvTranspose2d(kernel_size=2, stride=2) as one GEMM + pixel shuffle."""
    N, H, W, Cin = x.shape
    cout = ct["wm"].shape[1] // 4
    y = fused_gemm([x.reshape(N * H * W, Cin)], [ct["wm"]], ct["shift"])
    # TODO(synk): fold this pixel shuffle into the GEMM out_specs index_map.
    y = y.reshape(N, H, W, 2, 2, cout).transpose(0, 1, 3, 2, 4, 5)
    return y.reshape(N, 2 * H, 2 * W, cout)


def blur(x, bf16_ok):
    # TODO(synk): Blur class source not provided; implemented as fastai-style
    # anti-aliasing: ReplicationPad2d((1,0,1,0)) + AvgPool2d(2, stride=1).
    # Pure VPU elementwise average; bf16 on v6e/v7x, f32 on older chips.
    N, H, W, C = x.shape
    xp = jnp.pad(x, ((0, 0), (1, 0), (1, 0), (0, 0)), mode="edge")
    dt = x.dtype if bf16_ok else jnp.float32
    s = (xp[:, :H, :W, :].astype(dt) + xp[:, :H, 1:, :].astype(dt)
         + xp[:, 1:, :W, :].astype(dt) + xp[:, 1:, 1:, :].astype(dt))
    return (s * 0.25).astype(x.dtype)


# ----------------------------------------------------------------------------
# ResBlocks (standard ResNet basic block, as used by torchtrainer's ResUNet)
# ----------------------------------------------------------------------------
def resblock(x, p):
    h = conv2d(x, p["conv1"], stride=p["stride"], pad=1, relu=True)
    if "down" in p:   # 1x1 projection shortcut when stride != 1 or Cin != Cout
        identity = conv2d(x, p["down"], stride=p["stride"], pad=0)
    else:
        identity = x
    # out = relu(bn2(conv2(h)) + identity), residual-add fused in the kernel
    return conv2d(h, p["conv2"], stride=1, pad=1, relu=True, residual=identity)


def resblock_cat(act, xup, p):
    """ResBlock applied to Concat(act, xup) with the concat fused into the GEMMs."""
    h = conv2d_dual(act, xup, p["conv1"], stride=1, pad=1, relu=True)
    identity = conv2d_dual(act, xup, p["down"], stride=1, pad=0)
    return conv2d(h, p["conv2"], stride=1, pad=1, relu=True, residual=identity)


# ----------------------------------------------------------------------------
# Parameter init (mirrors FlexibleResUNet.__init__ / reset_parameters shapes)
# ----------------------------------------------------------------------------
def _kaiming(key, shape):
    fan_in = shape[1] * shape[2] * shape[3]
    return jax.random.normal(key, shape, jnp.float32) * jnp.sqrt(2.0 / fan_in)


def _bn(c):
    return dict(gamma=jnp.ones((c,), jnp.float32), beta=jnp.zeros((c,), jnp.float32),
                mean=jnp.zeros((c,), jnp.float32), var=jnp.ones((c,), jnp.float32))


def _resblock_params(key, cin, cout, stride):
    k1, k2, k3 = jax.random.split(key, 3)
    p = dict(stride=stride,
             conv1=_kaiming(k1, (cout, cin, 3, 3)), bn1=_bn(cout),
             conv2=_kaiming(k2, (cout, cout, 3, 3)), bn2=_bn(cout))
    if stride != 1 or cin != cout:
        p["down_conv"] = _kaiming(k3, (cout, cin, 1, 1))
        p["down_bn"] = _bn(cout)
    return p


def init_params(key, num_channels, num_classes, layers):
    keys = list(jax.random.split(key, 4 + 4 * len(layers)))
    ki = iter(keys)
    params = dict(layers=layers)
    params["input_conv"] = dict(
        w=_kaiming(next(ki), (layers[0], num_channels, 7, 7)), bn=_bn(layers[0]))
    params["initial_block"] = _resblock_params(next(ki), layers[0], layers[1], 1)
    for i in range(1, len(layers) - 1):
        params[f"down_{i}"] = _resblock_params(next(ki), layers[i], layers[i + 1], 2)
    for layer_idx in range(len(layers) - 1, 1, -1):
        kt, kb, ks = jax.random.split(next(ki), 3)
        cin, cout = layers[layer_idx], layers[layer_idx - 1]
        params[f"up_{layer_idx - 1}"] = dict(
            convT_w=jax.random.normal(kt, (cin, cout, 2, 2), jnp.float32)
            * (1.0 / jnp.sqrt(4.0 * cin)),
            convT_b=jax.random.normal(kb, (cout,), jnp.float32) * 0.01,
            squeeze=_resblock_params(ks, cin, cout, 1))
    params["final"] = dict(w=_kaiming(next(ki), (num_classes, layers[1], 1, 1)),
                           b=jnp.zeros((num_classes,), jnp.float32))
    return params


# ----------------------------------------------------------------------------
# One-time weight preparation: BN fold + GEMM layout + bf16 cast
# ----------------------------------------------------------------------------
def _fold_bn(bn):
    scale = bn["gamma"] / jnp.sqrt(bn["var"] + BN_EPS)
    shift = bn["beta"] - bn["mean"] * scale
    return scale, shift


def _pack_conv(w_oihw, scale, shift):
    O, I, kh, kw = w_oihw.shape
    wm = jnp.transpose(w_oihw, (2, 3, 1, 0)).reshape(kh * kw * I, O)
    if scale is not None:
        wm = wm * scale[None, :]          # fold BN scale into the weight matrix
    return dict(kh=kh, kw=kw, n=O, wm=wm.astype(jnp.bfloat16),
                shift=shift.astype(jnp.float32))


def _pack_conv_split(w_oihw, scale, shift, ca):
    """Split the input-channel dim at ca: part A consumes the skip activation,
    part B the upsampled activation (fuses away the decoder Concat)."""
    O = w_oihw.shape[0]
    pa = _pack_conv(w_oihw[:, :ca], scale, shift)
    pb = _pack_conv(w_oihw[:, ca:], scale, shift)
    return dict(kh=pa["kh"], kw=pa["kw"], n=O, wma=pa["wm"], wmb=pb["wm"],
                shift=shift.astype(jnp.float32))


def _prep_resblock(p, split_ca=None):
    s1, b1 = _fold_bn(p["bn1"])
    s2, b2 = _fold_bn(p["bn2"])
    out = dict(stride=p["stride"], conv2=_pack_conv(p["conv2"], s2, b2))
    if split_ca is None:
        out["conv1"] = _pack_conv(p["conv1"], s1, b1)
    else:
        out["conv1"] = _pack_conv_split(p["conv1"], s1, b1, split_ca)
    if "down_conv" in p:
        sd, bd = _fold_bn(p["down_bn"])
        if split_ca is None:
            out["down"] = _pack_conv(p["down_conv"], sd, bd)
        else:
            out["down"] = _pack_conv_split(p["down_conv"], sd, bd, split_ca)
    return out


def prepare_params(params):
    """Fold BN, transpose to (K, N), cast bf16 — once, outside the forward."""
    layers = params["layers"]
    fast = dict(layers=layers)
    s, b = _fold_bn(params["input_conv"]["bn"])
    fast["input_conv"] = _pack_conv(params["input_conv"]["w"], s, b)
    fast["initial_block"] = _prep_resblock(params["initial_block"])
    for i in range(1, len(layers) - 1):
        fast[f"down_{i}"] = _prep_resblock(params[f"down_{i}"])
    for layer_idx in range(len(layers) - 1, 1, -1):
        up = params[f"up_{layer_idx - 1}"]
        cin, cout = layers[layer_idx], layers[layer_idx - 1]
        wm = jnp.transpose(up["convT_w"], (0, 2, 3, 1)).reshape(cin, 4 * cout)
        fast[f"up_{layer_idx - 1}"] = dict(
            convT=dict(wm=wm.astype(jnp.bfloat16),
                       shift=jnp.tile(up["convT_b"], 4).astype(jnp.float32)),
            squeeze=_prep_resblock(up["squeeze"], split_ca=cout))
    fast["final"] = _pack_conv(params["final"]["w"], None, params["final"]["b"])
    return fast


# ----------------------------------------------------------------------------
# FlexibleResUNet forward (NHWC internally, NCHW at the boundary)
# ----------------------------------------------------------------------------
def flexible_resunet_forward(fast, x_nchw):
    layers = fast["layers"]
    _, _, bf16_ok = _hw_config()
    x = jnp.transpose(x_nchw, (0, 2, 3, 1)).astype(jnp.bfloat16)

    # ---- encoder ----
    ic = fast["input_conv"]
    x = conv2d(x, ic, stride=1, pad=(ic["kh"] - 1) // 2, relu=True)
    x = resblock(x, fast["initial_block"])
    acts = {"initial_block": x}
    for i in range(1, len(layers) - 1):
        x = resblock(x, fast[f"down_{i}"])
        acts[f"down_{i}"] = x

    # ---- decoder ----
    for layer_idx in range(len(layers) - 1, 1, -1):
        up = fast[f"up_{layer_idx - 1}"]
        x = conv_transpose_2x2(x, up["convT"])
        x = blur(x, bf16_ok)
        act = acts["initial_block"] if layer_idx == 2 else acts[f"down_{layer_idx - 2}"]
        # Concat(dim=1) fused away: skip + upsampled streamed as two GEMM operands
        x = resblock_cat(act, x, up["squeeze"])

    x = conv2d(x, fast["final"], stride=1, pad=0, relu=False,
               out_dtype=jnp.float32)
    return jnp.transpose(x, (0, 3, 1, 2))  # NHWC -> NCHW


if __name__ == "__main__":
    key = jax.random.PRNGKey(0)
    kx, kp = jax.random.split(key)

    num_channels, num_classes = 4, 3
    layers = (8, 8, 16, 32)  # small config: 2 downsamples / 2 upsamples
    x = jax.random.normal(kx, (2, num_channels, 16, 16), jnp.float32)

    raw = init_params(kp, num_channels, num_classes, layers)
    fast = prepare_params(raw)                     # GEMM-ready weights, once
    fwd = jax.jit(functools.partial(flexible_resunet_forward, fast))

    out = jax.block_until_ready(fwd(x))

    assert out.shape == (2, num_classes, 16, 16), out.shape
    assert bool(jnp.all(jnp.isfinite(out)))
    print("KERNEL_OK")
</pallas_src>

<mosaic_0001>
module attributes {stable_mosaic.version = 11 : i64} {
  func.func @_gemm_resident_kernel(%arg0: i32, %arg1: memref<256x196xbf16, #tpu.memory_space<vmem>>, %arg2: memref<196x8xbf16, #tpu.memory_space<vmem>>, %arg3: memref<1x8xf32, #tpu.memory_space<vmem>>, %arg4: memref<256x8xbf16, #tpu.memory_space<vmem>>) attributes {dimension_semantics = [#tpu.dimension_semantics<parallel>], iteration_bounds = array<i64: 2>, scalar_prefetch = 0 : i64, scratch_operands = 0 : i64, tpu.core_type = #tpu.core_type<tc>, window_params = [{transform_indices = @transform_0, window_bounds = array<i64: 256, 196>}, {pipeline_mode = #tpu.pipeline_mode<synchronous>, transform_indices = @transform_1, window_bounds = array<i64: 196, 8>}, {pipeline_mode = #tpu.pipeline_mode<synchronous>, transform_indices = @transform_2, window_bounds = array<i64: 1, 8>}, {transform_indices = @transform_3, window_bounds = array<i64: 256, 8>}]} {
    %c0 = arith.constant 0 : index
    %c0_0 = arith.constant 0 : index
    %0 = vector.load %arg1[%c0, %c0_0] : memref<256x196xbf16, #tpu.memory_space<vmem>>, vector<256x196xbf16>
    %c0_1 = arith.constant 0 : index
    %c0_2 = arith.constant 0 : index
    %1 = vector.load %arg2[%c0_1, %c0_2] : memref<196x8xbf16, #tpu.memory_space<vmem>>, vector<196x8xbf16>
    %cst = arith.constant dense<0.000000e+00> : vector<256x8xf32>
    %2 = tpu.matmul %0, %1, %cst {dimension_numbers = #tpu.dot_dimension_numbers<[1], [0], [0], [1], [0, 0, 1, 1], [], []>} : vector<256x196xbf16>, vector<196x8xbf16>, vector<256x8xf32> -> vector<256x8xf32>
    %c0_3 = arith.constant 0 : index
    %c0_4 = arith.constant 0 : index
    %3 = vector.load %arg3[%c0_3, %c0_4] : memref<1x8xf32, #tpu.memory_space<vmem>>, vector<1x8xf32>
    %4 = vector.broadcast %3 : vector<1x8xf32> to vector<256x8xf32>
    %5 = arith.addf %2, %4 : vector<256x8xf32>
    %cst_5 = arith.constant 0.000000e+00 : f32
    %6 = vector.broadcast %cst_5 : f32 to vector<256x8xf32>
    %7 = arith.maximumf %5, %6 : vector<256x8xf32>
    %8 = arith.truncf %7 : vector<256x8xf32> to vector<256x8xbf16>
    %c0_6 = arith.constant 0 : index
    %c0_7 = arith.constant 0 : index
    %9 = vector.load %arg4[%c0_6, %c0_7] : memref<256x8xbf16, #tpu.memory_space<vmem>>, vector<256x8xbf16>
    tpu.vector_store %arg4[%c0_6, %c0_7], %8 {strides = array<i32>} : memref<256x8xbf16, #tpu.memory_space<vmem>>, vector<256x8xbf16>,
    return
  }
  func.func @transform_0(%arg0: i32) -> (i32, i32) {
    %c0_i32 = arith.constant 0 : i32
    %c0_i32_0 = arith.constant 0 : i32
    return %arg0, %c0_i32 : i32, i32
  }
  func.func @transform_1(%arg0: i32) -> (i32, i32) {
    %c0_i32 = arith.constant 0 : i32
    %c0_i32_0 = arith.constant 0 : i32
    %c0_i32_1 = arith.constant 0 : i32
    return %c0_i32, %c0_i32_0 : i32, i32
  }
  func.func @transform_2(%arg0: i32) -> (i32, i32) {
    %c0_i32 = arith.constant 0 : i32
    %c0_i32_0 = arith.constant 0 : i32
    %c0_i32_1 = arith.constant 0 : i32
    return %c0_i32, %c0_i32_0 : i32, i32
  }
  func.func @transform_3(%arg0: i32) -> (i32, i32) {
    %c0_i32 = arith.constant 0 : i32
    %c0_i32_0 = arith.constant 0 : i32
    return %arg0, %c0_i32 : i32, i32
  }
}

module attributes {stable_mosaic.version = 11 : i64} {
  func.func @_gemm_resident_kernel(%arg0: i32, %arg1: memref<256x72xbf16, #tpu.memory_space<vmem>>, %arg2: memref<72x8xbf16, #tpu.memory_space<vmem>>, %arg3: memref<1x8xf32, #tpu.memory_space<vmem>>, %arg4: memref<256x8xbf16, #tpu.memory_space<vmem>>) attributes {dimension_semantics = [#tpu.dimension_semantics<parallel>], iteration_bounds = array<i64: 2>, scalar_prefetch = 0 : i64, scratch_operands = 0 : i64, tpu.core_type = #tpu.core_type<tc>, window_params = [{transform_indices = @transform_0, window_bounds = array<i64: 256, 72>}, {pipeline_mode = #tpu.pipeline_mode<synchronous>, transform_indices = @transform_1, window_bounds = array<i64: 72, 8>}, {pipeline_mode = #tpu.pipeline_mode<synchronous>, transform_indices = @transform_2, window_bounds = array<i64: 1, 8>}, {transform_indices = @transform_3, window_bounds = array<i64: 256, 8>}]} {
    %c0 = arith.constant 0 : index
    %c0_0 = arith.constant 0 : index
    %0 = vector.load %arg1[%c0, %c0_0] : memref<256x72xbf16, #tpu.memory_space<vmem>>, vector<256x72xbf16>
    %c0_1 = arith.constant 0 : index
    %c0_2 = arith.constant 0 : index
    %1 = vector.load %arg2[%c0_1, %c0_2] : memref<72x8xbf16, #tpu.memory_space<vmem>>, vector<72x8xbf16>
    %cst = arith.constant dense<0.000000e+00> : vector<256x8xf32>
    %2 = tpu.matmul %0, %1, %cst {dimension_numbers = #tpu.dot_dimension_numbers<[1], [0], [0], [1], [0, 0, 1, 1], [], []>} : vector<256x72xbf16>, vector<72x8xbf16>, vector<256x8xf32> -> vector<256x8xf32>
    %c0_3 = arith.constant 0 : index
    %c0_4 = arith.constant 0 : index
    %3 = vector.load %arg3[%c0_3, %c0_4] : memref<1x8xf32, #tpu.memory_space<vmem>>, vector<1x8xf32>
    %4 = vector.broadcast %3 : vector<1x8xf32> to vector<256x8xf32>
    %5 = arith.addf %2, %4 : vector<256x8xf32>
    %cst_5 = arith.constant 0.000000e+00 : f32
    %6 = vector.broadcast %cst_5 : f32 to vector<256x8xf32>
    %7 = arith.maximumf %5, %6 : vector<256x8xf32>
    %8 = arith.truncf %7 : vector<256x8xf32> to vector<256x8xbf16>
    %c0_6 = arith.constant 0 : index
    %c0_7 = arith.constant 0 : index
    %9 = vector.load %arg4[%c0_6, %c0_7] : memref<256x8xbf16, #tpu.memory_space<vmem>>, vector<256x8xbf16>
    tpu.vector_store %arg4[%c0_6, %c0_7], %8 {strides = array<i32>} : memref<256x8xbf16, #tpu.memory_space<vmem>>, vector<256x8xbf16>,
    return
  }
  func.func @transform_0(%arg0: i32) -> (i32, i32) {
    %c0_i32 = arith.constant 0 : i32
    %c0_i32_0 = arith.constant 0 : i32
    return %arg0, %c0_i32 : i32, i32
  }
  func.func @transform_1(%arg0: i32) -> (i32, i32) {
    %c0_i32 = arith.constant 0 : i32
    %c0_i32_0 = arith.constant 0 : i32
    %c0_i32_1 = arith.constant 0 : i32
    return %c0_i32, %c0_i32_0 : i32, i32
  }
  func.func @transform_2(%arg0: i32) -> (i32, i32) {
    %c0_i32 = arith.constant 0 : i32
    %c0_i32_0 = arith.constant 0 : i32
    %c0_i32_1 = arith.constant 0 : i32
    return %c0_i32, %c0_i32_0 : i32, i32
  }
  func.func @transform_3(%arg0: i32) -> (i32, i32) {
    %c0_i32 = arith.constant 0 : i32
    %c0_i32_0 = arith.constant 0 : i32
    return %arg0, %c0_i32 : i32, i32
  }
}

module attributes {stable_mosaic.version = 11 : i64} {
  func.func @_gemm_resident_kernel(%arg0: i32, %arg1: memref<256x72xbf16, #tpu.memory_space<vmem>>, %arg2: memref<72x8xbf16, #tpu.memory_space<vmem>>, %arg3: memref<1x8xf32, #tpu.memory_space<vmem>>, %arg4: memref<256x8xbf16, #tpu.memory_space<vmem>>, %arg5: memref<256x8xbf16, #tpu.memory_space<vmem>>) attributes {dimension_semantics = [#tpu.dimension_semantics<parallel>], iteration_bounds = array<i64: 2>, scalar_prefetch = 0 : i64, scratch_operands = 0 : i64, tpu.core_type = #tpu.core_type<tc>, window_params = [{transform_indices = @transform_0, window_bounds = array<i64: 256, 72>}, {pipeline_mode = #tpu.pipeline_mode<synchronous>, transform_indices = @transform_1, window_bounds = array<i64: 72, 8>}, {pipeline_mode = #tpu.pipeline_mode<synchronous>, transform_indices = @transform_2, window_bounds = array<i64: 1, 8>}, {transform_indices = @transform_3, window_bounds = array<i64: 256, 8>}, {transform_indices = @transform_4, window_bounds = array<i64: 256, 8>}]} {
    %c0 = arith.constant 0 : index
    %c0_0 = arith.constant 0 : index
    %0 = vector.load %arg1[%c0, %c0_0] : memref<256x72xbf16, #tpu.memory_space<vmem>>, vector<256x72xbf16>
    %c0_1 = arith.constant 0 : index
    %c0_2 = arith.constant 0 : index
    %1 = vector.load %arg2[%c0_1, %c0_2] : memref<72x8xbf16, #tpu.memory_space<vmem>>, vector<72x8xbf16>
    %cst = arith.constant dense<0.000000e+00> : vector<256x8xf32>
    %2 = tpu.matmul %0, %1, %cst {dimension_numbers = #tpu.dot_dimension_numbers<[1], [0], [0], [1], [0, 0, 1, 1], [], []>} : vector<256x72xbf16>, vector<72x8xbf16>, vector<256x8xf32> -> vector<256x8xf32>
    %c0_3 = arith.constant 0 : index
    %c0_4 = arith.constant 0 : index
    %3 = vector.load %arg3[%c0_3, %c0_4] : memref<1x8xf32, #tpu.memory_space<vmem>>, vector<1x8xf32>
    %4 = vector.broadcast %3 : vector<1x8xf32> to vector<256x8xf32>
    %5 = arith.addf %2, %4 : vector<256x8xf32>
    %c0_5 = arith.constant 0 : index
    %c0_6 = arith.constant 0 : index
    %6 = vector.load %arg4[%c0_5, %c0_6] : memref<256x8xbf16, #tpu.memory_space<vmem>>, vector<256x8xbf16>
    %7 = arith.extf %6 : vector<256x8xbf16> to vector<256x8xf32>
    %8 = arith.addf %5, %7 : vector<256x8xf32>
    %cst_7 = arith.constant 0.000000e+00 : f32
    %9 = vector.broadcast %cst_7 : f32 to vector<256x8xf32>
    %10 = arith.maximumf %8, %9 : vector<256x8xf32>
    %11 = arith.truncf %10 : vector<256x8xf32> to vector<256x8xbf16>
    %c0_8 = arith.constant 0 : index
    %c0_9 = arith.constant 0 : index
    %12 = vector.load %arg5[%c0_8, %c0_9] : memref<256x8xbf16, #tpu.memory_space<vmem>>, vector<256x8xbf16>
    tpu.vector_store %arg5[%c0_8, %c0_9], %11 {strides = array<i32>} : memref<256x8xbf16, #tpu.memory_space<vmem>>, vector<256x8xbf16>,
    return
  }
  func.func @transform_0(%arg0: i32) -> (i32, i32) {
    %c0_i32 = arith.constant 0 : i32
    %c0_i32_0 = arith.constant 0 : i32
    return %arg0, %c0_i32 : i32, i32
  }
  func.func @transform_1(%arg0: i32) -> (i32, i32) {
    %c0_i32 = arith.constant 0 : i32
    %c0_i32_0 = arith.constant 0 : i32
    %c0_i32_1 = arith.constant 0 : i32
    return %c0_i32, %c0_i32_0 : i32, i32
  }
  func.func @transform_2(%arg0: i32) -> (i32, i32) {
    %c0_i32 = arith.constant 0 : i32
    %c0_i32_0 = arith.constant 0 : i32
    %c0_i32_1 = arith.constant 0 : i32
    return %c0_i32, %c0_i32_0 : i32, i32
  }
  func.func @transform_3(%arg0: i32) -> (i32, i32) {
    %c0_i32 = arith.constant 0 : i32
    %c0_i32_0 = arith.constant 0 : i32
    return %arg0, %c0_i32 : i32, i32
  }
  func.func @transform_4(%arg0: i32) -> (i32, i32) {
    %c0_i32 = arith.constant 0 : i32
    %c0_i32_0 = arith.constant 0 : i32
    return %arg0, %c0_i32 : i32, i32
  }
}

module attributes {stable_mosaic.version = 11 : i64} {
  func.func @_gemm_resident_kernel(%arg0: i32, %arg1: memref<64x72xbf16, #tpu.memory_space<vmem>>, %arg2: memref<72x16xbf16, #tpu.memory_space<vmem>>, %arg3: memref<1x16xf32, #tpu.memory_space<vmem>>, %arg4: memref<64x16xbf16, #tpu.memory_space<vmem>>) attributes {dimension_semantics = [#tpu.dimension_semantics<parallel>], iteration_bounds = array<i64: 2>, scalar_prefetch = 0 : i64, scratch_operands = 0 : i64, tpu.core_type = #tpu.core_type<tc>, window_params = [{transform_indices = @transform_0, window_bounds = array<i64: 64, 72>}, {pipeline_mode = #tpu.pipeline_mode<synchronous>, transform_indices = @transform_1, window_bounds = array<i64: 72, 16>}, {pipeline_mode = #tpu.pipeline_mode<synchronous>, transform_indices = @transform_2, window_bounds = array<i64: 1, 16>}, {transform_indices = @transform_3, window_bounds = array<i64: 64, 16>}]} {
    %c0 = arith.constant 0 : index
    %c0_0 = arith.constant 0 : index
    %0 = vector.load %arg1[%c0, %c0_0] : memref<64x72xbf16, #tpu.memory_space<vmem>>, vector<64x72xbf16>
    %c0_1 = arith.constant 0 : index
    %c0_2 = arith.constant 0 : index
    %1 = vector.load %arg2[%c0_1, %c0_2] : memref<72x16xbf16, #tpu.memory_space<vmem>>, vector<72x16xbf16>
    %cst = arith.constant dense<0.000000e+00> : vector<64x16xf32>
    %2 = tpu.matmul %0, %1, %cst {dimension_numbers = #tpu.dot_dimension_numbers<[1], [0], [0], [1], [0, 0, 1, 1], [], []>} : vector<64x72xbf16>, vector<72x16xbf16>, vector<64x16xf32> -> vector<64x16xf32>
    %c0_3 = arith.constant 0 : index
    %c0_4 = arith.constant 0 : index
    %3 = vector.load %arg3[%c0_3, %c0_4] : memref<1x16xf32, #tpu.memory_space<vmem>>, vector<1x16xf32>
    %4 = vector.broadcast %3 : vector<1x16xf32> to vector<64x16xf32>
    %5 = arith.addf %2, %4 : vector<64x16xf32>
    %cst_5 = arith.constant 0.000000e+00 : f32
    %6 = vector.broadcast %cst_5 : f32 to vector<64x16xf32>
    %7 = arith.maximumf %5, %6 : vector<64x16xf32>
    %8 = arith.truncf %7 : vector<64x16xf32> to vector<64x16xbf16>
    %c0_6 = arith.constant 0 : index
    %c0_7 = arith.constant 0 : index
    %9 = vector.load %arg4[%c0_6, %c0_7] : memref<64x16xbf16, #tpu.memory_space<vmem>>, vector<64x16xbf16>
    tpu.vector_store %arg4[%c0_6, %c0_7], %8 {strides = array<i32>} : memref<64x16xbf16, #tpu.memory_space<vmem>>, vector<64x16xbf16>,
    return
  }
  func.func @transform_0(%arg0: i32) -> (i32, i32) {
    %c0_i32 = arith.constant 0 : i32
    %c0_i32_0 = arith.constant 0 : i32
    return %arg0, %c0_i32 : i32, i32
  }
  func.func @transform_1(%arg0: i32) -> (i32, i32) {
    %c0_i32 = arith.constant 0 : i32
    %c0_i32_0 = arith.constant 0 : i32
    %c0_i32_1 = arith.constant 0 : i32
    return %c0_i32, %c0_i32_0 : i32, i32
  }
  func.func @transform_2(%arg0: i32) -> (i32, i32) {
    %c0_i32 = arith.constant 0 : i32
    %c0_i32_0 = arith.constant 0 : i32
    %c0_i32_1 = arith.constant 0 : i32
    return %c0_i32, %c0_i32_0 : i32, i32
  }
  func.func @transform_3(%arg0: i32) -> (i32, i32) {
    %c0_i32 = arith.constant 0 : i32
    %c0_i32_0 = arith.constant 0 : i32
    return %arg0, %c0_i32 : i32, i32
  }
}

module attributes {stable_mosaic.version = 11 : i64} {
  func.func @_gemm_resident_kernel(%arg0: i32, %arg1: memref<64x8xbf16, #tpu.memory_space<vmem>>, %arg2: memref<8x16xbf16, #tpu.memory_space<vmem>>, %arg3: memref<1x16xf32, #tpu.memory_space<vmem>>, %arg4: memref<64x16xbf16, #tpu.memory_space<vmem>>) attributes {dimension_semantics = [#tpu.dimension_semantics<parallel>], iteration_bounds = array<i64: 2>, scalar_prefetch = 0 : i64, scratch_operands = 0 : i64, tpu.core_type = #tpu.core_type<tc>, window_params = [{transform_indices = @transform_0, window_bounds = array<i64: 64, 8>}, {pipeline_mode = #tpu.pipeline_mode<synchronous>, transform_indices = @transform_1, window_bounds = array<i64: 8, 16>}, {pipeline_mode = #tpu.pipeline_mode<synchronous>, transform_indices = @transform_2, window_bounds = array<i64: 1, 16>}, {transform_indices = @transform_3, window_bounds = array<i64: 64, 16>}]} {
    %c0 = arith.constant 0 : index
    %c0_0 = arith.constant 0 : index
    %0 = vector.load %arg1[%c0, %c0_0] : memref<64x8xbf16, #tpu.memory_space<vmem>>, vector<64x8xbf16>
    %c0_1 = arith.constant 0 : index
    %c0_2 = arith.constant 0 : index
    %1 = vector.load %arg2[%c0_1, %c0_2] : memref<8x16xbf16, #tpu.memory_space<vmem>>, vector<8x16xbf16>
    %cst = arith.constant dense<0.000000e+00> : vector<64x16xf32>
    %2 = tpu.matmul %0, %1, %cst {dimension_numbers = #tpu.dot_dimension_numbers<[1], [0], [0], [1], [0, 0, 1, 1], [], []>} : vector<64x8xbf16>, vector<8x16xbf16>, vector<64x16xf32> -> vector<64x16xf32>
    %c0_3 = arith.constant 0 : index
    %c0_4 = arith.constant 0 : index
    %3 = vector.load %arg3[%c0_3, %c0_4] : memref<1x16xf32, #tpu.memory_space<vmem>>, vector<1x16xf32>
    %4 = vector.broadcast %3 : vector<1x16xf32> to vector<64x16xf32>
    %5 = arith.addf %2, %4 : vector<64x16xf32>
    %6 = arith.truncf %5 : vector<64x16xf32> to vector<64x16xbf16>
    %c0_5 = arith.constant 0 : index
    %c0_6 = arith.constant 0 : index
    %7 = vector.load %arg4[%c0_5, %c0_6] : memref<64x16xbf16, #tpu.memory_space<vmem>>, vector<64x16xbf16>
    tpu.vector_store %arg4[%c0_5, %c0_6], %6 {strides = array<i32>} : memref<64x16xbf16, #tpu.memory_space<vmem>>, vector<64x16xbf16>,
    return
  }
  func.func @transform_0(%arg0: i32) -> (i32, i32) {
    %c0_i32 = arith.constant 0 : i32
    %c0_i32_0 = arith.constant 0 : i32
    return %arg0, %c0_i32 : i32, i32
  }
  func.func @transform_1(%arg0: i32) -> (i32, i32) {
    %c0_i32 = arith.constant 0 : i32
    %c0_i32_0 = arith.constant 0 : i32
    %c0_i32_1 = arith.constant 0 : i32
    return %c0_i32, %c0_i32_0 : i32, i32
  }
  func.func @transform_2(%arg0: i32) -> (i32, i32) {
    %c0_i32 = arith.constant 0 : i32
    %c0_i32_0 = arith.constant 0 : i32
    %c0_i32_1 = arith.constant 0 : i32
    return %c0_i32, %c0_i32_0 : i32, i32
  }
  func.func @transform_3(%arg0: i32) -> (i32, i32) {
    %c0_i32 = arith.constant 0 : i32
    %c0_i32_0 = arith.constant 0 : i32
    return %arg0, %c0_i32 : i32, i32
  }
}

module attributes {stable_mosaic.version = 11 : i64} {
  func.func @_gemm_resident_kernel(%arg0: i32, %arg1: memref<64x144xbf16, #tpu.memory_space<vmem>>, %arg2: memref<144x16xbf16, #tpu.memory_space<vmem>>, %arg3: memref<1x16xf32, #tpu.memory_space<vmem>>, %arg4: memref<64x16xbf16, #tpu.memory_space<vmem>>, %arg5: memref<64x16xbf16, #tpu.memory_space<vmem>>) attributes {dimension_semantics = [#tpu.dimension_semantics<parallel>], iteration_bounds = array<i64: 2>, scalar_prefetch = 0 : i64, scratch_operands = 0 : i64, tpu.core_type = #tpu.core_type<tc>, window_params = [{transform_indices = @transform_0, window_bounds = array<i64: 64, 144>}, {pipeline_mode = #tpu.pipeline_mode<synchronous>, transform_indices = @transform_1, window_bounds = array<i64: 144, 16>}, {pipeline_mode = #tpu.pipeline_mode<synchronous>, transform_indices = @transform_2, window_bounds = array<i64: 1, 16>}, {transform_indices = @transform_3, window_bounds = array<i64: 64, 16>}, {transform_indices = @transform_4, window_bounds = array<i64: 64, 16>}]} {
    %c0 = arith.constant 0 : index
    %c0_0 = arith.constant 0 : index
    %0 = vector.load %arg1[%c0, %c0_0] : memref<64x144xbf16, #tpu.memory_space<vmem>>, vector<64x144xbf16>
    %c0_1 = arith.constant 0 : index
    %c0_2 = arith.constant 0 : index
    %1 = vector.load %arg2[%c0_1, %c0_2] : memref<144x16xbf16, #tpu.memory_space<vmem>>, vector<144x16xbf16>
    %cst = arith.constant dense<0.000000e+00> : vector<64x16xf32>
    %2 = tpu.matmul %0, %1, %cst {dimension_numbers = #tpu.dot_dimension_numbers<[1], [0], [0], [1], [0, 0, 1, 1], [], []>} : vector<64x144xbf16>, vector<144x16xbf16>, vector<64x16xf32> -> vector<64x16xf32>
    %c0_3 = arith.constant 0 : index
    %c0_4 = arith.constant 0 : index
    %3 = vector.load %arg3[%c0_3, %c0_4] : memref<1x16xf32, #tpu.memory_space<vmem>>, vector<1x16xf32>
    %4 = vector.broadcast %3 : vector<1x16xf32> to vector<64x16xf32>
    %5 = arith.addf %2, %4 : vector<64x16xf32>
    %c0_5 = arith.constant 0 : index
    %c0_6 = arith.constant 0 : index
    %6 = vector.load %arg4[%c0_5, %c0_6] : memref<64x16xbf16, #tpu.memory_space<vmem>>, vector<64x16xbf16>
    %7 = arith.extf %6 : vector<64x16xbf16> to vector<64x16xf32>
    %8 = arith.addf %5, %7 : vector<64x16xf32>
    %cst_7 = arith.constant 0.000000e+00 : f32
    %9 = vector.broadcast %cst_7 : f32 to vector<64x16xf32>
    %10 = arith.maximumf %8, %9 : vector<64x16xf32>
    %11 = arith.truncf %10 : vector<64x16xf32> to vector<64x16xbf16>
    %c0_8 = arith.constant 0 : index
    %c0_9 = arith.constant 0 : index
    %12 = vector.load %arg5[%c0_8, %c0_9] : memref<64x16xbf16, #tpu.memory_space<vmem>>, vector<64x16xbf16>
    tpu.vector_store %arg5[%c0_8, %c0_9], %11 {strides = array<i32>} : memref<64x16xbf16, #tpu.memory_space<vmem>>, vector<64x16xbf16>,
    return
  }
  func.func @transform_0(%arg0: i32) -> (i32, i32) {
    %c0_i32 = arith.constant 0 : i32
    %c0_i32_0 = arith.constant 0 : i32
    return %arg0, %c0_i32 : i32, i32
  }
  func.func @transform_1(%arg0: i32) -> (i32, i32) {
    %c0_i32 = arith.constant 0 : i32
    %c0_i32_0 = arith.constant 0 : i32
    %c0_i32_1 = arith.constant 0 : i32
    return %c0_i32, %c0_i32_0 : i32, i32
  }
  func.func @transform_2(%arg0: i32) -> (i32, i32) {
    %c0_i32 = arith.constant 0 : i32
    %c0_i32_0 = arith.constant 0 : i32
    %c0_i32_1 = arith.constant 0 : i32
    return %c0_i32, %c0_i32_0 : i32, i32
  }
  func.func @transform_3(%arg0: i32) -> (i32, i32) {
    %c0_i32 = arith.constant 0 : i32
    %c0_i32_0 = arith.constant 0 : i32
    return %arg0, %c0_i32 : i32, i32
  }
  func.func @transform_4(%arg0: i32) -> (i32, i32) {
    %c0_i32 = arith.constant 0 : i32
    %c0_i32_0 = arith.constant 0 : i32
    return %arg0, %c0_i32 : i32, i32
  }
}

module attributes {stable_mosaic.version = 11 : i64} {
  func.func @_gemm_resident_kernel(%arg0: i32, %arg1: memref<16x144xbf16, #tpu.memory_space<vmem>>, %arg2: memref<144x32xbf16, #tpu.memory_space<vmem>>, %arg3: memref<1x32xf32, #tpu.memory_space<vmem>>, %arg4: memref<16x32xbf16, #tpu.memory_space<vmem>>) attributes {dimension_semantics = [#tpu.dimension_semantics<parallel>], iteration_bounds = array<i64: 2>, scalar_prefetch = 0 : i64, scratch_operands = 0 : i64, tpu.core_type = #tpu.core_type<tc>, window_params = [{transform_indices = @transform_0, window_bounds = array<i64: 16, 144>}, {pipeline_mode = #tpu.pipeline_mode<synchronous>, transform_indices = @transform_1, window_bounds = array<i64: 144, 32>}, {pipeline_mode = #tpu.pipeline_mode<synchronous>, transform_indices = @transform_2, window_bounds = array<i64: 1, 32>}, {transform_indices = @transform_3, window_bounds = array<i64: 16, 32>}]} {
    %c0 = arith.constant 0 : index
    %c0_0 = arith.constant 0 : index
    %0 = vector.load %arg1[%c0, %c0_0] : memref<16x144xbf16, #tpu.memory_space<vmem>>, vector<16x144xbf16>
    %c0_1 = arith.constant 0 : index
    %c0_2 = arith.constant 0 : index
    %1 = vector.load %arg2[%c0_1, %c0_2] : memref<144x32xbf16, #tpu.memory_space<vmem>>, vector<144x32xbf16>
    %cst = arith.constant dense<0.000000e+00> : vector<16x32xf32>
    %2 = tpu.matmul %0, %1, %cst {dimension_numbers = #tpu.dot_dimension_numbers<[1], [0], [0], [1], [0, 0, 1, 1], [], []>} : vector<16x144xbf16>, vector<144x32xbf16>, vector<16x32xf32> -> vector<16x32xf32>
    %c0_3 = arith.constant 0 : index
    %c0_4 = arith.constant 0 : index
    %3 = vector.load %arg3[%c0_3, %c0_4] : memref<1x32xf32, #tpu.memory_space<vmem>>, vector<1x32xf32>
    %4 = vector.broadcast %3 : vector<1x32xf32> to vector<16x32xf32>
    %5 = arith.addf %2, %4 : vector<16x32xf32>
    %cst_5 = arith.constant 0.000000e+00 : f32
    %6 = vector.broadcast %cst_5 : f32 to vector<16x32xf32>
    %7 = arith.maximumf %5, %6 : vector<16x32xf32>
    %8 = arith.truncf %7 : vector<16x32xf32> to vector<16x32xbf16>
    %c0_6 = arith.constant 0 : index
    %c0_7 = arith.constant 0 : index
    %9 = vector.load %arg4[%c0_6, %c0_7] : memref<16x32xbf16, #tpu.memory_space<vmem>>, vector<16x32xbf16>
    tpu.vector_store %arg4[%c0_6, %c0_7], %8 {strides = array<i32>} : memref<16x32xbf16, #tpu.memory_space<vmem>>, vector<16x32xbf16>,
    return
  }
  func.func @transform_0(%arg0: i32) -> (i32, i32) {
    %c0_i32 = arith.constant 0 : i32
    %c0_i32_0 = arith.constant 0 : i32
    return %arg0, %c0_i32 : i32, i32
  }
  func.func @transform_1(%arg0: i32) -> (i32, i32) {
    %c0_i32 = arith.constant 0 : i32
    %c0_i32_0 = arith.constant 0 : i32
    %c0_i32_1 = arith.constant 0 : i32
    return %c0_i32, %c0_i32_0 : i32, i32
  }
  func.func @transform_2(%arg0: i32) -> (i32, i32) {
    %c0_i32 = arith.constant 0 : i32
    %c0_i32_0 = arith.constant 0 : i32
    %c0_i32_1 = arith.constant 0 : i32
    return %c0_i32, %c0_i32_0 : i32, i32
  }
  func.func @transform_3(%arg0: i32) -> (i32, i32) {
    %c0_i32 = arith.constant 0 : i32
    %c0_i32_0 = arith.constant 0 : i32
    return %arg0, %c0_i32 : i32, i32
  }
}

module attributes {stable_mosaic.version = 11 : i64} {
  func.func @_gemm_resident_kernel(%arg0: i32, %arg1: memref<16x288xbf16, #tpu.memory_space<vmem>>, %arg2: memref<288x32xbf16, #tpu.memory_space<vmem>>, %arg3: memref<1x32xf32, #tpu.memory_space<vmem>>, %arg4: memref<16x32xbf16, #tpu.memory_space<vmem>>, %arg5: memref<16x32xbf16, #tpu.memory_space<vmem>>) attributes {dimension_semantics = [#tpu.dimension_semantics<parallel>], iteration_bounds = array<i64: 2>, scalar_prefetch = 0 : i64, scratch_operands = 0 : i64, tpu.core_type = #tpu.core_type<tc>, window_params = [{transform_indices = @transform_0, window_bounds = array<i64: 16, 288>}, {pipeline_mode = #tpu.pipeline_mode<synchronous>, transform_indices = @transform_1, window_bounds = array<i64: 288, 32>}, {pipeline_mode = #tpu.pipeline_mode<synchronous>, transform_indices = @transform_2, window_bounds = array<i64: 1, 32>}, {transform_indices = @transform_3, window_bounds = array<i64: 16, 32>}, {transform_indices = @transform_4, window_bounds = array<i64: 16, 32>}]} {
    %c0 = arith.constant 0 : index
    %c0_0 = arith.constant 0 : index
    %0 = vector.load %arg1[%c0, %c0_0] : memref<16x288xbf16, #tpu.memory_space<vmem>>, vector<16x288xbf16>
    %c0_1 = arith.constant 0 : index
    %c0_2 = arith.constant 0 : index
    %1 = vector.load %arg2[%c0_1, %c0_2] : memref<288x32xbf16, #tpu.memory_space<vmem>>, vector<288x32xbf16>
    %cst = arith.constant dense<0.000000e+00> : vector<16x32xf32>
    %2 = tpu.matmul %0, %1, %cst {dimension_numbers = #tpu.dot_dimension_numbers<[1], [0], [0], [1], [0, 0, 1, 1], [], []>} : vector<16x288xbf16>, vector<288x32xbf16>, vector<16x32xf32> -> vector<16x32xf32>
    %c0_3 = arith.constant 0 : index
    %c0_4 = arith.constant 0 : index
    %3 = vector.load %arg3[%c0_3, %c0_4] : memref<1x32xf32, #tpu.memory_space<vmem>>, vector<1x32xf32>
    %4 = vector.broadcast %3 : vector<1x32xf32> to vector<16x32xf32>
    %5 = arith.addf %2, %4 : vector<16x32xf32>
    %c0_5 = arith.constant 0 : index
    %c0_6 = arith.constant 0 : index
    %6 = vector.load %arg4[%c0_5, %c0_6] : memref<16x32xbf16, #tpu.memory_space<vmem>>, vector<16x32xbf16>
    %7 = arith.extf %6 : vector<16x32xbf16> to vector<16x32xf32>
    %8 = arith.addf %5, %7 : vector<16x32xf32>
    %cst_7 = arith.constant 0.000000e+00 : f32
    %9 = vector.broadcast %cst_7 : f32 to vector<16x32xf32>
    %10 = arith.maximumf %8, %9 : vector<16x32xf32>
    %11 = arith.truncf %10 : vector<16x32xf32> to vector<16x32xbf16>
    %c0_8 = arith.constant 0 : index
    %c0_9 = arith.constant 0 : index
    %12 = vector.load %arg5[%c0_8, %c0_9] : memref<16x32xbf16, #tpu.memory_space<vmem>>, vector<16x32xbf16>
    tpu.vector_store %arg5[%c0_8, %c0_9], %11 {strides = array<i32>} : memref<16x32xbf16, #tpu.memory_space<vmem>>, vector<16x32xbf16>,
    return
  }
  func.func @transform_0(%arg0: i32) -> (i32, i32) {
    %c0_i32 = arith.constant 0 : i32
    %c0_i32_0 = arith.constant 0 : i32
    return %arg0, %c0_i32 : i32, i32
  }
  func.func @transform_1(%arg0: i32) -> (i32, i32) {
    %c0_i32 = arith.constant 0 : i32
    %c0_i32_0 = arith.constant 0 : i32
    %c0_i32_1 = arith.constant 0 : i32
    return %c0_i32, %c0_i32_0 : i32, i32
  }
  func.func @transform_2(%arg0: i32) -> (i32, i32) {
    %c0_i32 = arith.constant 0 : i32
    %c0_i32_0 = arith.constant 0 : i32
    %c0_i32_1 = arith.constant 0 : i32
    return %c0_i32, %c0_i32_0 : i32, i32
  }
  func.func @transform_3(%arg0: i32) -> (i32, i32) {
    %c0_i32 = arith.constant 0 : i32
    %c0_i32_0 = arith.constant 0 : i32
    return %arg0, %c0_i32 : i32, i32
  }
  func.func @transform_4(%arg0: i32) -> (i32, i32) {
    %c0_i32 = arith.constant 0 : i32
    %c0_i32_0 = arith.constant 0 : i32
    return %arg0, %c0_i32 : i32, i32
  }
}

module attributes {stable_mosaic.version = 11 : i64} {
  func.func @_gemm_resident_kernel(%arg0: i32, %arg1: memref<16x16xbf16, #tpu.memory_space<vmem>>, %arg2: memref<16x32xbf16, #tpu.memory_space<vmem>>, %arg3: memref<1x32xf32, #tpu.memory_space<vmem>>, %arg4: memref<16x32xbf16, #tpu.memory_space<vmem>>) attributes {dimension_semantics = [#tpu.dimension_semantics<parallel>], iteration_bounds = array<i64: 2>, scalar_prefetch = 0 : i64, scratch_operands = 0 : i64, tpu.core_type = #tpu.core_type<tc>, window_params = [{transform_indices = @transform_0, window_bounds = array<i64: 16, 16>}, {pipeline_mode = #tpu.pipeline_mode<synchronous>, transform_indices = @transform_1, window_bounds = array<i64: 16, 32>}, {pipeline_mode = #tpu.pipeline_mode<synchronous>, transform_indices = @transform_2, window_bounds = array<i64: 1, 32>}, {transform_indices = @transform_3, window_bounds = array<i64: 16, 32>}]} {
    %c0 = arith.constant 0 : index
    %c0_0 = arith.constant 0 : index
    %0 = vector.load %arg1[%c0, %c0_0] : memref<16x16xbf16, #tpu.memory_space<vmem>>, vector<16x16xbf16>
    %c0_1 = arith.constant 0 : index
    %c0_2 = arith.constant 0 : index
    %1 = vector.load %arg2[%c0_1, %c0_2] : memref<16x32xbf16, #tpu.memory_space<vmem>>, vector<16x32xbf16>
    %cst = arith.constant dense<0.000000e+00> : vector<16x32xf32>
    %2 = tpu.matmul %0, %1, %cst {dimension_numbers = #tpu.dot_dimension_numbers<[1], [0], [0], [1], [0, 0, 1, 1], [], []>} : vector<16x16xbf16>, vector<16x32xbf16>, vector<16x32xf32> -> vector<16x32xf32>
    %c0_3 = arith.constant 0 : index
    %c0_4 = arith.constant 0 : index
    %3 = vector.load %arg3[%c0_3, %c0_4] : memref<1x32xf32, #tpu.memory_space<vmem>>, vector<1x32xf32>
    %4 = vector.broadcast %3 : vector<1x32xf32> to vector<16x32xf32>
    %5 = arith.addf %2, %4 : vector<16x32xf32>
    %6 = arith.truncf %5 : vector<16x32xf32> to vector<16x32xbf16>
    %c0_5 = arith.constant 0 : index
    %c0_6 = arith.constant 0 : index
    %7 = vector.load %arg4[%c0_5, %c0_6] : memref<16x32xbf16, #tpu.memory_space<vmem>>, vector<16x32xbf16>
    tpu.vector_store %arg4[%c0_5, %c0_6], %6 {strides = array<i32>} : memref<16x32xbf16, #tpu.memory_space<vmem>>, vector<16x32xbf16>,
    return
  }
  func.func @transform_0(%arg0: i32) -> (i32, i32) {
    %c0_i32 = arith.constant 0 : i32
    %c0_i32_0 = arith.constant 0 : i32
    return %arg0, %c0_i32 : i32, i32
  }
  func.func @transform_1(%arg0: i32) -> (i32, i32) {
    %c0_i32 = arith.constant 0 : i32
    %c0_i32_0 = arith.constant 0 : i32
    %c0_i32_1 = arith.constant 0 : i32
    return %c0_i32, %c0_i32_0 : i32, i32
  }
  func.func @transform_2(%arg0: i32) -> (i32, i32) {
    %c0_i32 = arith.constant 0 : i32
    %c0_i32_0 = arith.constant 0 : i32
    %c0_i32_1 = arith.constant 0 : i32
    return %c0_i32, %c0_i32_0 : i32, i32
  }
  func.func @transform_3(%arg0: i32) -> (i32, i32) {
    %c0_i32 = arith.constant 0 : i32
    %c0_i32_0 = arith.constant 0 : i32
    return %arg0, %c0_i32 : i32, i32
  }
}

module attributes {stable_mosaic.version = 11 : i64} {
  func.func @_gemm_resident_kernel(%arg0: i32, %arg1: memref<16x32xbf16, #tpu.memory_space<vmem>>, %arg2: memref<32x64xbf16, #tpu.memory_space<vmem>>, %arg3: memref<1x64xf32, #tpu.memory_space<vmem>>, %arg4: memref<16x64xbf16, #tpu.memory_space<vmem>>) attributes {dimension_semantics = [#tpu.dimension_semantics<parallel>], iteration_bounds = array<i64: 2>, scalar_prefetch = 0 : i64, scratch_operands = 0 : i64, tpu.core_type = #tpu.core_type<tc>, window_params = [{transform_indices = @transform_0, window_bounds = array<i64: 16, 32>}, {pipeline_mode = #tpu.pipeline_mode<synchronous>, transform_indices = @transform_1, window_bounds = array<i64: 32, 64>}, {pipeline_mode = #tpu.pipeline_mode<synchronous>, transform_indices = @transform_2, window_bounds = array<i64: 1, 64>}, {transform_indices = @transform_3, window_bounds = array<i64: 16, 64>}]} {
    %c0 = arith.constant 0 : index
    %c0_0 = arith.constant 0 : index
    %0 = vector.load %arg1[%c0, %c0_0] : memref<16x32xbf16, #tpu.memory_space<vmem>>, vector<16x32xbf16>
    %c0_1 = arith.constant 0 : index
    %c0_2 = arith.constant 0 : index
    %1 = vector.load %arg2[%c0_1, %c0_2] : memref<32x64xbf16, #tpu.memory_space<vmem>>, vector<32x64xbf16>
    %cst = arith.constant dense<0.000000e+00> : vector<16x64xf32>
    %2 = tpu.matmul %0, %1, %cst {dimension_numbers = #tpu.dot_dimension_numbers<[1], [0], [0], [1], [0, 0, 1, 1], [], []>} : vector<16x32xbf16>, vector<32x64xbf16>, vector<16x64xf32> -> vector<16x64xf32>
    %c0_3 = arith.constant 0 : index
    %c0_4 = arith.constant 0 : index
    %3 = vector.load %arg3[%c0_3, %c0_4] : memref<1x64xf32, #tpu.memory_space<vmem>>, vector<1x64xf32>
    %4 = vector.broadcast %3 : vector<1x64xf32> to vector<16x64xf32>
    %5 = arith.addf %2, %4 : vector<16x64xf32>
    %6 = arith.truncf %5 : vector<16x64xf32> to vector<16x64xbf16>
    %c0_5 = arith.constant 0 : index
    %c0_6 = arith.constant 0 : index
    %7 = vector.load %arg4[%c0_5, %c0_6] : memref<16x64xbf16, #tpu.memory_space<vmem>>, vector<16x64xbf16>
    tpu.vector_store %arg4[%c0_5, %c0_6], %6 {strides = array<i32>} : memref<16x64xbf16, #tpu.memory_space<vmem>>, vector<16x64xbf16>,
    return
  }
  func.func @transform_0(%arg0: i32) -> (i32, i32) {
    %c0_i32 = arith.constant 0 : i32
    %c0_i32_0 = arith.constant 0 : i32
    return %arg0, %c0_i32 : i32, i32
  }
  func.func @transform_1(%arg0: i32) -> (i32, i32) {
    %c0_i32 = arith.constant 0 : i32
    %c0_i32_0 = arith.constant 0 : i32
    %c0_i32_1 = arith.constant 0 : i32
    return %c0_i32, %c0_i32_0 : i32, i32
  }
  func.func @transform_2(%arg0: i32) -> (i32, i32) {
    %c0_i32 = arith.constant 0 : i32
    %c0_i32_0 = arith.constant 0 : i32
    %c0_i32_1 = arith.constant 0 : i32
    return %c0_i32, %c0_i32_0 : i32, i32
  }
  func.func @transform_3(%arg0: i32) -> (i32, i32) {
    %c0_i32 = arith.constant 0 : i32
    %c0_i32_0 = arith.constant 0 : i32
    return %arg0, %c0_i32 : i32, i32
  }
}

module attributes {stable_mosaic.version = 11 : i64} {
  func.func @_gemm_resident_kernel(%arg0: i32, %arg1: memref<64x16xbf16, #tpu.memory_space<vmem>>, %arg2: memref<16x16xbf16, #tpu.memory_space<vmem>>, %arg3: memref<64x16xbf16, #tpu.memory_space<vmem>>, %arg4: memref<16x16xbf16, #tpu.memory_space<vmem>>, %arg5: memref<1x16xf32, #tpu.memory_space<vmem>>, %arg6: memref<64x16xbf16, #tpu.memory_space<vmem>>) attributes {dimension_semantics = [#tpu.dimension_semantics<parallel>], iteration_bounds = array<i64: 2>, scalar_prefetch = 0 : i64, scratch_operands = 0 : i64, tpu.core_type = #tpu.core_type<tc>, window_params = [{transform_indices = @transform_0, window_bounds = array<i64: 64, 16>}, {pipeline_mode = #tpu.pipeline_mode<synchronous>, transform_indices = @transform_1, window_bounds = array<i64: 16, 16>}, {transform_indices = @transform_2, window_bounds = array<i64: 64, 16>}, {pipeline_mode = #tpu.pipeline_mode<synchronous>, transform_indices = @transform_3, window_bounds = array<i64: 16, 16>}, {pipeline_mode = #tpu.pipeline_mode<synchronous>, transform_indices = @transform_4, window_bounds = array<i64: 1, 16>}, {transform_indices = @transform_5, window_bounds = array<i64: 64, 16>}]} {
    %c0 = arith.constant 0 : index
    %c0_0 = arith.constant 0 : index
    %0 = vector.load %arg1[%c0, %c0_0] : memref<64x16xbf16, #tpu.memory_space<vmem>>, vector<64x16xbf16>
    %c0_1 = arith.constant 0 : index
    %c0_2 = arith.constant 0 : index
    %1 = vector.load %arg2[%c0_1, %c0_2] : memref<16x16xbf16, #tpu.memory_space<vmem>>, vector<16x16xbf16>
    %cst = arith.constant dense<0.000000e+00> : vector<64x16xf32>
    %2 = tpu.matmul %0, %1, %cst {dimension_numbers = #tpu.dot_dimension_numbers<[1], [0], [0], [1], [0, 0, 1, 1], [], []>} : vector<64x16xbf16>, vector<16x16xbf16>, vector<64x16xf32> -> vector<64x16xf32>
    %c0_3 = arith.constant 0 : index
    %c0_4 = arith.constant 0 : index
    %3 = vector.load %arg3[%c0_3, %c0_4] : memref<64x16xbf16, #tpu.memory_space<vmem>>, vector<64x16xbf16>
    %c0_5 = arith.constant 0 : index
    %c0_6 = arith.constant 0 : index
    %4 = vector.load %arg4[%c0_5, %c0_6] : memref<16x16xbf16, #tpu.memory_space<vmem>>, vector<16x16xbf16>
    %cst_7 = arith.constant dense<0.000000e+00> : vector<64x16xf32>
    %5 = tpu.matmul %3, %4, %cst_7 {dimension_numbers = #tpu.dot_dimension_numbers<[1], [0], [0], [1], [0, 0, 1, 1], [], []>} : vector<64x16xbf16>, vector<16x16xbf16>, vector<64x16xf32> -> vector<64x16xf32>
    %6 = arith.addf %2, %5 : vector<64x16xf32>
    %c0_8 = arith.constant 0 : index
    %c0_9 = arith.constant 0 : index
    %7 = vector.load %arg5[%c0_8, %c0_9] : memref<1x16xf32, #tpu.memory_space<vmem>>, vector<1x16xf32>
    %8 = vector.broadcast %7 : vector<1x16xf32> to vector<64x16xf32>
    %9 = arith.addf %6, %8 : vector<64x16xf32>
    %10 = arith.truncf %9 : vector<64x16xf32> to vector<64x16xbf16>
    %c0_10 = arith.constant 0 : index
    %c0_11 = arith.constant 0 : index
    %11 = vector.load %arg6[%c0_10, %c0_11] : memref<64x16xbf16, #tpu.memory_space<vmem>>, vector<64x16xbf16>
    tpu.vector_store %arg6[%c0_10, %c0_11], %10 {strides = array<i32>} : memref<64x16xbf16, #tpu.memory_space<vmem>>, vector<64x16xbf16>,
    return
  }
  func.func @transform_0(%arg0: i32) -> (i32, i32) {
    %c0_i32 = arith.constant 0 : i32
    %c0_i32_0 = arith.constant 0 : i32
    return %arg0, %c0_i32 : i32, i32
  }
  func.func @transform_1(%arg0: i32) -> (i32, i32) {
    %c0_i32 = arith.constant 0 : i32
    %c0_i32_0 = arith.constant 0 : i32
    %c0_i32_1 = arith.constant 0 : i32
    return %c0_i32, %c0_i32_0 : i32, i32
  }
  func.func @transform_2(%arg0: i32) -> (i32, i32) {
    %c0_i32 = arith.constant 0 : i32
    %c0_i32_0 = arith.constant 0 : i32
    return %arg0, %c0_i32 : i32, i32
  }
  func.func @transform_3(%arg0: i32) -> (i32, i32) {
    %c0_i32 = arith.constant 0 : i32
    %c0_i32_0 = arith.constant 0 : i32
    %c0_i32_1 = arith.constant 0 : i32
    return %c0_i32, %c0_i32_0 : i32, i32
  }
  func.func @transform_4(%arg0: i32) -> (i32, i32) {
    %c0_i32 = arith.constant 0 : i32
    %c0_i32_0 = arith.constant 0 : i32
    %c0_i32_1 = arith.constant 0 : i32
    return %c0_i32, %c0_i32_0 : i32, i32
  }
  func.func @transform_5(%arg0: i32) -> (i32, i32) {
    %c0_i32 = arith.constant 0 : i32
    %c0_i32_0 = arith.constant 0 : i32
    return %arg0, %c0_i32 : i32, i32
  }
}

module attributes {stable_mosaic.version = 11 : i64} {
  func.func @_gemm_resident_kernel(%arg0: i32, %arg1: memref<64x144xbf16, #tpu.memory_space<vmem>>, %arg2: memref<144x16xbf16, #tpu.memory_space<vmem>>, %arg3: memref<64x144xbf16, #tpu.memory_space<vmem>>, %arg4: memref<144x16xbf16, #tpu.memory_space<vmem>>, %arg5: memref<1x16xf32, #tpu.memory_space<vmem>>, %arg6: memref<64x16xbf16, #tpu.memory_space<vmem>>) attributes {dimension_semantics = [#tpu.dimension_semantics<parallel>], iteration_bounds = array<i64: 2>, scalar_prefetch = 0 : i64, scratch_operands = 0 : i64, tpu.core_type = #tpu.core_type<tc>, window_params = [{transform_indices = @transform_0, window_bounds = array<i64: 64, 144>}, {pipeline_mode = #tpu.pipeline_mode<synchronous>, transform_indices = @transform_1, window_bounds = array<i64: 144, 16>}, {transform_indices = @transform_2, window_bounds = array<i64: 64, 144>}, {pipeline_mode = #tpu.pipeline_mode<synchronous>, transform_indices = @transform_3, window_bounds = array<i64: 144, 16>}, {pipeline_mode = #tpu.pipeline_mode<synchronous>, transform_indices = @transform_4, window_bounds = array<i64: 1, 16>}, {transform_indices = @transform_5, window_bounds = array<i64: 64, 16>}]} {
    %c0 = arith.constant 0 : index
    %c0_0 = arith.constant 0 : index
    %0 = vector.load %arg1[%c0, %c0_0] : memref<64x144xbf16, #tpu.memory_space<vmem>>, vector<64x144xbf16>
    %c0_1 = arith.constant 0 : index
    %c0_2 = arith.constant 0 : index
    %1 = vector.load %arg2[%c0_1, %c0_2] : memref<144x16xbf16, #tpu.memory_space<vmem>>, vector<144x16xbf16>
    %cst = arith.constant dense<0.000000e+00> : vector<64x16xf32>
    %2 = tpu.matmul %0, %1, %cst {dimension_numbers = #tpu.dot_dimension_numbers<[1], [0], [0], [1], [0, 0, 1, 1], [], []>} : vector<64x144xbf16>, vector<144x16xbf16>, vector<64x16xf32> -> vector<64x16xf32>
    %c0_3 = arith.constant 0 : index
    %c0_4 = arith.constant 0 : index
    %3 = vector.load %arg3[%c0_3, %c0_4] : memref<64x144xbf16, #tpu.memory_space<vmem>>, vector<64x144xbf16>
    %c0_5 = arith.constant 0 : index
    %c0_6 = arith.constant 0 : index
    %4 = vector.load %arg4[%c0_5, %c0_6] : memref<144x16xbf16, #tpu.memory_space<vmem>>, vector<144x16xbf16>
    %cst_7 = arith.constant dense<0.000000e+00> : vector<64x16xf32>
    %5 = tpu.matmul %3, %4, %cst_7 {dimension_numbers = #tpu.dot_dimension_numbers<[1], [0], [0], [1], [0, 0, 1, 1], [], []>} : vector<64x144xbf16>, vector<144x16xbf16>, vector<64x16xf32> -> vector<64x16xf32>
    %6 = arith.addf %2, %5 : vector<64x16xf32>
    %c0_8 = arith.constant 0 : index
    %c0_9 = arith.constant 0 : index
    %7 = vector.load %arg5[%c0_8, %c0_9] : memref<1x16xf32, #tpu.memory_space<vmem>>, vector<1x16xf32>
    %8 = vector.broadcast %7 : vector<1x16xf32> to vector<64x16xf32>
    %9 = arith.addf %6, %8 : vector<64x16xf32>
    %cst_10 = arith.constant 0.000000e+00 : f32
    %10 = vector.broadcast %cst_10 : f32 to vector<64x16xf32>
    %11 = arith.maximumf %9, %10 : vector<64x16xf32>
    %12 = arith.truncf %11 : vector<64x16xf32> to vector<64x16xbf16>
    %c0_11 = arith.constant 0 : index
    %c0_12 = arith.constant 0 : index
    %13 = vector.load %arg6[%c0_11, %c0_12] : memref<64x16xbf16, #tpu.memory_space<vmem>>, vector<64x16xbf16>
    tpu.vector_store %arg6[%c0_11, %c0_12], %12 {strides = array<i32>} : memref<64x16xbf16, #tpu.memory_space<vmem>>, vector<64x16xbf16>,
    return
  }
  func.func @transform_0(%arg0: i32) -> (i32, i32) {
    %c0_i32 = arith.constant 0 : i32
    %c0_i32_0 = arith.constant 0 : i32
    return %arg0, %c0_i32 : i32, i32
  }
  func.func @transform_1(%arg0: i32) -> (i32, i32) {
    %c0_i32 = arith.constant 0 : i32
    %c0_i32_0 = arith.constant 0 : i32
    %c0_i32_1 = arith.constant 0 : i32
    return %c0_i32, %c0_i32_0 : i32, i32
  }
  func.func @transform_2(%arg0: i32) -> (i32, i32) {
    %c0_i32 = arith.constant 0 : i32
    %c0_i32_0 = arith.constant 0 : i32
    return %arg0, %c0_i32 : i32, i32
  }
  func.func @transform_3(%arg0: i32) -> (i32, i32) {
    %c0_i32 = arith.constant 0 : i32
    %c0_i32_0 = arith.constant 0 : i32
    %c0_i32_1 = arith.constant 0 : i32
    return %c0_i32, %c0_i32_0 : i32, i32
  }
  func.func @transform_4(%arg0: i32) -> (i32, i32) {
    %c0_i32 = arith.constant 0 : i32
    %c0_i32_0 = arith.constant 0 : i32
    %c0_i32_1 = arith.constant 0 : i32
    return %c0_i32, %c0_i32_0 : i32, i32
  }
  func.func @transform_5(%arg0: i32) -> (i32, i32) {
    %c0_i32 = arith.constant 0 : i32
    %c0_i32_0 = arith.constant 0 : i32
    return %arg0, %c0_i32 : i32, i32
  }
}

module attributes {stable_mosaic.version = 11 : i64} {
  func.func @_gemm_resident_kernel(%arg0: i32, %arg1: memref<64x16xbf16, #tpu.memory_space<vmem>>, %arg2: memref<16x32xbf16, #tpu.memory_space<vmem>>, %arg3: memref<1x32xf32, #tpu.memory_space<vmem>>, %arg4: memref<64x32xbf16, #tpu.memory_space<vmem>>) attributes {dimension_semantics = [#tpu.dimension_semantics<parallel>], iteration_bounds = array<i64: 2>, scalar_prefetch = 0 : i64, scratch_operands = 0 : i64, tpu.core_type = #tpu.core_type<tc>, window_params = [{transform_indices = @transform_0, window_bounds = array<i64: 64, 16>}, {pipeline_mode = #tpu.pipeline_mode<synchronous>, transform_indices = @transform_1, window_bounds = array<i64: 16, 32>}, {pipeline_mode = #tpu.pipeline_mode<synchronous>, transform_indices = @transform_2, window_bounds = array<i64: 1, 32>}, {transform_indices = @transform_3, window_bounds = array<i64: 64, 32>}]} {
    %c0 = arith.constant 0 : index
    %c0_0 = arith.constant 0 : index
    %0 = vector.load %arg1[%c0, %c0_0] : memref<64x16xbf16, #tpu.memory_space<vmem>>, vector<64x16xbf16>
    %c0_1 = arith.constant 0 : index
    %c0_2 = arith.constant 0 : index
    %1 = vector.load %arg2[%c0_1, %c0_2] : memref<16x32xbf16, #tpu.memory_space<vmem>>, vector<16x32xbf16>
    %cst = arith.constant dense<0.000000e+00> : vector<64x32xf32>
    %2 = tpu.matmul %0, %1, %cst {dimension_numbers = #tpu.dot_dimension_numbers<[1], [0], [0], [1], [0, 0, 1, 1], [], []>} : vector<64x16xbf16>, vector<16x32xbf16>, vector<64x32xf32> -> vector<64x32xf32>
    %c0_3 = arith.constant 0 : index
    %c0_4 = arith.constant 0 : index
    %3 = vector.load %arg3[%c0_3, %c0_4] : memref<1x32xf32, #tpu.memory_space<vmem>>, vector<1x32xf32>
    %4 = vector.broadcast %3 : vector<1x32xf32> to vector<64x32xf32>
    %5 = arith.addf %2, %4 : vector<64x32xf32>
    %6 = arith.truncf %5 : vector<64x32xf32> to vector<64x32xbf16>
    %c0_5 = arith.constant 0 : index
    %c0_6 = arith.constant 0 : index
    %7 = vector.load %arg4[%c0_5, %c0_6] : memref<64x32xbf16, #tpu.memory_space<vmem>>, vector<64x32xbf16>
    tpu.vector_store %arg4[%c0_5, %c0_6], %6 {strides = array<i32>} : memref<64x32xbf16, #tpu.memory_space<vmem>>, vector<64x32xbf16>,
    return
  }
  func.func @transform_0(%arg0: i32) -> (i32, i32) {
    %c0_i32 = arith.constant 0 : i32
    %c0_i32_0 = arith.constant 0 : i32
    return %arg0, %c0_i32 : i32, i32
  }
  func.func @transform_1(%arg0: i32) -> (i32, i32) {
    %c0_i32 = arith.constant 0 : i32
    %c0_i32_0 = arith.constant 0 : i32
    %c0_i32_1 = arith.constant 0 : i32
    return %c0_i32, %c0_i32_0 : i32, i32
  }
  func.func @transform_2(%arg0: i32) -> (i32, i32) {
    %c0_i32 = arith.constant 0 : i32
    %c0_i32_0 = arith.constant 0 : i32
    %c0_i32_1 = arith.constant 0 : i32
    return %c0_i32, %c0_i32_0 : i32, i32
  }
  func.func @transform_3(%arg0: i32) -> (i32, i32) {
    %c0_i32 = arith.constant 0 : i32
    %c0_i32_0 = arith.constant 0 : i32
    return %arg0, %c0_i32 : i32, i32
  }
}

module attributes {stable_mosaic.version = 11 : i64} {
  func.func @_gemm_resident_kernel(%arg0: i32, %arg1: memref<256x8xbf16, #tpu.memory_space<vmem>>, %arg2: memref<8x8xbf16, #tpu.memory_space<vmem>>, %arg3: memref<256x8xbf16, #tpu.memory_space<vmem>>, %arg4: memref<8x8xbf16, #tpu.memory_space<vmem>>, %arg5: memref<1x8xf32, #tpu.memory_space<vmem>>, %arg6: memref<256x8xbf16, #tpu.memory_space<vmem>>) attributes {dimension_semantics = [#tpu.dimension_semantics<parallel>], iteration_bounds = array<i64: 2>, scalar_prefetch = 0 : i64, scratch_operands = 0 : i64, tpu.core_type = #tpu.core_type<tc>, window_params = [{transform_indices = @transform_0, window_bounds = array<i64: 256, 8>}, {pipeline_mode = #tpu.pipeline_mode<synchronous>, transform_indices = @transform_1, window_bounds = array<i64: 8, 8>}, {transform_indices = @transform_2, window_bounds = array<i64: 256, 8>}, {pipeline_mode = #tpu.pipeline_mode<synchronous>, transform_indices = @transform_3, window_bounds = array<i64: 8, 8>}, {pipeline_mode = #tpu.pipeline_mode<synchronous>, transform_indices = @transform_4, window_bounds = array<i64: 1, 8>}, {transform_indices = @transform_5, window_bounds = array<i64: 256, 8>}]} {
    %c0 = arith.constant 0 : index
    %c0_0 = arith.constant 0 : index
    %0 = vector.load %arg1[%c0, %c0_0] : memref<256x8xbf16, #tpu.memory_space<vmem>>, vector<256x8xbf16>
    %c0_1 = arith.constant 0 : index
    %c0_2 = arith.constant 0 : index
    %1 = vector.load %arg2[%c0_1, %c0_2] : memref<8x8xbf16, #tpu.memory_space<vmem>>, vector<8x8xbf16>
    %cst = arith.constant dense<0.000000e+00> : vector<256x8xf32>
    %2 = tpu.matmul %0, %1, %cst {dimension_numbers = #tpu.dot_dimension_numbers<[1], [0], [0], [1], [0, 0, 1, 1], [], []>} : vector<256x8xbf16>, vector<8x8xbf16>, vector<256x8xf32> -> vector<256x8xf32>
    %c0_3 = arith.constant 0 : index
    %c0_4 = arith.constant 0 : index
    %3 = vector.load %arg3[%c0_3, %c0_4] : memref<256x8xbf16, #tpu.memory_space<vmem>>, vector<256x8xbf16>
    %c0_5 = arith.constant 0 : index
    %c0_6 = arith.constant 0 : index
    %4 = vector.load %arg4[%c0_5, %c0_6] : memref<8x8xbf16, #tpu.memory_space<vmem>>, vector<8x8xbf16>
    %cst_7 = arith.constant dense<0.000000e+00> : vector<256x8xf32>
    %5 = tpu.matmul %3, %4, %cst_7 {dimension_numbers = #tpu.dot_dimension_numbers<[1], [0], [0], [1], [0, 0, 1, 1], [], []>} : vector<256x8xbf16>, vector<8x8xbf16>, vector<256x8xf32> -> vector<256x8xf32>
    %6 = arith.addf %2, %5 : vector<256x8xf32>
    %c0_8 = arith.constant 0 : index
    %c0_9 = arith.constant 0 : index
    %7 = vector.load %arg5[%c0_8, %c0_9] : memref<1x8xf32, #tpu.memory_space<vmem>>, vector<1x8xf32>
    %8 = vector.broadcast %7 : vector<1x8xf32> to vector<256x8xf32>
    %9 = arith.addf %6, %8 : vector<256x8xf32>
    %10 = arith.truncf %9 : vector<256x8xf32> to vector<256x8xbf16>
    %c0_10 = arith.constant 0 : index
    %c0_11 = arith.constant 0 : index
    %11 = vector.load %arg6[%c0_10, %c0_11] : memref<256x8xbf16, #tpu.memory_space<vmem>>, vector<256x8xbf16>
    tpu.vector_store %arg6[%c0_10, %c0_11], %10 {strides = array<i32>} : memref<256x8xbf16, #tpu.memory_space<vmem>>, vector<256x8xbf16>,
    return
  }
  func.func @transform_0(%arg0: i32) -> (i32, i32) {
    %c0_i32 = arith.constant 0 : i32
    %c0_i32_0 = arith.constant 0 : i32
    return %arg0, %c0_i32 : i32, i32
  }
  func.func @transform_1(%arg0: i32) -> (i32, i32) {
    %c0_i32 = arith.constant 0 : i32
    %c0_i32_0 = arith.constant 0 : i32
    %c0_i32_1 = arith.constant 0 : i32
    return %c0_i32, %c0_i32_0 : i32, i32
  }
  func.func @transform_2(%arg0: i32) -> (i32, i32) {
    %c0_i32 = arith.constant 0 : i32
    %c0_i32_0 = arith.constant 0 : i32
    return %arg0, %c0_i32 : i32, i32
  }
  func.func @transform_3(%arg0: i32) -> (i32, i32) {
    %c0_i32 = arith.constant 0 : i32
    %c0_i32_0 = arith.constant 0 : i32
    %c0_i32_1 = arith.constant 0 : i32
    return %c0_i32, %c0_i32_0 : i32, i32
  }
  func.func @transform_4(%arg0: i32) -> (i32, i32) {
    %c0_i32 = arith.constant 0 : i32
    %c0_i32_0 = arith.constant 0 : i32
    %c0_i32_1 = arith.constant 0 : i32
    return %c0_i32, %c0_i32_0 : i32, i32
  }
  func.func @transform_5(%arg0: i32) -> (i32, i32) {
    %c0_i32 = arith.constant 0 : i32
    %c0_i32_0 = arith.constant 0 : i32
    return %arg0, %c0_i32 : i32, i32
  }
}

module attributes {stable_mosaic.version = 11 : i64} {
  func.func @_gemm_resident_kernel(%arg0: i32, %arg1: memref<256x72xbf16, #tpu.memory_space<vmem>>, %arg2: memref<72x8xbf16, #tpu.memory_space<vmem>>, %arg3: memref<256x72xbf16, #tpu.memory_space<vmem>>, %arg4: memref<72x8xbf16, #tpu.memory_space<vmem>>, %arg5: memref<1x8xf32, #tpu.memory_space<vmem>>, %arg6: memref<256x8xbf16, #tpu.memory_space<vmem>>) attributes {dimension_semantics = [#tpu.dimension_semantics<parallel>], iteration_bounds = array<i64: 2>, scalar_prefetch = 0 : i64, scratch_operands = 0 : i64, tpu.core_type = #tpu.core_type<tc>, window_params = [{transform_indices = @transform_0, window_bounds = array<i64: 256, 72>}, {pipeline_mode = #tpu.pipeline_mode<synchronous>, transform_indices = @transform_1, window_bounds = array<i64: 72, 8>}, {transform_indices = @transform_2, window_bounds = array<i64: 256, 72>}, {pipeline_mode = #tpu.pipeline_mode<synchronous>, transform_indices = @transform_3, window_bounds = array<i64: 72, 8>}, {pipeline_mode = #tpu.pipeline_mode<synchronous>, transform_indices = @transform_4, window_bounds = array<i64: 1, 8>}, {transform_indices = @transform_5, window_bounds = array<i64: 256, 8>}]} {
    %c0 = arith.constant 0 : index
    %c0_0 = arith.constant 0 : index
    %0 = vector.load %arg1[%c0, %c0_0] : memref<256x72xbf16, #tpu.memory_space<vmem>>, vector<256x72xbf16>
    %c0_1 = arith.constant 0 : index
    %c0_2 = arith.constant 0 : index
    %1 = vector.load %arg2[%c0_1, %c0_2] : memref<72x8xbf16, #tpu.memory_space<vmem>>, vector<72x8xbf16>
    %cst = arith.constant dense<0.000000e+00> : vector<256x8xf32>
    %2 = tpu.matmul %0, %1, %cst {dimension_numbers = #tpu.dot_dimension_numbers<[1], [0], [0], [1], [0, 0, 1, 1], [], []>} : vector<256x72xbf16>, vector<72x8xbf16>, vector<256x8xf32> -> vector<256x8xf32>
    %c0_3 = arith.constant 0 : index
    %c0_4 = arith.constant 0 : index
    %3 = vector.load %arg3[%c0_3, %c0_4] : memref<256x72xbf16, #tpu.memory_space<vmem>>, vector<256x72xbf16>
    %c0_5 = arith.constant 0 : index
    %c0_6 = arith.constant 0 : index
    %4 = vector.load %arg4[%c0_5, %c0_6] : memref<72x8xbf16, #tpu.memory_space<vmem>>, vector<72x8xbf16>
    %cst_7 = arith.constant dense<0.000000e+00> : vector<256x8xf32>
    %5 = tpu.matmul %3, %4, %cst_7 {dimension_numbers = #tpu.dot_dimension_numbers<[1], [0], [0], [1], [0, 0, 1, 1], [], []>} : vector<256x72xbf16>, vector<72x8xbf16>, vector<256x8xf32> -> vector<256x8xf32>
    %6 = arith.addf %2, %5 : vector<256x8xf32>
    %c0_8 = arith.constant 0 : index
    %c0_9 = arith.constant 0 : index
    %7 = vector.load %arg5[%c0_8, %c0_9] : memref<1x8xf32, #tpu.memory_space<vmem>>, vector<1x8xf32>
    %8 = vector.broadcast %7 : vector<1x8xf32> to vector<256x8xf32>
    %9 = arith.addf %6, %8 : vector<256x8xf32>
    %cst_10 = arith.constant 0.000000e+00 : f32
    %10 = vector.broadcast %cst_10 : f32 to vector<256x8xf32>
    %11 = arith.maximumf %9, %10 : vector<256x8xf32>
    %12 = arith.truncf %11 : vector<256x8xf32> to vector<256x8xbf16>
    %c0_11 = arith.constant 0 : index
    %c0_12 = arith.constant 0 : index
    %13 = vector.load %arg6[%c0_11, %c0_12] : memref<256x8xbf16, #tpu.memory_space<vmem>>, vector<256x8xbf16>
    tpu.vector_store %arg6[%c0_11, %c0_12], %12 {strides = array<i32>} : memref<256x8xbf16, #tpu.memory_space<vmem>>, vector<256x8xbf16>,
    return
  }
  func.func @transform_0(%arg0: i32) -> (i32, i32) {
    %c0_i32 = arith.constant 0 : i32
    %c0_i32_0 = arith.constant 0 : i32
    return %arg0, %c0_i32 : i32, i32
  }
  func.func @transform_1(%arg0: i32) -> (i32, i32) {
    %c0_i32 = arith.constant 0 : i32
    %c0_i32_0 = arith.constant 0 : i32
    %c0_i32_1 = arith.constant 0 : i32
    return %c0_i32, %c0_i32_0 : i32, i32
  }
  func.func @transform_2(%arg0: i32) -> (i32, i32) {
    %c0_i32 = arith.constant 0 : i32
    %c0_i32_0 = arith.constant 0 : i32
    return %arg0, %c0_i32 : i32, i32
  }
  func.func @transform_3(%arg0: i32) -> (i32, i32) {
    %c0_i32 = arith.constant 0 : i32
    %c0_i32_0 = arith.constant 0 : i32
    %c0_i32_1 = arith.constant 0 : i32
    return %c0_i32, %c0_i32_0 : i32, i32
  }
  func.func @transform_4(%arg0: i32) -> (i32, i32) {
    %c0_i32 = arith.constant 0 : i32
    %c0_i32_0 = arith.constant 0 : i32
    %c0_i32_1 = arith.constant 0 : i32
    return %c0_i32, %c0_i32_0 : i32, i32
  }
  func.func @transform_5(%arg0: i32) -> (i32, i32) {
    %c0_i32 = arith.constant 0 : i32
    %c0_i32_0 = arith.constant 0 : i32
    return %arg0, %c0_i32 : i32, i32
  }
}

module attributes {stable_mosaic.version = 11 : i64} {
  func.func @_gemm_resident_kernel(%arg0: i32, %arg1: memref<256x8xbf16, #tpu.memory_space<vmem>>, %arg2: memref<8x3xbf16, #tpu.memory_space<vmem>>, %arg3: memref<1x3xf32, #tpu.memory_space<vmem>>, %arg4: memref<256x3xf32, #tpu.memory_space<vmem>>) attributes {dimension_semantics = [#tpu.dimension_semantics<parallel>], iteration_bounds = array<i64: 2>, scalar_prefetch = 0 : i64, scratch_operands = 0 : i64, tpu.core_type = #tpu.core_type<tc>, window_params = [{transform_indices = @transform_0, window_bounds = array<i64: 256, 8>}, {pipeline_mode = #tpu.pipeline_mode<synchronous>, transform_indices = @transform_1, window_bounds = array<i64: 8, 3>}, {pipeline_mode = #tpu.pipeline_mode<synchronous>, transform_indices = @transform_2, window_bounds = array<i64: 1, 3>}, {transform_indices = @transform_3, window_bounds = array<i64: 256, 3>}]} {
    %c0 = arith.constant 0 : index
    %c0_0 = arith.constant 0 : index
    %0 = vector.load %arg1[%c0, %c0_0] : memref<256x8xbf16, #tpu.memory_space<vmem>>, vector<256x8xbf16>
    %c0_1 = arith.constant 0 : index
    %c0_2 = arith.constant 0 : index
    %1 = vector.load %arg2[%c0_1, %c0_2] : memref<8x3xbf16, #tpu.memory_space<vmem>>, vector<8x3xbf16>
    %cst = arith.constant dense<0.000000e+00> : vector<256x3xf32>
    %2 = tpu.matmul %0, %1, %cst {dimension_numbers = #tpu.dot_dimension_numbers<[1], [0], [0], [1], [0, 0, 1, 1], [], []>} : vector<256x8xbf16>, vector<8x3xbf16>, vector<256x3xf32> -> vector<256x3xf32>
    %c0_3 = arith.constant 0 : index
    %c0_4 = arith.constant 0 : index
    %3 = vector.load %arg3[%c0_3, %c0_4] : memref<1x3xf32, #tpu.memory_space<vmem>>, vector<1x3xf32>
    %4 = vector.broadcast %3 : vector<1x3xf32> to vector<256x3xf32>
    %5 = arith.addf %2, %4 : vector<256x3xf32>
    %c0_5 = arith.constant 0 : index
    %c0_6 = arith.constant 0 : index
    %6 = vector.load %arg4[%c0_5, %c0_6] : memref<256x3xf32, #tpu.memory_space<vmem>>, vector<256x3xf32>
    tpu.vector_store %arg4[%c0_5, %c0_6], %5 {strides = array<i32>} : memref<256x3xf32, #tpu.memory_space<vmem>>, vector<256x3xf32>,
    return
  }
  func.func @transform_0(%arg0: i32) -> (i32, i32) {
    %c0_i32 = arith.constant 0 : i32
    %c0_i32_0 = arith.constant 0 : i32
    return %arg0, %c0_i32 : i32, i32
  }
  func.func @transform_1(%arg0: i32) -> (i32, i32) {
    %c0_i32 = arith.constant 0 : i32
    %c0_i32_0 = arith.constant 0 : i32
    %c0_i32_1 = arith.constant 0 : i32
    return %c0_i32, %c0_i32_0 : i32, i32
  }
  func.func @transform_2(%arg0: i32) -> (i32, i32) {
    %c0_i32 = arith.constant 0 : i32
    %c0_i32_0 = arith.constant 0 : i32
    %c0_i32_1 = arith.constant 0 : i32
    return %c0_i32, %c0_i32_0 : i32, i32
  }
  func.func @transform_3(%arg0: i32) -> (i32, i32) {
    %c0_i32 = arith.constant 0 : i32
    %c0_i32_0 = arith.constant 0 : i32
    return %arg0, %c0_i32 : i32, i32
  }
}

</mosaic_0001>

<bundles_post_ra>
// kernel: flexible_resunet_forward.19
= control target key start
LH: loop header
LB: loop body
LE: loop exit
PB: predicated region body
PF: predicated region fallthrough
CT: control target
= control target key end

     0   :  { %s801_s12 = smov 0   ;;  %s977_s0 = inlined_call_operand.vmem [shape: bf16[512,72], index: 0, kind: input, shape index: {}]   ;;  %s978_s1 = inlined_call_operand.vmem [shape: bf16[72,8], index: 1, kind: input, shape index: {}]   ;;  %s979_s2 = inlined_call_operand.vmem [shape: f32[1,8], index: 2, kind: input, shape index: {}]   ;;  %s980_s3 = inlined_call_operand.vmem [shape: bf16[512,8], index: 3, kind: output, shape index: {}]  }
   0x1 LB: > { %s622_s13 = sadd.s32 4294967295, %s779_s12   ;;  %p626_p0 = scmp.ge.s32.totalorder %s779_s12, 1  ;;  %s779_s12 = sphi %s801_s12, %s13_s12  }
   0x2   : > { %p138_p1 = scmp.lt.s32.totalorder %s779_s12, 3 }
   0x4   : > { %p139_p2 = pnand %p626_p0, %p138_p1 }
   0x5   : > { %s627_s16 = sshll.u32 (!%p139_p2), %s622_s13, 5 }
   0x6   : > { %142 = sbr.rel (%p139_p2) target bundleno = 233 (0xe9), region = 32  ;;  %p163_p3 = scmp.lt.s32.totalorder (!%p139_p2), %s627_s16, 63 }
   0xb   : > { %v215_v0 = vld [vmem:[%s978_s1 + $0x20] sm:$0xf]  ;;  %vm376_vm0 = vcmask 1043456   ;;  %v748_v4 = vld [vmem:[%s978_s1 + $0x18] sm:$0xff]  ;;  %v747_v5 = vld [vmem:[%s978_s1 + $0x10] sm:$0xff]  ;;  %s982_s16 = smov (!%p163_p3, %s627_s16), 63 }
   0xc   : > { %v317_v1 = vunpack.c.l.b16 %v215_v0  ;;  %v746_v6 = vld [vmem:[%s978_s1 + $0x8] sm:$0xff]  ;;  %s628_s23 = sshll.u32 %s982_s16, 2  ;;  %v745_v7 = vld [vmem:[%s978_s1] sm:$0xff]  ;;  %vm327_vm1 = vcmask 588800   ;;  %vm533_vm2 = vcmask 60416  }
   0xd   : > { %s832_s28 = scalar_lea.vmem %s977_s0, %s628_s23  ;;  %v869_v24 = vld [vmem:[%s979_s2] ss:$0 sm:$0xff]  ;;  %s878_s6 = scalar_lea.vmem %s980_s3, %s628_s23 }
   0xe   : > { %v322_v2 = vpack.c.b16 %v317_v1, %v317_v1  ;;  %v729_v8 = vld [vmem:[%s832_s28] sm:$0xff]  ;;  %v730_v12 = vld [vmem:[%s832_s28 + $0x8] sm:$0xff]  ;;  %v731_v16 = vld [vmem:[%s832_s28 + $0x10] sm:$0xff] }
   0xf   : > { %v733_v9 = vld [vmem:[%s832_s28 + $0x20] sm:$0xff]  ;;  %v734_v13 = vld [vmem:[%s832_s28 + $0x28] sm:$0xff]  ;;  %v735_v17 = vld [vmem:[%s832_s28 + $0x30] sm:$0xff] }
  0x10   : > { %v378_v3 = vsel %vm376_vm0, %v322_v2, 0  ;;  %v737_v10 = vld [vmem:[%s832_s28 + $0x40] sm:$0xff]  ;;  %v738_v14 = vld [vmem:[%s832_s28 + $0x48] sm:$0xff]  ;;  %v739_v18 = vld [vmem:[%s832_s28 + $0x50] sm:$0xff] }
  0x11   : > { %383 = vmatpush.bf16.msra.mxu0 %v378_v3  ;;  %749 = vmatpush.bf16.msra.mxu1 %v378_v3  ;;  %v741_v11 = vld [vmem:[%s832_s28 + $0x60] sm:$0xff]  ;;  %v742_v15 = vld [vmem:[%s832_s28 + $0x68] sm:$0xff]  ;;  %v743_v19 = vld [vmem:[%s832_s28 + $0x70] sm:$0xff] }
  0x12   : > { %750 = vmatpush.bf16.msra.mxu2 %v378_v3  ;;  %751 = vmatpush.bf16.msra.mxu3 %v378_v3  ;;  %v732_v20 = vld [vmem:[%s832_s28 + $0x18] sm:$0xff] }
  0x13   : > { %v736_v21 = vld [vmem:[%s832_s28 + $0x38] sm:$0xff] }
  0x14   : > { %v740_v22 = vld [vmem:[%s832_s28 + $0x58] sm:$0xff] }
  0x15   : > { %384 = vmatpush.bf16.msra.mxu0 %v748_v4  ;;  %752 = vmatpush.bf16.msra.mxu1 %v748_v4  ;;  %v744_v23 = vld [vmem:[%s832_s28 + $0x78] sm:$0xff] }
  0x16   : > { %753 = vmatpush.bf16.msra.mxu2 %v748_v4  ;;  %754 = vmatpush.bf16.msra.mxu3 %v748_v4 }
  0x19   : > { %385 = vmatpush.bf16.msra.mxu0 %v747_v5  ;;  %755 = vmatpush.bf16.msra.mxu1 %v747_v5 }
  0x1a   : > { %756 = vmatpush.bf16.msra.mxu2 %v747_v5  ;;  %757 = vmatpush.bf16.msra.mxu3 %v747_v5 }
  0x1d   : > { %386 = vmatpush.bf16.msra.mxu0 %v746_v6  ;;  %758 = vmatpush.bf16.msra.mxu1 %v746_v6 }
  0x1e   : > { %759 = vmatpush.bf16.msra.mxu2 %v746_v6  ;;  %760 = vmatpush.bf16.msra.mxu3 %v746_v6 }
  0x21   : > { %387 = vmatpush.bf16.msra.mxu0 %v745_v7  ;;  %761 = vmatpush.bf16.msra.mxu1 %v745_v7 }
  0x22   : > { %762 = vmatpush.bf16.msra.mxu2 %v745_v7  ;;  %763 = vmatpush.bf16.msra.mxu3 %v745_v7 }
  0x24   : > { %711 = vmatmul.msk.bf16.vlgmr.msra.gmra.mxu0 %vm327_vm1, %v729_v8  ;;  %715 = vmatmul.msk.bf16.vlgmr.msra.gmra.mxu1 %vm327_vm1, %v733_v9 }
  0x25   : > { %719 = vmatmul.msk.bf16.vlgmr.msra.gmra.mxu2 %vm327_vm1, %v737_v10  ;;  %723 = vmatmul.msk.bf16.vlgmr.msra.gmra.mxu3 %vm327_vm1, %v741_v11 }
  0x34   : > { %712 = vmatmul.msk.bf16.gmra.mxu0 %vm327_vm1, %v730_v12  ;;  %716 = vmatmul.msk.bf16.gmra.mxu1 %vm327_vm1, %v734_v13 }
  0x35   : > { %720 = vmatmul.msk.bf16.gmra.mxu2 %vm327_vm1, %v738_v14  ;;  %724 = vmatmul.msk.bf16.gmra.mxu3 %vm327_vm1, %v742_v15 }
  0x44   : > { %713 = vmatmul.msk.bf16.gmra.mxu0 %vm327_vm1, %v731_v16  ;;  %717 = vmatmul.msk.bf16.gmra.mxu1 %vm327_vm1, %v735_v17 }
  0x45   : > { %721 = vmatmul.msk.bf16.gmra.mxu2 %vm327_vm1, %v739_v18  ;;  %725 = vmatmul.msk.bf16.gmra.mxu3 %vm327_vm1, %v743_v19 }
  0x54   : > { %714 = vmatmul.msk.bf16.gmra.mxu0 %vm327_vm1, %v732_v20  ;;  %718 = vmatmul.msk.bf16.gmra.mxu1 %vm327_vm1, %v736_v21 }
  0x55   : > { %722 = vmatmul.msk.bf16.gmra.mxu2 %vm327_vm1, %v740_v22  ;;  %726 = vmatmul.msk.bf16.gmra.mxu3 %vm327_vm1, %v744_v23 }
  0xa1   : > { %v389_v25 = vpop.f32.mrf.mxu0  ;;  %v409_v26 = vpop.f32.mrf.mxu1 }
  0xa2   : > { %v390_v27 = vadd.f32 %v869_v24, %v389_v25  ;;  %v410_v28 = vadd.f32 %v869_v24, %v409_v26 }
  0xa4   : > { %v469_v29 = vmax.f32 %v390_v27, 0.0  ;;  %v477_v30 = vmax.f32 %v410_v28, 0.0 }
  0xa6   : > { %v501_v31 = vpack.c.bf16 %v469_v29, %v469_v29  ;;  %v509_v32 = vpack.c.bf16 %v477_v30, %v477_v30 }
  0xa8   : > { %534 = vst.msk [vmem:[%s878_s6] sm:$0xf] %vm533_vm2, %v501_v31  ;;  %v429_v33 = vpop.f32.mrf.mxu2  ;;  %v449_v34 = vpop.f32.mrf.mxu3 }
  0xa9   : > { %542 = vst.msk [vmem:[%s878_s6 + $0x20] sm:$0xf] %vm533_vm2, %v509_v32  ;;  %v430_v35 = vadd.f32 %v869_v24, %v429_v33  ;;  %v450_v36 = vadd.f32 %v869_v24, %v449_v34  ;;  %v391_v37 = vpop.f32.mrf.mxu0  ;;  %v411_v38 = vpop.f32.mrf.mxu1 }
  0xaa   : > { %v392_v39 = vadd.f32 %v869_v24, %v391_v37  ;;  %v412_v40 = vadd.f32 %v869_v24, %v411_v38 }
  0xab   : > { %v485_v41 = vmax.f32 %v430_v35, 0.0  ;;  %v493_v42 = vmax.f32 %v450_v36, 0.0 }
  0xac   : > { %v470_v43 = vmax.f32 %v392_v39, 0.0  ;;  %v478_v44 = vmax.f32 %v412_v40, 0.0 }
  0xad   : > { %v517_v45 = vpack.c.bf16 %v485_v41, %v485_v41  ;;  %v525_v46 = vpack.c.bf16 %v493_v42, %v493_v42 }
  0xae   : > { %v502_v47 = vpack.c.bf16 %v470_v43, %v470_v43  ;;  %v510_v48 = vpack.c.bf16 %v478_v44, %v478_v44 }
  0xaf   : > { %550 = vst.msk [vmem:[%s878_s6 + $0x40] sm:$0xf] %vm533_vm2, %v517_v45 }
  0xb0   : > { %558 = vst.msk [vmem:[%s878_s6 + $0x60] sm:$0xf] %vm533_vm2, %v525_v46  ;;  %v431_v49 = vpop.f32.mrf.mxu2  ;;  %v451_v50 = vpop.f32.mrf.mxu3 }
  0xb1   : > { %535 = vst.msk [vmem:[%s878_s6 + $0x4] sm:$0xf] %vm533_vm2, %v502_v47  ;;  %v432_v51 = vadd.f32 %v869_v24, %v431_v49  ;;  %v452_v52 = vadd.f32 %v869_v24, %v451_v50  ;;  %v394_v53 = vpop.f32.mrf.mxu0  ;;  %v414_v54 = vpop.f32.mrf.mxu1 }
  0xb2   : > { %543 = vst.msk [vmem:[%s878_s6 + $0x24] sm:$0xf] %vm533_vm2, %v510_v48  ;;  %v395_v55 = vadd.f32 %v869_v24, %v394_v53  ;;  %v415_v56 = vadd.f32 %v869_v24, %v414_v54 }
  0xb3   : > { %v486_v57 = vmax.f32 %v432_v51, 0.0  ;;  %v494_v58 = vmax.f32 %v452_v52, 0.0 }
  0xb4   : > { %v471_v59 = vmax.f32 %v395_v55, 0.0  ;;  %v479_v60 = vmax.f32 %v415_v56, 0.0 }
  0xb5   : > { %v518_v61 = vpack.c.bf16 %v486_v57, %v486_v57  ;;  %v526_v62 = vpack.c.bf16 %v494_v58, %v494_v58 }
  0xb6   : > { %v503_v63 = vpack.c.bf16 %v471_v59, %v471_v59  ;;  %v511_v0 = vpack.c.bf16 %v479_v60, %v479_v60 }
  0xb7   : > { %551 = vst.msk [vmem:[%s878_s6 + $0x44] sm:$0xf] %vm533_vm2, %v518_v61 }
  0xb8   : > { %559 = vst.msk [vmem:[%s878_s6 + $0x64] sm:$0xf] %vm533_vm2, %v526_v62  ;;  %v434_v1 = vpop.f32.mrf.mxu2  ;;  %v454_v2 = vpop.f32.mrf.mxu3 }
  0xb9   : > { %536 = vst.msk [vmem:[%s878_s6 + $0x8] sm:$0xf] %vm533_vm2, %v503_v63  ;;  %v435_v3 = vadd.f32 %v869_v24, %v434_v1  ;;  %v455_v4 = vadd.f32 %v869_v24, %v454_v2  ;;  %v396_v5 = vpop.f32.mrf.mxu0  ;;  %v416_v6 = vpop.f32.mrf.mxu1 }
  0xba   : > { %544 = vst.msk [vmem:[%s878_s6 + $0x28] sm:$0xf] %vm533_vm2, %v511_v0  ;;  %v397_v7 = vadd.f32 %v869_v24, %v396_v5  ;;  %v417_v8 = vadd.f32 %v869_v24, %v416_v6 }
  0xbb   : > { %v487_v9 = vmax.f32 %v435_v3, 0.0  ;;  %v495_v10 = vmax.f32 %v455_v4, 0.0 }
  0xbc   : > { %v472_v11 = vmax.f32 %v397_v7, 0.0  ;;  %v480_v12 = vmax.f32 %v417_v8, 0.0 }
  0xbd   : > { %v519_v13 = vpack.c.bf16 %v487_v9, %v487_v9  ;;  %v527_v14 = vpack.c.bf16 %v495_v10, %v495_v10 }
  0xbe   : > { %v504_v15 = vpack.c.bf16 %v472_v11, %v472_v11  ;;  %v512_v16 = vpack.c.bf16 %v480_v12, %v480_v12 }
  0xbf   : > { %552 = vst.msk [vmem:[%s878_s6 + $0x48] sm:$0xf] %vm533_vm2, %v519_v13 }
  0xc0   : > { %560 = vst.msk [vmem:[%s878_s6 + $0x68] sm:$0xf] %vm533_vm2, %v527_v14  ;;  %v436_v17 = vpop.f32.mrf.mxu2  ;;  %v456_v18 = vpop.f32.mrf.mxu3 }
  0xc1   : > { %537 = vst.msk [vmem:[%s878_s6 + $0xc] sm:$0xf] %vm533_vm2, %v504_v15  ;;  %v437_v19 = vadd.f32 %v869_v24, %v436_v17  ;;  %v457_v20 = vadd.f32 %v869_v24, %v456_v18  ;;  %v399_v21 = vpop.f32.mrf.mxu0  ;;  %v419_v22 = vpop.f32.mrf.mxu1 }
  0xc2   : > { %545 = vst.msk [vmem:[%s878_s6 + $0x2c] sm:$0xf] %vm533_vm2, %v512_v16  ;;  %v400_v23 = vadd.f32 %v869_v24, %v399_v21  ;;  %v420_v25 = vadd.f32 %v869_v24, %v419_v22 }
  0xc3   : > { %v488_v26 = vmax.f32 %v437_v19, 0.0  ;;  %v496_v27 = vmax.f32 %v457_v20, 0.0 }
  0xc4   : > { %v473_v28 = vmax.f32 %v400_v23, 0.0  ;;  %v481_v29 = vmax.f32 %v420_v25, 0.0 }
  0xc5   : > { %v520_v30 = vpack.c.bf16 %v488_v26, %v488_v26  ;;  %v528_v31 = vpack.c.bf16 %v496_v27, %v496_v27 }
  0xc6   : > { %v505_v32 = vpack.c.bf16 %v473_v28, %v473_v28  ;;  %v513_v33 = vpack.c.bf16 %v481_v29, %v481_v29 }
  0xc7   : > { %553 = vst.msk [vmem:[%s878_s6 + $0x4c] sm:$0xf] %vm533_vm2, %v520_v30 }
  0xc8   : > { %561 = vst.msk [vmem:[%s878_s6 + $0x6c] sm:$0xf] %vm533_vm2, %v528_v31  ;;  %v439_v34 = vpop.f32.mrf.mxu2  ;;  %v459_v35 = vpop.f32.mrf.mxu3 }
  0xc9   : > { %538 = vst.msk [vmem:[%s878_s6 + $0x10] sm:$0xf] %vm533_vm2, %v505_v32  ;;  %v440_v36 = vadd.f32 %v869_v24, %v439_v34  ;;  %v460_v37 = vadd.f32 %v869_v24, %v459_v35  ;;  %v401_v38 = vpop.f32.mrf.mxu0  ;;  %v421_v39 = vpop.f32.mrf.mxu1 }
  0xca   : > { %546 = vst.msk [vmem:[%s878_s6 + $0x30] sm:$0xf] %vm533_vm2, %v513_v33  ;;  %v402_v40 = vadd.f32 %v869_v24, %v401_v38  ;;  %v422_v41 = vadd.f32 %v869_v24, %v421_v39 }
  0xcb   : > { %v489_v42 = vmax.f32 %v440_v36, 0.0  ;;  %v497_v43 = vmax.f32 %v460_v37, 0.0 }
  0xcc   : > { %v474_v44 = vmax.f32 %v402_v40, 0.0  ;;  %v482_v45 = vmax.f32 %v422_v41, 0.0 }
  0xcd   : > { %v521_v46 = vpack.c.bf16 %v489_v42, %v489_v42  ;;  %v529_v47 = vpack.c.bf16 %v497_v43, %v497_v43 }
  0xce   : > { %v506_v48 = vpack.c.bf16 %v474_v44, %v474_v44  ;;  %v514_v49 = vpack.c.bf16 %v482_v45, %v482_v45 }
  0xcf   : > { %554 = vst.msk [vmem:[%s878_s6 + $0x50] sm:$0xf] %vm533_vm2, %v521_v46 }
  0xd0   : > { %562 = vst.msk [vmem:[%s878_s6 + $0x70] sm:$0xf] %vm533_vm2, %v529_v47  ;;  %v441_v50 = vpop.f32.mrf.mxu2  ;;  %v461_v51 = vpop.f32.mrf.mxu3 }
  0xd1   : > { %539 = vst.msk [vmem:[%s878_s6 + $0x14] sm:$0xf] %vm533_vm2, %v506_v48  ;;  %v442_v52 = vadd.f32 %v869_v24, %v441_v50  ;;  %v462_v53 = vadd.f32 %v869_v24, %v461_v51  ;;  %v404_v54 = vpop.f32.mrf.mxu0  ;;  %v424_v55 = vpop.f32.mrf.mxu1 }
  0xd2   : > { %547 = vst.msk [vmem:[%s878_s6 + $0x34] sm:$0xf] %vm533_vm2, %v514_v49  ;;  %v405_v56 = vadd.f32 %v869_v24, %v404_v54  ;;  %v425_v57 = vadd.f32 %v869_v24, %v424_v55 }
  0xd3   : > { %v490_v58 = vmax.f32 %v442_v52, 0.0  ;;  %v498_v59 = vmax.f32 %v462_v53, 0.0 }
  0xd4   : > { %v475_v60 = vmax.f32 %v405_v56, 0.0  ;;  %v483_v61 = vmax.f32 %v425_v57, 0.0 }
  0xd5   : > { %v522_v62 = vpack.c.bf16 %v490_v58, %v490_v58  ;;  %v530_v63 = vpack.c.bf16 %v498_v59, %v498_v59 }
  0xd6   : > { %v507_v0 = vpack.c.bf16 %v475_v60, %v475_v60  ;;  %v515_v1 = vpack.c.bf16 %v483_v61, %v483_v61 }
  0xd7   : > { %555 = vst.msk [vmem:[%s878_s6 + $0x54] sm:$0xf] %vm533_vm2, %v522_v62 }
  0xd8   : > { %563 = vst.msk [vmem:[%s878_s6 + $0x74] sm:$0xf] %vm533_vm2, %v530_v63  ;;  %v444_v2 = vpop.f32.mrf.mxu2  ;;  %v464_v3 = vpop.f32.mrf.mxu3 }
  0xd9   : > { %540 = vst.msk [vmem:[%s878_s6 + $0x18] sm:$0xf] %vm533_vm2, %v507_v0  ;;  %v445_v4 = vadd.f32 %v869_v24, %v444_v2  ;;  %v465_v5 = vadd.f32 %v869_v24, %v464_v3  ;;  %v406_v6 = vpop.f32.mrf.mxu0  ;;  %v426_v7 = vpop.f32.mrf.mxu1 }
  0xda   : > { %548 = vst.msk [vmem:[%s878_s6 + $0x38] sm:$0xf] %vm533_vm2, %v515_v1  ;;  %v407_v8 = vadd.f32 %v869_v24, %v406_v6  ;;  %v427_v9 = vadd.f32 %v869_v24, %v426_v7 }
  0xdb   : > { %v491_v10 = vmax.f32 %v445_v4, 0.0  ;;  %v499_v11 = vmax.f32 %v465_v5, 0.0 }
  0xdc   : > { %v476_v12 = vmax.f32 %v407_v8, 0.0  ;;  %v484_v13 = vmax.f32 %v427_v9, 0.0 }
  0xdd   : > { %v523_v14 = vpack.c.bf16 %v491_v10, %v491_v10  ;;  %v531_v15 = vpack.c.bf16 %v499_v11, %v499_v11 }
  0xde   : > { %v508_v16 = vpack.c.bf16 %v476_v12, %v476_v12  ;;  %v516_v17 = vpack.c.bf16 %v484_v13, %v484_v13 }
  0xdf   : > { %556 = vst.msk [vmem:[%s878_s6 + $0x58] sm:$0xf] %vm533_vm2, %v523_v14 }
  0xe0   : > { %564 = vst.msk [vmem:[%s878_s6 + $0x78] sm:$0xf] %vm533_vm2, %v531_v15  ;;  %v446_v18 = vpop.f32.mrf.mxu2  ;;  %v466_v19 = vpop.f32.mrf.mxu3 }
  0xe1   : > { %541 = vst.msk [vmem:[%s878_s6 + $0x1c] sm:$0xf] %vm533_vm2, %v508_v16  ;;  %v447_v20 = vadd.f32 %v869_v24, %v446_v18  ;;  %v467_v21 = vadd.f32 %v869_v24, %v466_v19 }
  0xe2   : > { %549 = vst.msk [vmem:[%s878_s6 + $0x3c] sm:$0xf] %vm533_vm2, %v516_v17 }
  0xe3   : > { %v492_v22 = vmax.f32 %v447_v20, 0.0  ;;  %v500_v23 = vmax.f32 %v467_v21, 0.0 }
  0xe5   : > { %v524_v25 = vpack.c.bf16 %v492_v22, %v492_v22  ;;  %v532_v26 = vpack.c.bf16 %v500_v23, %v500_v23 }
  0xe7   : > { %557 = vst.msk [vmem:[%s878_s6 + $0x5c] sm:$0xf] %vm533_vm2, %v524_v25 }
  0xe8   : > { %565 = vst.msk [vmem:[%s878_s6 + $0x7c] sm:$0xf] %vm533_vm2, %v532_v26 }
  0xe9 PF: > { %s13_s12 = sadd.s32 1, %s779_s12  }
  0xea   : > { %p10_p4 = scmp.ge.s32.totalorder %s13_s12, 4  }
  0xec   :  { %12 = sbr.rel (!%p10_p4) target bundleno = 1 (0x1), region = 62 }

// kernel: flexible_resunet_forward.18
= control target key start
LH: loop header
LB: loop body
LE: loop exit
PB: predicated region body
PF: predicated region fallthrough
CT: control target
= control target key end

     0   :  { %s1141_s12 = smov 0   ;;  %s1392_s0 = inlined_call_operand.vmem [shape: bf16[512,196], index: 0, kind: input, shape index: {}]   ;;  %s1393_s1 = inlined_call_operand.vmem [shape: bf16[196,8], index: 1, kind: input, shape index: {}]   ;;  %s1394_s2 = inlined_call_operand.vmem [shape: f32[1,8], index: 2, kind: input, shape index: {}]   ;;  %s1395_s3 = inlined_call_operand.vmem [shape: bf16[512,8], index: 3, kind: output, shape index: {}]  }
   0x1 LB: > { %s842_s13 = sadd.s32 4294967295, %s1119_s12   ;;  %p846_p0 = scmp.ge.s32.totalorder %s1119_s12, 1  ;;  %s1119_s12 = sphi %s1141_s12, %s13_s12  }
   0x2   : > { %p139_p1 = scmp.lt.s32.totalorder %s1119_s12, 3 }
   0x4   : > { %p140_p2 = pnand %p846_p0, %p139_p1 }
   0x5   : > { %s847_s18 = sshll.u32 (!%p140_p2), %s842_s13, 5 }
   0x6   : > { %143 = sbr.rel (%p140_p2) target bundleno = 306 (0x132), region = 32  ;;  %p165_p3 = scmp.lt.s32.totalorder (!%p140_p2), %s847_s18, 63 }
   0xb   : > { %v1086_v0 = vld [vmem:[%s1393_s1 + $0x38] sm:$0xff]  ;;  %v234_v1 = vld [vmem:[%s1393_s1 + $0x60] sm:$0x3]  ;;  %vm507_vm0 = vcmask 1041408   ;;  %v1085_v3 = vld [vmem:[%s1393_s1 + $0x30] sm:$0xff]  ;;  %s1397_s18 = smov (!%p165_p3, %s847_s18), 63 }
   0xc   : > { %v432_v2 = vunpack.c.l.b16 %v234_v1  ;;  %511 = vmatpush.bf16.msra.mxu0 %v1086_v0  ;;  %1091 = vmatpush.bf16.msra.mxu2 %v1086_v0  ;;  %v1090_v6 = vld [vmem:[%s1393_s1 + $0x58] sm:$0xff]  ;;  %v1084_v7 = vld [vmem:[%s1393_s1 + $0x28] sm:$0xff]  ;;  %v1089_v8 = vld [vmem:[%s1393_s1 + $0x50] sm:$0xff]  ;;  %s1046_s29 = sshll.u32 %s1397_s18, 3  ;;  %vm458_vm1 = vcmask 556032   ;;  %s851_s22 = sshll.u32 %s1397_s18, 2 }
   0xd   : > { %v1083_v9 = vld [vmem:[%s1393_s1 + $0x20] sm:$0xff]  ;;  %v1088_v10 = vld [vmem:[%s1393_s1 + $0x48] sm:$0xff]  ;;  %v1082_v11 = vld [vmem:[%s1393_s1 + $0x18] sm:$0xff]  ;;  %s1182_s9 = scalar_lea.vmem %s1392_s0, %s1046_s29  ;;  %s1286_s25 = scalar_lea.vmem %s1395_s3, %s851_s22  ;;  %vm753_vm2 = vcmask 60416  }
   0xe   : > { %v445_v4 = vpack.c.b16 %v432_v2, %v432_v2  ;;  %v1087_v12 = vld [vmem:[%s1393_s1 + $0x40] sm:$0xff]  ;;  %v1081_v13 = vld [vmem:[%s1393_s1 + $0x10] sm:$0xff]  ;;  %v856_v15 = vld [vmem:[%s1182_s9 + $0x8] sm:$0xf0] }
   0xf   : > { %v1047_v14 = vld [vmem:[%s1182_s9 + $0x4] sm:$0xf]  ;;  %v1065_v16 = vld [vmem:[%s1182_s9 + $0x94] sm:$0xf]  ;;  %v928_v17 = vld [vmem:[%s1182_s9 + $0x98] sm:$0xf0] }
  0x10   : > { %v509_v5 = vsel %vm507_vm0, %v445_v4, 0  ;;  %512 = vmatpush.bf16.msra.mxu0 %v1085_v3  ;;  %1092 = vmatpush.bf16.msra.mxu2 %v1085_v3  ;;  %v859_v18 = vor.u32 %v1047_v14, %v856_v15  ;;  %v1080_v19 = vld [vmem:[%s1393_s1 + $0x8] sm:$0xff]  ;;  %v931_v20 = vor.u32 %v1065_v16, %v928_v17  ;;  %v1079_v21 = vld [vmem:[%s1393_s1] sm:$0xff]  ;;  %v1049_v28 = vld [vmem:[%s1182_s9 + $0x14] sm:$0xf] }
  0x11   : > { %603 = vmatpush.bf16.msra.mxu1 %v509_v5  ;;  %1099 = vmatpush.bf16.msra.mxu3 %v509_v5  ;;  %v854_v22 = vld [vmem:[%s1182_s9] sm:$0xf]  ;;  %v1048_v23 = vld [vmem:[%s1182_s9 + $0x4] sm:$0xf0]  ;;  %v864_v29 = vld [vmem:[%s1182_s9 + $0x18] sm:$0xf0] }
  0x12   : > { %v918_v24 = vld [vmem:[%s1182_s9 + $0x80] sm:$0xf]  ;;  %v1064_v25 = vld [vmem:[%s1182_s9 + $0x84] sm:$0xf0]  ;;  %v855_v26 = vor.u32 %v1048_v23, %v854_v22  ;;  %v1067_v30 = vld [vmem:[%s1182_s9 + $0xa4] sm:$0xf]  ;;  %v867_v32 = vor.u32 %v1049_v28, %v864_v29 }
  0x13   : > { %v919_v27 = vor.u32 %v1064_v25, %v918_v24  ;;  %v936_v31 = vld [vmem:[%s1182_s9 + $0xa8] sm:$0xf0]  ;;  %v862_v34 = vld [vmem:[%s1182_s9 + $0x10] sm:$0xf]  ;;  %v1050_v35 = vld [vmem:[%s1182_s9 + $0x14] sm:$0xf0] }
  0x14   : > { %513 = vmatpush.bf16.msra.mxu0 %v1084_v7  ;;  %1093 = vmatpush.bf16.msra.mxu2 %v1084_v7  ;;  %v939_v33 = vor.u32 %v1067_v30, %v936_v31  ;;  %v926_v36 = vld [vmem:[%s1182_s9 + $0x90] sm:$0xf]  ;;  %v1066_v37 = vld [vmem:[%s1182_s9 + $0x94] sm:$0xf0]  ;;  %v863_v38 = vor.u32 %v1050_v35, %v862_v34  ;;  %v1051_v40 = vld [vmem:[%s1182_s9 + $0x24] sm:$0xf] }
  0x15   : > { %604 = vmatpush.bf16.msra.mxu1 %v1090_v6  ;;  %1100 = vmatpush.bf16.msra.mxu3 %v1090_v6  ;;  %v927_v39 = vor.u32 %v1066_v37, %v926_v36  ;;  %v872_v41 = vld [vmem:[%s1182_s9 + $0x28] sm:$0xf0]  ;;  %v1069_v42 = vld [vmem:[%s1182_s9 + $0xb4] sm:$0xf]  ;;  %v944_v43 = vld [vmem:[%s1182_s9 + $0xb8] sm:$0xf0] }
  0x16   : > { %v875_v44 = vor.u32 %v1051_v40, %v872_v41  ;;  %v947_v45 = vor.u32 %v1069_v42, %v944_v43  ;;  %v870_v46 = vld [vmem:[%s1182_s9 + $0x20] sm:$0xf]  ;;  %v1052_v47 = vld [vmem:[%s1182_s9 + $0x24] sm:$0xf0]  ;;  %v1053_v52 = vld [vmem:[%s1182_s9 + $0x34] sm:$0xf] }
  0x17   : > { %v934_v48 = vld [vmem:[%s1182_s9 + $0xa0] sm:$0xf]  ;;  %v1068_v49 = vld [vmem:[%s1182_s9 + $0xa4] sm:$0xf0]  ;;  %v871_v50 = vor.u32 %v1052_v47, %v870_v46  ;;  %v880_v53 = vld [vmem:[%s1182_s9 + $0x38] sm:$0xf0] }
  0x18   : > { %514 = vmatpush.bf16.msra.mxu0 %v1083_v9  ;;  %1094 = vmatpush.bf16.msra.mxu2 %v1083_v9  ;;  %v935_v51 = vor.u32 %v1068_v49, %v934_v48  ;;  %v1071_v54 = vld [vmem:[%s1182_s9 + $0xc4] sm:$0xf]  ;;  %v952_v55 = vld [vmem:[%s1182_s9 + $0xc8] sm:$0xf0]  ;;  %v883_v56 = vor.u32 %v1053_v52, %v880_v53  ;;  %v878_v58 = vld [vmem:[%s1182_s9 + $0x30] sm:$0xf] }
  0x19   : > { %605 = vmatpush.bf16.msra.mxu1 %v1089_v8  ;;  %1101 = vmatpush.bf16.msra.mxu3 %v1089_v8  ;;  %v955_v57 = vor.u32 %v1071_v54, %v952_v55  ;;  %v1054_v59 = vld [vmem:[%s1182_s9 + $0x34] sm:$0xf0]  ;;  %v942_v60 = vld [vmem:[%s1182_s9 + $0xb0] sm:$0xf]  ;;  %v1055_v0 = vld [vmem:[%s1182_s9 + $0x44] sm:$0xf] }
  0x1a   : > { %v1070_v61 = vld [vmem:[%s1182_s9 + $0xb4] sm:$0xf0]  ;;  %v879_v62 = vor.u32 %v1054_v59, %v878_v58  ;;  %v888_v1 = vld [vmem:[%s1182_s9 + $0x48] sm:$0xf0]  ;;  %v1073_v2 = vld [vmem:[%s1182_s9 + $0xd4] sm:$0xf] }
  0x1b   : > { %v943_v63 = vor.u32 %v1070_v61, %v942_v60  ;;  %v960_v3 = vld [vmem:[%s1182_s9 + $0xd8] sm:$0xf0]  ;;  %v891_v4 = vor.u32 %v1055_v0, %v888_v1  ;;  %v886_v6 = vld [vmem:[%s1182_s9 + $0x40] sm:$0xf]  ;;  %v1056_v7 = vld [vmem:[%s1182_s9 + $0x44] sm:$0xf0] }
  0x1c   : > { %515 = vmatpush.bf16.msra.mxu0 %v1082_v11  ;;  %1095 = vmatpush.bf16.msra.mxu2 %v1082_v11  ;;  %v963_v5 = vor.u32 %v1073_v2, %v960_v3  ;;  %v950_v8 = vld [vmem:[%s1182_s9 + $0xc0] sm:$0xf]  ;;  %v1072_v9 = vld [vmem:[%s1182_s9 + $0xc4] sm:$0xf0]  ;;  %v1075_v14 = vld [vmem:[%s1182_s9 + $0xe4] sm:$0xf] }
  0x1d   : > { %606 = vmatpush.bf16.msra.mxu1 %v1088_v10  ;;  %1102 = vmatpush.bf16.msra.mxu3 %v1088_v10  ;;  %v887_v10 = vor.u32 %v1056_v7, %v886_v6  ;;  %v951_v11 = vor.u32 %v1072_v9, %v950_v8  ;;  %v968_v15 = vld [vmem:[%s1182_s9 + $0xe8] sm:$0xf0]  ;;  %v1059_v24 = vld [vmem:[%s1182_s9 + $0x64] sm:$0xf]  ;;  %v902_v30 = vld [vmem:[%s1182_s9 + $0x60] sm:$0xf] }
  0x1e   : > { %v971_v17 = vor.u32 %v1075_v14, %v968_v15  ;;  %v904_v25 = vld [vmem:[%s1182_s9 + $0x68] sm:$0xf0]  ;;  %v1060_v31 = vld [vmem:[%s1182_s9 + $0x64] sm:$0xf0]  ;;  %v1061_v36 = vld [vmem:[%s1182_s9 + $0x74] sm:$0xf] }
  0x1f   : > { %v907_v28 = vor.u32 %v1059_v24, %v904_v25  ;;  %v903_v34 = vor.u32 %v1060_v31, %v902_v30  ;;  %v912_v37 = vld [vmem:[%s1182_s9 + $0x78] sm:$0xf0]  ;;  %v1062_v40 = vld [vmem:[%s1182_s9 + $0x74] sm:$0xf0]  ;;  %v974_v41 = vld [vmem:[%s1182_s9 + $0xf0] sm:$0xf] }
  0x20   : > { %516 = vmatpush.bf16.msra.mxu0 %v1081_v13  ;;  %1096 = vmatpush.bf16.msra.mxu2 %v1081_v13  ;;  %v896_v13 = vld [vmem:[%s1182_s9 + $0x58] sm:$0xf0]  ;;  %v1078_v42 = vld [vmem:[%s1182_s9 + $0xf4] sm:$0xf0]  ;;  %v920_v46 = vld [vmem:[%s1182_s9 + $0x88] sm:$0xf0] }
  0x21   : > { %607 = vmatpush.bf16.msra.mxu1 %v1087_v12  ;;  %1103 = vmatpush.bf16.msra.mxu3 %v1087_v12  ;;  %v1057_v12 = vld [vmem:[%s1182_s9 + $0x54] sm:$0xf]  ;;  %v1279_v49 = vld [vmem:[%s1394_s2] ss:$0 sm:$0xff] }
  0x22   : > { %v899_v16 = vor.u32 %v1057_v12, %v896_v13 }
  0x24   : > { %1028 = vmatmul.msk.bf16.vlgmr.msra.gmra.mxu1 %vm458_vm1, %v859_v18  ;;  %517 = vmatpush.bf16.msra.mxu0 %v1080_v19  ;;  %v894_v18 = vld [vmem:[%s1182_s9 + $0x50] sm:$0xf] }
  0x25   : > { %1037 = vmatmul.msk.bf16.vlgmr.msra.gmra.mxu3 %vm458_vm1, %v931_v20  ;;  %1097 = vmatpush.bf16.msra.mxu2 %v1080_v19  ;;  %v1058_v19 = vld [vmem:[%s1182_s9 + $0x54] sm:$0xf0]  ;;  %v958_v20 = vld [vmem:[%s1182_s9 + $0xd0] sm:$0xf] }
  0x26   : > { %v895_v22 = vor.u32 %v1058_v19, %v894_v18 }
  0x28   : > { %518 = vmatpush.bf16.msra.mxu0 %v1079_v21 }
  0x29   : > { %1098 = vmatpush.bf16.msra.mxu2 %v1079_v21  ;;  %v1074_v21 = vld [vmem:[%s1182_s9 + $0xd4] sm:$0xf0] }
  0x2a   : > { %v959_v23 = vor.u32 %v1074_v21, %v958_v20 }
  0x2b   : > { %519 = vmatmul.bf16.vlgmr.msra.gmra.mxu0 %v855_v26  ;;  %v1077_v26 = vld [vmem:[%s1182_s9 + $0xf4] sm:$0xf] }
  0x2c   : > { %559 = vmatmul.bf16.vlgmr.msra.gmra.mxu2 %v919_v27  ;;  %v976_v27 = vld [vmem:[%s1182_s9 + $0xf8] sm:$0xf0] }
  0x2d   : > { %v979_v29 = vor.u32 %v1077_v26, %v976_v27 }
  0x34   : > { %1029 = vmatmul.msk.bf16.gmra.mxu1 %vm458_vm1, %v867_v32  ;;  %v966_v32 = vld [vmem:[%s1182_s9 + $0xe0] sm:$0xf] }
  0x35   : > { %1038 = vmatmul.msk.bf16.gmra.mxu3 %vm458_vm1, %v939_v33  ;;  %v1076_v33 = vld [vmem:[%s1182_s9 + $0xe4] sm:$0xf0] }
  0x36   : > { %v967_v35 = vor.u32 %v1076_v33, %v966_v32 }
  0x3b   : > { %524 = vmatmul.bf16.gmra.mxu0 %v863_v38  ;;  %v915_v38 = vor.u32 %v1061_v36, %v912_v37 }
  0x3c   : > { %564 = vmatmul.bf16.gmra.mxu2 %v927_v39  ;;  %v910_v39 = vld [vmem:[%s1182_s9 + $0x70] sm:$0xf] }
  0x3d   : > { %v911_v43 = vor.u32 %v1062_v40, %v910_v39 }
  0x44   : > { %1030 = vmatmul.msk.bf16.gmra.mxu1 %vm458_vm1, %v875_v44  ;;  %v975_v44 = vor.u32 %v1078_v42, %v974_v41 }
  0x45   : > { %1039 = vmatmul.msk.bf16.gmra.mxu3 %vm458_vm1, %v947_v45  ;;  %v1063_v45 = vld [vmem:[%s1182_s9 + $0x84] sm:$0xf] }
  0x46   : > { %v923_v47 = vor.u32 %v1063_v45, %v920_v46 }
  0x4b   : > { %529 = vmatmul.bf16.gmra.mxu0 %v871_v50 }
  0x4c   : > { %569 = vmatmul.bf16.gmra.mxu2 %v935_v51 }
  0x54   : > { %1031 = vmatmul.msk.bf16.gmra.mxu1 %vm458_vm1, %v883_v56 }
  0x55   : > { %1040 = vmatmul.msk.bf16.gmra.mxu3 %vm458_vm1, %v955_v57 }
  0x5b   : > { %534 = vmatmul.bf16.gmra.mxu0 %v879_v62 }
  0x5c   : > { %574 = vmatmul.bf16.gmra.mxu2 %v943_v63 }
  0x64   : > { %1032 = vmatmul.msk.bf16.gmra.mxu1 %vm458_vm1, %v891_v4 }
  0x65   : > { %1041 = vmatmul.msk.bf16.gmra.mxu3 %vm458_vm1, %v963_v5 }
  0x6b   : > { %539 = vmatmul.bf16.gmra.mxu0 %v887_v10 }
  0x6c   : > { %579 = vmatmul.bf16.gmra.mxu2 %v951_v11 }
  0x74   : > { %1033 = vmatmul.msk.bf16.gmra.mxu1 %vm458_vm1, %v899_v16 }
  0x75   : > { %1042 = vmatmul.msk.bf16.gmra.mxu3 %vm458_vm1, %v971_v17 }
  0x7b   : > { %544 = vmatmul.bf16.gmra.mxu0 %v895_v22 }
  0x7c   : > { %584 = vmatmul.bf16.gmra.mxu2 %v959_v23 }
  0x84   : > { %1034 = vmatmul.msk.bf16.gmra.mxu1 %vm458_vm1, %v907_v28 }
  0x85   : > { %1043 = vmatmul.msk.bf16.gmra.mxu3 %vm458_vm1, %v979_v29 }
  0x8b   : > { %549 = vmatmul.bf16.gmra.mxu0 %v903_v34 }
  0x8c   : > { %589 = vmatmul.bf16.gmra.mxu2 %v967_v35 }
  0x94   : > { %1035 = vmatmul.msk.bf16.gmra.mxu1 %vm458_vm1, %v915_v38 }
  0x9b   : > { %554 = vmatmul.bf16.gmra.mxu0 %v911_v43 }
  0x9c   : > { %594 = vmatmul.bf16.gmra.mxu2 %v975_v44 }
  0xa1   : > { %v609_v48 = vpop.f32.mrf.mxu1 }
  0xa4   : > { %1036 = vmatmul.msk.bf16.gmra.mxu1 %vm458_vm1, %v923_v47 }
  0xa8   : > { %v654_v50 = vpop.f32.mrf.mxu3  ;;  %v520_v52 = vpop.f32.mrf.mxu0 }
  0xa9   : > { %v611_v51 = vpop.f32.mrf.mxu1  ;;  %v521_v53 = vadd.f32 %v1279_v49, %v520_v52 }
  0xab   : > { %v610_v54 = vadd.f32 %v609_v48, %v521_v53 }
  0xad   : > { %v689_v55 = vmax.f32 %v610_v54, 0.0 }
  0xaf   : > { %v721_v56 = vpack.c.bf16 %v689_v55, %v689_v55  ;;  %v1288_v57 = vpop.f32.mrf.mxu2 }
  0xb0   : > { %v522_v59 = vpop.f32.mrf.mxu0  ;;  %v656_v61 = vpop.f32.mrf.mxu3 }
  0xb1   : > { %v614_v58 = vpop.f32.mrf.mxu1  ;;  %754 = vst.msk [vmem:[%s1286_s25] sm:$0xf] %vm753_vm2, %v721_v56  ;;  %v523_v60 = vadd.f32 %v1279_v49, %v522_v59 }
  0xb3   : > { %v612_v62 = vadd.f32 %v611_v51, %v523_v60 }
  0xb5   : > { %v690_v63 = vmax.f32 %v612_v62, 0.0 }
  0xb7   : > { %v722_v0 = vpack.c.bf16 %v690_v63, %v690_v63  ;;  %v1293_v1 = vpop.f32.mrf.mxu2 }
  0xb8   : > { %v525_v3 = vpop.f32.mrf.mxu0  ;;  %v659_v6 = vpop.f32.mrf.mxu3 }
  0xb9   : > { %v616_v2 = vpop.f32.mrf.mxu1  ;;  %755 = vst.msk [vmem:[%s1286_s25 + $0x4] sm:$0xf] %vm753_vm2, %v722_v0  ;;  %v526_v4 = vadd.f32 %v1279_v49, %v525_v3 }
  0xbb   : > { %v615_v5 = vadd.f32 %v614_v58, %v526_v4 }
  0xbd   : > { %v691_v7 = vmax.f32 %v615_v5, 0.0 }
  0xbf   : > { %v723_v8 = vpack.c.bf16 %v691_v7, %v691_v7  ;;  %v565_v9 = vpop.f32.mrf.mxu2 }
  0xc0   : > { %v566_v10 = vadd.f32 %v1279_v49, %v565_v9  ;;  %v527_v12 = vpop.f32.mrf.mxu0  ;;  %v661_v18 = vpop.f32.mrf.mxu3 }
  0xc1   : > { %v619_v11 = vpop.f32.mrf.mxu1  ;;  %756 = vst.msk [vmem:[%s1286_s25 + $0x8] sm:$0xf] %vm753_vm2, %v723_v8  ;;  %v528_v13 = vadd.f32 %v1279_v49, %v527_v12 }
  0xc2   : > { %v655_v14 = vadd.f32 %v654_v50, %v566_v10 }
  0xc3   : > { %v617_v15 = vadd.f32 %v616_v2, %v528_v13 }
  0xc4   : > { %v707_v16 = vmax.f32 %v655_v14, 0.0 }
  0xc5   : > { %v692_v17 = vmax.f32 %v617_v15, 0.0 }
  0xc6   : > { %v739_v19 = vpack.c.bf16 %v707_v16, %v707_v16 }
  0xc7   : > { %v724_v20 = vpack.c.bf16 %v692_v17, %v692_v17  ;;  %v567_v21 = vpop.f32.mrf.mxu2 }
  0xc8   : > { %772 = vst.msk [vmem:[%s1286_s25 + $0x48] sm:$0xf] %vm753_vm2, %v739_v19  ;;  %v568_v22 = vadd.f32 %v1279_v49, %v567_v21  ;;  %v530_v24 = vpop.f32.mrf.mxu0  ;;  %v664_v33 = vpop.f32.mrf.mxu3 }
  0xc9   : > { %v621_v23 = vpop.f32.mrf.mxu1  ;;  %757 = vst.msk [vmem:[%s1286_s25 + $0xc] sm:$0xf] %vm753_vm2, %v724_v20  ;;  %v531_v25 = vadd.f32 %v1279_v49, %v530_v24 }
  0xca   : > { %v657_v26 = vadd.f32 %v656_v61, %v568_v22 }
  0xcb   : > { %v620_v27 = vadd.f32 %v619_v11, %v531_v25 }
  0xcc   : > { %v708_v28 = vmax.f32 %v657_v26, 0.0 }
  0xcd   : > { %v693_v29 = vmax.f32 %v620_v27, 0.0 }
  0xce   : > { %v740_v30 = vpack.c.bf16 %v708_v28, %v708_v28 }
  0xcf   : > { %v725_v31 = vpack.c.bf16 %v693_v29, %v693_v29  ;;  %v570_v32 = vpop.f32.mrf.mxu2 }
  0xd0   : > { %773 = vst.msk [vmem:[%s1286_s25 + $0x4c] sm:$0xf] %vm753_vm2, %v740_v30  ;;  %v571_v34 = vadd.f32 %v1279_v49, %v570_v32  ;;  %v532_v36 = vpop.f32.mrf.mxu0  ;;  %v666_v50 = vpop.f32.mrf.mxu3 }
  0xd1   : > { %v624_v35 = vpop.f32.mrf.mxu1  ;;  %758 = vst.msk [vmem:[%s1286_s25 + $0x10] sm:$0xf] %vm753_vm2, %v725_v31  ;;  %v533_v37 = vadd.f32 %v1279_v49, %v532_v36 }
  0xd2   : > { %v660_v38 = vadd.f32 %v659_v6, %v571_v34 }
  0xd3   : > { %v622_v39 = vadd.f32 %v621_v23, %v533_v37 }
  0xd4   : > { %v709_v40 = vmax.f32 %v660_v38, 0.0 }
  0xd5   : > { %v694_v41 = vmax.f32 %v622_v39, 0.0 }
  0xd6   : > { %v741_v42 = vpack.c.bf16 %v709_v40, %v709_v40 }
  0xd7   : > { %v726_v43 = vpack.c.bf16 %v694_v41, %v694_v41  ;;  %v572_v44 = vpop.f32.mrf.mxu2 }
  0xd8   : > { %774 = vst.msk [vmem:[%s1286_s25 + $0x50] sm:$0xf] %vm753_vm2, %v741_v42  ;;  %v573_v45 = vadd.f32 %v1279_v49, %v572_v44  ;;  %v535_v47 = vpop.f32.mrf.mxu0  ;;  %v669_v2 = vpop.f32.mrf.mxu3 }
  0xd9   : > { %v626_v46 = vpop.f32.mrf.mxu1  ;;  %759 = vst.msk [vmem:[%s1286_s25 + $0x14] sm:$0xf] %vm753_vm2, %v726_v43  ;;  %v536_v48 = vadd.f32 %v1279_v49, %v535_v47 }
  0xda   : > { %v662_v51 = vadd.f32 %v661_v18, %v573_v45 }
  0xdb   : > { %v625_v52 = vadd.f32 %v624_v35, %v536_v48 }
  0xdc   : > { %v710_v53 = vmax.f32 %v662_v51, 0.0 }
  0xdd   : > { %v695_v54 = vmax.f32 %v625_v52, 0.0 }
  0xde   : > { %v742_v55 = vpack.c.bf16 %v710_v53, %v710_v53 }
  0xdf   : > { %v727_v56 = vpack.c.bf16 %v695_v54, %v695_v54  ;;  %v575_v58 = vpop.f32.mrf.mxu2 }
  0xe0   : > { %775 = vst.msk [vmem:[%s1286_s25 + $0x54] sm:$0xf] %vm753_vm2, %v742_v55  ;;  %v576_v59 = vadd.f32 %v1279_v49, %v575_v58  ;;  %v537_v61 = vpop.f32.mrf.mxu0  ;;  %v671_v16 = vpop.f32.mrf.mxu3 }
  0xe1   : > { %v629_v60 = vpop.f32.mrf.mxu1  ;;  %760 = vst.msk [vmem:[%s1286_s25 + $0x18] sm:$0xf] %vm753_vm2, %v727_v56  ;;  %v538_v62 = vadd.f32 %v1279_v49, %v537_v61 }
  0xe2   : > { %v665_v63 = vadd.f32 %v664_v33, %v576_v59 }
  0xe3   : > { %v627_v0 = vadd.f32 %v626_v46, %v538_v62 }
  0xe4   : > { %v711_v3 = vmax.f32 %v665_v63, 0.0 }
  0xe5   : > { %v696_v4 = vmax.f32 %v627_v0, 0.0 }
  0xe6   : > { %v743_v5 = vpack.c.bf16 %v711_v3, %v711_v3 }
  0xe7   : > { %v728_v6 = vpack.c.bf16 %v696_v4, %v696_v4  ;;  %v577_v7 = vpop.f32.mrf.mxu2 }
  0xe8   : > { %776 = vst.msk [vmem:[%s1286_s25 + $0x58] sm:$0xf] %vm753_vm2, %v743_v5  ;;  %v578_v8 = vadd.f32 %v1279_v49, %v577_v7  ;;  %v540_v10 = vpop.f32.mrf.mxu0  ;;  %v674_v31 = vpop.f32.mrf.mxu3 }
  0xe9   : > { %v631_v9 = vpop.f32.mrf.mxu1  ;;  %761 = vst.msk [vmem:[%s1286_s25 + $0x1c] sm:$0xf] %vm753_vm2, %v728_v6  ;;  %v541_v11 = vadd.f32 %v1279_v49, %v540_v10 }
  0xea   : > { %v667_v12 = vadd.f32 %v666_v50, %v578_v8 }
  0xeb   : > { %v630_v13 = vadd.f32 %v629_v60, %v541_v11 }
  0xec   : > { %v712_v14 = vmax.f32 %v667_v12, 0.0 }
  0xed   : > { %v697_v15 = vmax.f32 %v630_v13, 0.0 }
  0xee   : > { %v744_v17 = vpack.c.bf16 %v712_v14, %v712_v14 }
  0xef   : > { %v729_v18 = vpack.c.bf16 %v697_v15, %v697_v15  ;;  %v580_v19 = vpop.f32.mrf.mxu2 }
  0xf0   : > { %777 = vst.msk [vmem:[%s1286_s25 + $0x5c] sm:$0xf] %vm753_vm2, %v744_v17  ;;  %v581_v20 = vadd.f32 %v1279_v49, %v580_v19  ;;  %v542_v22 = vpop.f32.mrf.mxu0  ;;  %v676_v47 = vpop.f32.mrf.mxu3 }
  0xf1   : > { %v634_v21 = vpop.f32.mrf.mxu1  ;;  %762 = vst.msk [vmem:[%s1286_s25 + $0x20] sm:$0xf] %vm753_vm2, %v729_v18  ;;  %v543_v23 = vadd.f32 %v1279_v49, %v542_v22 }
  0xf2   : > { %v670_v24 = vadd.f32 %v669_v2, %v581_v20 }
  0xf3   : > { %v632_v25 = vadd.f32 %v631_v9, %v543_v23 }
  0xf4   : > { %v713_v26 = vmax.f32 %v670_v24, 0.0 }
  0xf5   : > { %v698_v27 = vmax.f32 %v632_v25, 0.0 }
  0xf6   : > { %v745_v28 = vpack.c.bf16 %v713_v26, %v713_v26 }
  0xf7   : > { %v730_v29 = vpack.c.bf16 %v698_v27, %v698_v27  ;;  %v582_v30 = vpop.f32.mrf.mxu2  ;;  %v561_v27 = vadd.f32 %v1279_v49, %v1288_v57 }
  0xf8   : > { %778 = vst.msk [vmem:[%s1286_s25 + $0x60] sm:$0xf] %vm753_vm2, %v745_v28  ;;  %v583_v32 = vadd.f32 %v1279_v49, %v582_v30  ;;  %v545_v34 = vpop.f32.mrf.mxu0  ;;  %v679_v63 = vpop.f32.mrf.mxu3 }
  0xf9   : > { %v636_v33 = vpop.f32.mrf.mxu1  ;;  %763 = vst.msk [vmem:[%s1286_s25 + $0x24] sm:$0xf] %vm753_vm2, %v730_v29  ;;  %v546_v35 = vadd.f32 %v1279_v49, %v545_v34 }
  0xfa   : > { %v672_v36 = vadd.f32 %v671_v16, %v583_v32 }
  0xfb   : > { %v635_v37 = vadd.f32 %v634_v21, %v546_v35 }
  0xfc   : > { %v714_v38 = vmax.f32 %v672_v36, 0.0 }
  0xfd   : > { %v699_v39 = vmax.f32 %v635_v37, 0.0 }
  0xfe   : > { %v746_v40 = vpack.c.bf16 %v714_v38, %v714_v38 }
  0xff   : > { %v731_v41 = vpack.c.bf16 %v699_v39, %v699_v39  ;;  %v585_v42 = vpop.f32.mrf.mxu2 }
 0x100   : > { %779 = vst.msk [vmem:[%s1286_s25 + $0x64] sm:$0xf] %vm753_vm2, %v746_v40  ;;  %v586_v43 = vadd.f32 %v1279_v49, %v585_v42  ;;  %v547_v45 = vpop.f32.mrf.mxu0  ;;  %v681_v14 = vpop.f32.mrf.mxu3  ;;  %v563_v42 = vadd.f32 %v1279_v49, %v1293_v1 }
 0x101   : > { %v639_v44 = vpop.f32.mrf.mxu1  ;;  %764 = vst.msk [vmem:[%s1286_s25 + $0x28] sm:$0xf] %vm753_vm2, %v731_v41  ;;  %v548_v46 = vadd.f32 %v1279_v49, %v547_v45 }
 0x102   : > { %v675_v48 = vadd.f32 %v674_v31, %v586_v43 }
 0x103   : > { %v637_v50 = vadd.f32 %v636_v33, %v548_v46 }
 0x104   : > { %v715_v51 = vmax.f32 %v675_v48, 0.0 }
 0x105   : > { %v700_v52 = vmax.f32 %v637_v50, 0.0 }
 0x106   : > { %v747_v53 = vpack.c.bf16 %v715_v51, %v715_v51 }
 0x107   : > { %v732_v54 = vpack.c.bf16 %v700_v52, %v700_v52  ;;  %v587_v55 = vpop.f32.mrf.mxu2 }
 0x108   : > { %780 = vst.msk [vmem:[%s1286_s25 + $0x68] sm:$0xf] %vm753_vm2, %v747_v53  ;;  %v588_v56 = vadd.f32 %v1279_v49, %v587_v55  ;;  %v550_v59 = vpop.f32.mrf.mxu0  ;;  %v684_v29 = vpop.f32.mrf.mxu3 }
 0x109   : > { %v641_v58 = vpop.f32.mrf.mxu1  ;;  %765 = vst.msk [vmem:[%s1286_s25 + $0x2c] sm:$0xf] %vm753_vm2, %v732_v54  ;;  %v551_v60 = vadd.f32 %v1279_v49, %v550_v59 }
 0x10a   : > { %v677_v61 = vadd.f32 %v676_v47, %v588_v56 }
 0x10b   : > { %v640_v62 = vadd.f32 %v639_v44, %v551_v60 }
 0x10c   : > { %v716_v0 = vmax.f32 %v677_v61, 0.0 }
 0x10d   : > { %v701_v2 = vmax.f32 %v640_v62, 0.0 }
 0x10e   : > { %v748_v3 = vpack.c.bf16 %v716_v0, %v716_v0 }
 0x10f   : > { %v733_v4 = vpack.c.bf16 %v701_v2, %v701_v2  ;;  %v590_v5 = vpop.f32.mrf.mxu2 }
 0x110   : > { %781 = vst.msk [vmem:[%s1286_s25 + $0x6c] sm:$0xf] %vm753_vm2, %v748_v3  ;;  %v591_v6 = vadd.f32 %v1279_v49, %v590_v5  ;;  %v552_v8 = vpop.f32.mrf.mxu0  ;;  %v686_v47 = vpop.f32.mrf.mxu3 }
 0x111   : > { %v644_v7 = vpop.f32.mrf.mxu1  ;;  %766 = vst.msk [vmem:[%s1286_s25 + $0x30] sm:$0xf] %vm753_vm2, %v733_v4  ;;  %v553_v9 = vadd.f32 %v1279_v49, %v552_v8 }
 0x112   : > { %v680_v10 = vadd.f32 %v679_v63, %v591_v6 }
 0x113   : > { %v642_v11 = vadd.f32 %v641_v58, %v553_v9 }
 0x114   : > { %v717_v12 = vmax.f32 %v680_v10, 0.0 }
 0x115   : > { %v702_v13 = vmax.f32 %v642_v11, 0.0 }
 0x116   : > { %v749_v15 = vpack.c.bf16 %v717_v12, %v717_v12 }
 0x117   : > { %v734_v16 = vpack.c.bf16 %v702_v13, %v702_v13  ;;  %v592_v17 = vpop.f32.mrf.mxu2 }
 0x118   : > { %782 = vst.msk [vmem:[%s1286_s25 + $0x70] sm:$0xf] %vm753_vm2, %v749_v15  ;;  %v593_v18 = vadd.f32 %v1279_v49, %v592_v17  ;;  %v555_v20 = vpop.f32.mrf.mxu0 }
 0x119   : > { %v646_v19 = vpop.f32.mrf.mxu1  ;;  %767 = vst.msk [vmem:[%s1286_s25 + $0x34] sm:$0xf] %vm753_vm2, %v734_v16  ;;  %v556_v21 = vadd.f32 %v1279_v49, %v555_v20 }
 0x11a   : > { %v682_v22 = vadd.f32 %v681_v14, %v593_v18 }
 0x11b   : > { %v645_v23 = vadd.f32 %v644_v7, %v556_v21 }
 0x11c   : > { %v718_v24 = vmax.f32 %v682_v22, 0.0 }
 0x11d   : > { %v703_v25 = vmax.f32 %v645_v23, 0.0 }
 0x11e   : > { %v750_v26 = vpack.c.bf16 %v718_v24, %v718_v24 }
 0x11f   : > { %v735_v28 = vpack.c.bf16 %v703_v25, %v703_v25  ;;  %v595_v30 = vpop.f32.mrf.mxu2 }
 0x120   : > { %783 = vst.msk [vmem:[%s1286_s25 + $0x74] sm:$0xf] %vm753_vm2, %v750_v26  ;;  %v596_v31 = vadd.f32 %v1279_v49, %v595_v30  ;;  %v557_v33 = vpop.f32.mrf.mxu0 }
 0x121   : > { %v649_v32 = vpop.f32.mrf.mxu1  ;;  %768 = vst.msk [vmem:[%s1286_s25 + $0x38] sm:$0xf] %vm753_vm2, %v735_v28  ;;  %v558_v35 = vadd.f32 %v1279_v49, %v557_v33 }
 0x122   : > { %v650_v34 = vadd.f32 %v649_v32, %v561_v27  ;;  %v685_v36 = vadd.f32 %v684_v29, %v596_v31 }
 0x123   : > { %v647_v57 = vadd.f32 %v646_v19, %v558_v35 }
 0x124   : > { %v705_v37 = vmax.f32 %v650_v34, 0.0  ;;  %v719_v38 = vmax.f32 %v685_v36, 0.0 }
 0x125   : > { %v704_v40 = vmax.f32 %v647_v57, 0.0 }
 0x126   : > { %v737_v39 = vpack.c.bf16 %v705_v37, %v705_v37  ;;  %v751_v41 = vpack.c.bf16 %v719_v38, %v719_v38 }
 0x127   : > { %v736_v43 = vpack.c.bf16 %v704_v40, %v704_v40  ;;  %v597_v44 = vpop.f32.mrf.mxu2 }
 0x128   : > { %770 = vst.msk [vmem:[%s1286_s25 + $0x40] sm:$0xf] %vm753_vm2, %v737_v39  ;;  %v598_v45 = vadd.f32 %v1279_v49, %v597_v44 }
 0x129   : > { %784 = vst.msk [vmem:[%s1286_s25 + $0x78] sm:$0xf] %vm753_vm2, %v751_v41  ;;  %v651_v46 = vpop.f32.mrf.mxu1 }
 0x12a   : > { %769 = vst.msk [vmem:[%s1286_s25 + $0x3c] sm:$0xf] %vm753_vm2, %v736_v43  ;;  %v652_v48 = vadd.f32 %v651_v46, %v563_v42  ;;  %v687_v50 = vadd.f32 %v686_v47, %v598_v45 }
 0x12c   : > { %v706_v51 = vmax.f32 %v652_v48, 0.0  ;;  %v720_v52 = vmax.f32 %v687_v50, 0.0 }
 0x12e   : > { %v738_v53 = vpack.c.bf16 %v706_v51, %v706_v51  ;;  %v752_v54 = vpack.c.bf16 %v720_v52, %v720_v52 }
 0x130   : > { %771 = vst.msk [vmem:[%s1286_s25 + $0x44] sm:$0xf] %vm753_vm2, %v738_v53 }
 0x131   : > { %785 = vst.msk [vmem:[%s1286_s25 + $0x7c] sm:$0xf] %vm753_vm2, %v752_v54 }
 0x132 PF: > { %s13_s12 = sadd.s32 1, %s1119_s12  }
 0x133   : > { %p10_p4 = scmp.ge.s32.totalorder %s13_s12, 4  }
 0x135   :  { %12 = sbr.rel (!%p10_p4) target bundleno = 1 (0x1), region = 62 }

// kernel: flexible_resunet_forward.20
= control target key start
LH: loop header
LB: loop body
LE: loop exit
PB: predicated region body
PF: predicated region fallthrough
CT: control target
= control target key end

     0   :  { %s1044_s15 = smov 0   ;;  %s1239_s0 = inlined_call_operand.vmem [shape: bf16[512,72], index: 0, kind: input, shape index: {}]   ;;  %s1240_s1 = inlined_call_operand.vmem [shape: bf16[72,8], index: 1, kind: input, shape index: {}]   ;;  %s1241_s2 = inlined_call_operand.vmem [shape: f32[1,8], index: 2, kind: input, shape index: {}]   ;;  %s1242_s3 = inlined_call_operand.vmem [shape: bf16[512,8], index: 3, kind: input, shape index: {}]   ;;  %s1243_s4 = inlined_call_operand.vmem [shape: bf16[512,8], index: 4, kind: output, shape index: {}]  }
   0x1 LB: > { %s779_s16 = sadd.s32 4294967295, %s1017_s15   ;;  %p783_p0 = scmp.ge.s32.totalorder %s1017_s15, 1  ;;  %s1017_s15 = sphi %s1044_s15, %s14_s15  }
   0x2   : > { %p174_p1 = scmp.lt.s32.totalorder %s1017_s15, 3 }
   0x4   : > { %p175_p2 = pnand %p783_p0, %p174_p1 }
   0x5   : > { %s784_s19 = sshll.u32 (!%p175_p2), %s779_s16, 5 }
   0x6   : > { %178 = sbr.rel (%p175_p2) target bundleno = 235 (0xeb), region = 36  ;;  %p206_p3 = scmp.lt.s32.totalorder (!%p175_p2), %s784_s19, 63 }
   0xb   : > { %v264_v0 = vld [vmem:[%s1240_s1 + $0x20] sm:$0xf]  ;;  %vm425_vm0 = vcmask 1043456   ;;  %v907_v4 = vld [vmem:[%s1240_s1 + $0x18] sm:$0xff]  ;;  %v906_v5 = vld [vmem:[%s1240_s1 + $0x10] sm:$0xff]  ;;  %s1245_s19 = smov (!%p206_p3, %s784_s19), 63 }
   0xc   : > { %v366_v1 = vunpack.c.l.b16 %v264_v0  ;;  %v905_v6 = vld [vmem:[%s1240_s1 + $0x8] sm:$0xff]  ;;  %s1064_s26 = sshll.u32 %s1245_s19, 2  ;;  %v904_v7 = vld [vmem:[%s1240_s1] sm:$0xff]  ;;  %vm376_vm1 = vcmask 588800   ;;  %vm678_vm2 = vcmask 60416  }
   0xd   : > { %s1073_s5 = scalar_lea.vmem %s1239_s0, %s1064_s26  ;;  %s1111_s8 = scalar_lea.vmem %s1242_s3, %s1064_s26  ;;  %v1118_v26 = vld [vmem:[%s1241_s2] ss:$0 sm:$0xff] }
   0xe   : > { %v371_v2 = vpack.c.b16 %v366_v1, %v366_v1  ;;  %v888_v8 = vld [vmem:[%s1073_s5] sm:$0xff]  ;;  %v889_v12 = vld [vmem:[%s1073_s5 + $0x8] sm:$0xff]  ;;  %v890_v16 = vld [vmem:[%s1073_s5 + $0x10] sm:$0xff]  ;;  %s1128_s13 = scalar_lea.vmem %s1243_s4, %s1064_s26 }
   0xf   : > { %v892_v9 = vld [vmem:[%s1073_s5 + $0x20] sm:$0xff]  ;;  %v893_v13 = vld [vmem:[%s1073_s5 + $0x28] sm:$0xff]  ;;  %v894_v17 = vld [vmem:[%s1073_s5 + $0x30] sm:$0xff] }
  0x10   : > { %v427_v3 = vsel %vm425_vm0, %v371_v2, 0  ;;  %v896_v10 = vld [vmem:[%s1073_s5 + $0x40] sm:$0xff]  ;;  %v897_v14 = vld [vmem:[%s1073_s5 + $0x48] sm:$0xff]  ;;  %v898_v18 = vld [vmem:[%s1073_s5 + $0x50] sm:$0xff] }
  0x11   : > { %432 = vmatpush.bf16.msra.mxu0 %v427_v3  ;;  %987 = vmatpush.bf16.msra.mxu1 %v427_v3  ;;  %v900_v11 = vld [vmem:[%s1073_s5 + $0x60] sm:$0xff]  ;;  %v901_v15 = vld [vmem:[%s1073_s5 + $0x68] sm:$0xff]  ;;  %v902_v19 = vld [vmem:[%s1073_s5 + $0x70] sm:$0xff] }
  0x12   : > { %988 = vmatpush.bf16.msra.mxu2 %v427_v3  ;;  %989 = vmatpush.bf16.msra.mxu3 %v427_v3  ;;  %v891_v20 = vld [vmem:[%s1073_s5 + $0x18] sm:$0xff]  ;;  %v909_v24 = vld [vmem:[%s1111_s8] sm:$0xff]   ;;  %v972_v59 = vld [vmem:[%s1111_s8 + $0x8] sm:$0xff]  }
  0x13   : > { %v895_v21 = vld [vmem:[%s1073_s5 + $0x38] sm:$0xff]  ;;  %v975_v25 = vld [vmem:[%s1111_s8 + $0x20] sm:$0xff]   ;;  %v910_v27 = vunpack.c.l.bf16 %v909_v24  ;;  %v911_v45 = vunpack.c.h.bf16 %v909_v24  ;;  %v976_v60 = vld [vmem:[%s1111_s8 + $0x28] sm:$0xff]  }
  0x14   : > { %v899_v22 = vld [vmem:[%s1073_s5 + $0x58] sm:$0xff]  ;;  %v926_v28 = vunpack.c.l.bf16 %v975_v25  ;;  %v979_v35 = vld [vmem:[%s1111_s8 + $0x40] sm:$0xff]   ;;  %v927_v46 = vunpack.c.h.bf16 %v975_v25 }
  0x15   : > { %433 = vmatpush.bf16.msra.mxu0 %v907_v4  ;;  %990 = vmatpush.bf16.msra.mxu1 %v907_v4  ;;  %v903_v23 = vld [vmem:[%s1073_s5 + $0x78] sm:$0xff]  ;;  %v983_v36 = vld [vmem:[%s1111_s8 + $0x60] sm:$0xff]   ;;  %v942_v39 = vunpack.c.l.bf16 %v979_v35  ;;  %v943_v1 = vunpack.c.h.bf16 %v979_v35  ;;  %v931_v35 = vunpack.c.h.bf16 %v976_v60 }
  0x16   : > { %991 = vmatpush.bf16.msra.mxu2 %v907_v4  ;;  %992 = vmatpush.bf16.msra.mxu3 %v907_v4  ;;  %v958_v40 = vunpack.c.l.bf16 %v983_v36  ;;  %v959_v2 = vunpack.c.h.bf16 %v983_v36 }
  0x19   : > { %434 = vmatpush.bf16.msra.mxu0 %v906_v5  ;;  %993 = vmatpush.bf16.msra.mxu1 %v906_v5 }
  0x1a   : > { %994 = vmatpush.bf16.msra.mxu2 %v906_v5  ;;  %995 = vmatpush.bf16.msra.mxu3 %v906_v5 }
  0x1d   : > { %435 = vmatpush.bf16.msra.mxu0 %v905_v6  ;;  %996 = vmatpush.bf16.msra.mxu1 %v905_v6 }
  0x1e   : > { %997 = vmatpush.bf16.msra.mxu2 %v905_v6  ;;  %998 = vmatpush.bf16.msra.mxu3 %v905_v6 }
  0x21   : > { %436 = vmatpush.bf16.msra.mxu0 %v904_v7  ;;  %999 = vmatpush.bf16.msra.mxu1 %v904_v7 }
  0x22   : > { %1000 = vmatpush.bf16.msra.mxu2 %v904_v7  ;;  %1001 = vmatpush.bf16.msra.mxu3 %v904_v7  ;;  %v914_v7 = vunpack.c.l.bf16 %v972_v59 }
  0x24   : > { %870 = vmatmul.msk.bf16.vlgmr.msra.gmra.mxu0 %vm376_vm1, %v888_v8  ;;  %874 = vmatmul.msk.bf16.vlgmr.msra.gmra.mxu1 %vm376_vm1, %v892_v9  ;;  %v930_v8 = vunpack.c.l.bf16 %v976_v60 }
  0x25   : > { %878 = vmatmul.msk.bf16.vlgmr.msra.gmra.mxu2 %vm376_vm1, %v896_v10  ;;  %882 = vmatmul.msk.bf16.vlgmr.msra.gmra.mxu3 %vm376_vm1, %v900_v11 }
  0x34   : > { %871 = vmatmul.msk.bf16.gmra.mxu0 %vm376_vm1, %v889_v12  ;;  %875 = vmatmul.msk.bf16.gmra.mxu1 %vm376_vm1, %v893_v13 }
  0x35   : > { %879 = vmatmul.msk.bf16.gmra.mxu2 %vm376_vm1, %v897_v14  ;;  %883 = vmatmul.msk.bf16.gmra.mxu3 %vm376_vm1, %v901_v15 }
  0x44   : > { %872 = vmatmul.msk.bf16.gmra.mxu0 %vm376_vm1, %v890_v16  ;;  %876 = vmatmul.msk.bf16.gmra.mxu1 %vm376_vm1, %v894_v17 }
  0x45   : > { %880 = vmatmul.msk.bf16.gmra.mxu2 %vm376_vm1, %v898_v18  ;;  %884 = vmatmul.msk.bf16.gmra.mxu3 %vm376_vm1, %v902_v19  ;;  %v980_v19 = vld [vmem:[%s1111_s8 + $0x48] sm:$0xff]  }
  0x54   : > { %873 = vmatmul.msk.bf16.gmra.mxu0 %vm376_vm1, %v891_v20  ;;  %877 = vmatmul.msk.bf16.gmra.mxu1 %vm376_vm1, %v895_v21  ;;  %v984_v20 = vld [vmem:[%s1111_s8 + $0x68] sm:$0xff]  }
  0x55   : > { %881 = vmatmul.msk.bf16.gmra.mxu2 %vm376_vm1, %v899_v22  ;;  %885 = vmatmul.msk.bf16.gmra.mxu3 %vm376_vm1, %v903_v23 }
  0xa1   : > { %v438_v29 = vpop.f32.mrf.mxu0  ;;  %v458_v30 = vpop.f32.mrf.mxu1 }
  0xa2   : > { %v439_v31 = vadd.f32 %v1118_v26, %v438_v29  ;;  %v459_v32 = vadd.f32 %v1118_v26, %v458_v30  ;;  %v962_v29 = vunpack.c.l.bf16 %v984_v20 }
  0xa4   : > { %v582_v33 = vadd.f32 %v910_v27, %v439_v31  ;;  %v590_v34 = vadd.f32 %v926_v28, %v459_v32  ;;  %v946_v28 = vunpack.c.l.bf16 %v980_v19 }
  0xa6   : > { %v614_v37 = vmax.f32 %v582_v33, 0.0  ;;  %v622_v38 = vmax.f32 %v590_v34, 0.0  ;;  %v915_v34 = vunpack.c.h.bf16 %v972_v59 }
  0xa8   : > { %v646_v41 = vpack.c.bf16 %v614_v37, %v614_v37  ;;  %v654_v42 = vpack.c.bf16 %v622_v38, %v622_v38  ;;  %v478_v43 = vpop.f32.mrf.mxu2  ;;  %v498_v44 = vpop.f32.mrf.mxu3 }
  0xa9   : > { %v479_v47 = vadd.f32 %v1118_v26, %v478_v43  ;;  %v499_v48 = vadd.f32 %v1118_v26, %v498_v44  ;;  %v440_v49 = vpop.f32.mrf.mxu0  ;;  %v460_v50 = vpop.f32.mrf.mxu1 }
  0xaa   : > { %679 = vst.msk [vmem:[%s1128_s13] sm:$0xf] %vm678_vm2, %v646_v41  ;;  %v441_v51 = vadd.f32 %v1118_v26, %v440_v49  ;;  %v461_v52 = vadd.f32 %v1118_v26, %v460_v50  ;;  %v977_v49 = vld [vmem:[%s1111_s8 + $0x30] sm:$0xff]  }
  0xab   : > { %687 = vst.msk [vmem:[%s1128_s13 + $0x20] sm:$0xf] %vm678_vm2, %v654_v42  ;;  %v598_v53 = vadd.f32 %v942_v39, %v479_v47  ;;  %v606_v54 = vadd.f32 %v958_v40, %v499_v48  ;;  %v973_v48 = vld [vmem:[%s1111_s8 + $0x10] sm:$0xff]  }
  0xac   : > { %v583_v55 = vadd.f32 %v911_v45, %v441_v51  ;;  %v591_v56 = vadd.f32 %v927_v46, %v461_v52  ;;  %v918_v60 = vunpack.c.l.bf16 %v973_v48 }
  0xad   : > { %v630_v57 = vmax.f32 %v598_v53, 0.0  ;;  %v638_v58 = vmax.f32 %v606_v54, 0.0  ;;  %v947_v54 = vunpack.c.h.bf16 %v980_v19 }
  0xae   : > { %v615_v61 = vmax.f32 %v583_v55, 0.0  ;;  %v623_v62 = vmax.f32 %v591_v56, 0.0  ;;  %v963_v55 = vunpack.c.h.bf16 %v984_v20 }
  0xaf   : > { %v662_v63 = vpack.c.bf16 %v630_v57, %v630_v57  ;;  %v670_v0 = vpack.c.bf16 %v638_v58, %v638_v58 }
  0xb0   : > { %v647_v3 = vpack.c.bf16 %v615_v61, %v615_v61  ;;  %v655_v4 = vpack.c.bf16 %v623_v62, %v623_v62  ;;  %v480_v5 = vpop.f32.mrf.mxu2  ;;  %v500_v6 = vpop.f32.mrf.mxu3  ;;  %v934_v61 = vunpack.c.l.bf16 %v977_v49 }
  0xb1   : > { %695 = vst.msk [vmem:[%s1128_s13 + $0x40] sm:$0xf] %vm678_vm2, %v662_v63  ;;  %v481_v9 = vadd.f32 %v1118_v26, %v480_v5  ;;  %v501_v10 = vadd.f32 %v1118_v26, %v500_v6  ;;  %v443_v11 = vpop.f32.mrf.mxu0  ;;  %v463_v12 = vpop.f32.mrf.mxu1 }
  0xb2   : > { %703 = vst.msk [vmem:[%s1128_s13 + $0x60] sm:$0xf] %vm678_vm2, %v670_v0  ;;  %v444_v13 = vadd.f32 %v1118_v26, %v443_v11  ;;  %v464_v14 = vadd.f32 %v1118_v26, %v463_v12 }
  0xb3   : > { %680 = vst.msk [vmem:[%s1128_s13 + $0x4] sm:$0xf] %vm678_vm2, %v647_v3  ;;  %v599_v15 = vadd.f32 %v943_v1, %v481_v9  ;;  %v607_v16 = vadd.f32 %v959_v2, %v501_v10  ;;  %v985_v9 = vld [vmem:[%s1111_s8 + $0x70] sm:$0xff]  }
  0xb4   : > { %688 = vst.msk [vmem:[%s1128_s13 + $0x24] sm:$0xf] %vm678_vm2, %v655_v4  ;;  %v584_v17 = vadd.f32 %v914_v7, %v444_v13  ;;  %v592_v18 = vadd.f32 %v930_v8, %v464_v14  ;;  %v981_v8 = vld [vmem:[%s1111_s8 + $0x50] sm:$0xff]  }
  0xb5   : > { %v631_v21 = vmax.f32 %v599_v15, 0.0  ;;  %v639_v22 = vmax.f32 %v607_v16, 0.0  ;;  %v950_v16 = vunpack.c.l.bf16 %v981_v8 }
  0xb6   : > { %v616_v23 = vmax.f32 %v584_v17, 0.0  ;;  %v624_v24 = vmax.f32 %v592_v18, 0.0  ;;  %v966_v17 = vunpack.c.l.bf16 %v985_v9 }
  0xb7   : > { %v663_v25 = vpack.c.bf16 %v631_v21, %v631_v21  ;;  %v671_v27 = vpack.c.bf16 %v639_v22, %v639_v22  ;;  %v919_v22 = vunpack.c.h.bf16 %v973_v48 }
  0xb8   : > { %v648_v30 = vpack.c.bf16 %v616_v23, %v616_v23  ;;  %v656_v31 = vpack.c.bf16 %v624_v24, %v624_v24  ;;  %v483_v32 = vpop.f32.mrf.mxu2  ;;  %v503_v33 = vpop.f32.mrf.mxu3  ;;  %v935_v23 = vunpack.c.h.bf16 %v977_v49 }
  0xb9   : > { %696 = vst.msk [vmem:[%s1128_s13 + $0x44] sm:$0xf] %vm678_vm2, %v663_v25  ;;  %v484_v36 = vadd.f32 %v1118_v26, %v483_v32  ;;  %v504_v37 = vadd.f32 %v1118_v26, %v503_v33  ;;  %v445_v38 = vpop.f32.mrf.mxu0  ;;  %v465_v39 = vpop.f32.mrf.mxu1 }
  0xba   : > { %704 = vst.msk [vmem:[%s1128_s13 + $0x64] sm:$0xf] %vm678_vm2, %v671_v27  ;;  %v446_v40 = vadd.f32 %v1118_v26, %v445_v38  ;;  %v466_v41 = vadd.f32 %v1118_v26, %v465_v39  ;;  %v978_v38 = vld [vmem:[%s1111_s8 + $0x38] sm:$0xff]  }
  0xbb   : > { %681 = vst.msk [vmem:[%s1128_s13 + $0x8] sm:$0xf] %vm678_vm2, %v648_v30  ;;  %v600_v42 = vadd.f32 %v946_v28, %v484_v36  ;;  %v608_v43 = vadd.f32 %v962_v29, %v504_v37  ;;  %v974_v37 = vld [vmem:[%s1111_s8 + $0x18] sm:$0xff]  }
  0xbc   : > { %689 = vst.msk [vmem:[%s1128_s13 + $0x28] sm:$0xf] %vm678_vm2, %v656_v31  ;;  %v585_v44 = vadd.f32 %v915_v34, %v446_v40  ;;  %v593_v45 = vadd.f32 %v931_v35, %v466_v41  ;;  %v922_v49 = vunpack.c.l.bf16 %v974_v37 }
  0xbd   : > { %v632_v46 = vmax.f32 %v600_v42, 0.0  ;;  %v640_v47 = vmax.f32 %v608_v43, 0.0  ;;  %v951_v43 = vunpack.c.h.bf16 %v981_v8 }
  0xbe   : > { %v617_v50 = vmax.f32 %v585_v44, 0.0  ;;  %v625_v51 = vmax.f32 %v593_v45, 0.0  ;;  %v967_v44 = vunpack.c.h.bf16 %v985_v9 }
  0xbf   : > { %v664_v52 = vpack.c.bf16 %v632_v46, %v632_v46  ;;  %v672_v53 = vpack.c.bf16 %v640_v47, %v640_v47 }
  0xc0   : > { %v649_v56 = vpack.c.bf16 %v617_v50, %v617_v50  ;;  %v657_v57 = vpack.c.bf16 %v625_v51, %v625_v51  ;;  %v485_v58 = vpop.f32.mrf.mxu2  ;;  %v505_v59 = vpop.f32.mrf.mxu3  ;;  %v938_v50 = vunpack.c.l.bf16 %v978_v38 }
  0xc1   : > { %697 = vst.msk [vmem:[%s1128_s13 + $0x48] sm:$0xf] %vm678_vm2, %v664_v52  ;;  %v486_v62 = vadd.f32 %v1118_v26, %v485_v58  ;;  %v506_v63 = vadd.f32 %v1118_v26, %v505_v59  ;;  %v448_v0 = vpop.f32.mrf.mxu0  ;;  %v468_v1 = vpop.f32.mrf.mxu1 }
  0xc2   : > { %705 = vst.msk [vmem:[%s1128_s13 + $0x68] sm:$0xf] %vm678_vm2, %v672_v53  ;;  %v449_v2 = vadd.f32 %v1118_v26, %v448_v0  ;;  %v469_v3 = vadd.f32 %v1118_v26, %v468_v1 }
  0xc3   : > { %682 = vst.msk [vmem:[%s1128_s13 + $0xc] sm:$0xf] %vm678_vm2, %v649_v56  ;;  %v601_v4 = vadd.f32 %v947_v54, %v486_v62  ;;  %v609_v5 = vadd.f32 %v963_v55, %v506_v63  ;;  %v986_v62 = vld [vmem:[%s1111_s8 + $0x78] sm:$0xff]  }
  0xc4   : > { %690 = vst.msk [vmem:[%s1128_s13 + $0x2c] sm:$0xf] %vm678_vm2, %v657_v57  ;;  %v586_v6 = vadd.f32 %v918_v60, %v449_v2  ;;  %v594_v7 = vadd.f32 %v934_v61, %v469_v3  ;;  %v982_v61 = vld [vmem:[%s1111_s8 + $0x58] sm:$0xff]  }
  0xc5   : > { %v633_v10 = vmax.f32 %v601_v4, 0.0  ;;  %v641_v11 = vmax.f32 %v609_v5, 0.0  ;;  %v954_v5 = vunpack.c.l.bf16 %v982_v61 }
  0xc6   : > { %v618_v12 = vmax.f32 %v586_v6, 0.0  ;;  %v626_v13 = vmax.f32 %v594_v7, 0.0  ;;  %v970_v6 = vunpack.c.l.bf16 %v986_v62 }
  0xc7   : > { %v665_v14 = vpack.c.bf16 %v633_v10, %v633_v10  ;;  %v673_v15 = vpack.c.bf16 %v641_v11, %v641_v11  ;;  %v923_v11 = vunpack.c.h.bf16 %v974_v37 }
  0xc8   : > { %v650_v18 = vpack.c.bf16 %v618_v12, %v618_v12  ;;  %v658_v19 = vpack.c.bf16 %v626_v13, %v626_v13  ;;  %v488_v20 = vpop.f32.mrf.mxu2  ;;  %v508_v21 = vpop.f32.mrf.mxu3  ;;  %v939_v12 = vunpack.c.h.bf16 %v978_v38 }
  0xc9   : > { %698 = vst.msk [vmem:[%s1128_s13 + $0x4c] sm:$0xf] %vm678_vm2, %v665_v14  ;;  %v489_v24 = vadd.f32 %v1118_v26, %v488_v20  ;;  %v509_v25 = vadd.f32 %v1118_v26, %v508_v21  ;;  %v450_v27 = vpop.f32.mrf.mxu0  ;;  %v470_v28 = vpop.f32.mrf.mxu1 }
  0xca   : > { %706 = vst.msk [vmem:[%s1128_s13 + $0x6c] sm:$0xf] %vm678_vm2, %v673_v15  ;;  %v451_v29 = vadd.f32 %v1118_v26, %v450_v27  ;;  %v471_v30 = vadd.f32 %v1118_v26, %v470_v28 }
  0xcb   : > { %683 = vst.msk [vmem:[%s1128_s13 + $0x10] sm:$0xf] %vm678_vm2, %v650_v18  ;;  %v602_v31 = vadd.f32 %v950_v16, %v489_v24  ;;  %v610_v32 = vadd.f32 %v966_v17, %v509_v25 }
  0xcc   : > { %691 = vst.msk [vmem:[%s1128_s13 + $0x30] sm:$0xf] %vm678_vm2, %v658_v19  ;;  %v587_v33 = vadd.f32 %v919_v22, %v451_v29  ;;  %v595_v34 = vadd.f32 %v935_v23, %v471_v30  ;;  %v955_v30 = vunpack.c.h.bf16 %v982_v61 }
  0xcd   : > { %v634_v35 = vmax.f32 %v602_v31, 0.0  ;;  %v642_v36 = vmax.f32 %v610_v32, 0.0  ;;  %v971_v31 = vunpack.c.h.bf16 %v986_v62 }
  0xce   : > { %v619_v39 = vmax.f32 %v587_v33, 0.0  ;;  %v627_v40 = vmax.f32 %v595_v34, 0.0 }
  0xcf   : > { %v666_v41 = vpack.c.bf16 %v634_v35, %v634_v35  ;;  %v674_v42 = vpack.c.bf16 %v642_v36, %v642_v36 }
  0xd0   : > { %v651_v45 = vpack.c.bf16 %v619_v39, %v619_v39  ;;  %v659_v46 = vpack.c.bf16 %v627_v40, %v627_v40  ;;  %v490_v47 = vpop.f32.mrf.mxu2  ;;  %v510_v48 = vpop.f32.mrf.mxu3 }
  0xd1   : > { %699 = vst.msk [vmem:[%s1128_s13 + $0x50] sm:$0xf] %vm678_vm2, %v666_v41  ;;  %v491_v51 = vadd.f32 %v1118_v26, %v490_v47  ;;  %v511_v52 = vadd.f32 %v1118_v26, %v510_v48  ;;  %v453_v53 = vpop.f32.mrf.mxu0  ;;  %v473_v54 = vpop.f32.mrf.mxu1 }
  0xd2   : > { %707 = vst.msk [vmem:[%s1128_s13 + $0x70] sm:$0xf] %vm678_vm2, %v674_v42  ;;  %v454_v55 = vadd.f32 %v1118_v26, %v453_v53  ;;  %v474_v56 = vadd.f32 %v1118_v26, %v473_v54 }
  0xd3   : > { %684 = vst.msk [vmem:[%s1128_s13 + $0x14] sm:$0xf] %vm678_vm2, %v651_v45  ;;  %v603_v57 = vadd.f32 %v951_v43, %v491_v51  ;;  %v611_v58 = vadd.f32 %v967_v44, %v511_v52 }
  0xd4   : > { %692 = vst.msk [vmem:[%s1128_s13 + $0x34] sm:$0xf] %vm678_vm2, %v659_v46  ;;  %v588_v59 = vadd.f32 %v922_v49, %v454_v55  ;;  %v596_v60 = vadd.f32 %v938_v50, %v474_v56 }
  0xd5   : > { %v635_v63 = vmax.f32 %v603_v57, 0.0  ;;  %v643_v0 = vmax.f32 %v611_v58, 0.0 }
  0xd6   : > { %v620_v1 = vmax.f32 %v588_v59, 0.0  ;;  %v628_v2 = vmax.f32 %v596_v60, 0.0 }
  0xd7   : > { %v667_v3 = vpack.c.bf16 %v635_v63, %v635_v63  ;;  %v675_v4 = vpack.c.bf16 %v643_v0, %v643_v0 }
  0xd8   : > { %v652_v7 = vpack.c.bf16 %v620_v1, %v620_v1  ;;  %v660_v8 = vpack.c.bf16 %v628_v2, %v628_v2  ;;  %v493_v9 = vpop.f32.mrf.mxu2  ;;  %v513_v10 = vpop.f32.mrf.mxu3 }
  0xd9   : > { %700 = vst.msk [vmem:[%s1128_s13 + $0x54] sm:$0xf] %vm678_vm2, %v667_v3  ;;  %v494_v13 = vadd.f32 %v1118_v26, %v493_v9  ;;  %v514_v14 = vadd.f32 %v1118_v26, %v513_v10  ;;  %v455_v15 = vpop.f32.mrf.mxu0  ;;  %v475_v16 = vpop.f32.mrf.mxu1 }
  0xda   : > { %708 = vst.msk [vmem:[%s1128_s13 + $0x74] sm:$0xf] %vm678_vm2, %v675_v4  ;;  %v456_v17 = vadd.f32 %v1118_v26, %v455_v15  ;;  %v476_v18 = vadd.f32 %v1118_v26, %v475_v16 }
  0xdb   : > { %685 = vst.msk [vmem:[%s1128_s13 + $0x18] sm:$0xf] %vm678_vm2, %v652_v7  ;;  %v604_v19 = vadd.f32 %v954_v5, %v494_v13  ;;  %v612_v20 = vadd.f32 %v970_v6, %v514_v14 }
  0xdc   : > { %693 = vst.msk [vmem:[%s1128_s13 + $0x38] sm:$0xf] %vm678_vm2, %v660_v8  ;;  %v589_v21 = vadd.f32 %v923_v11, %v456_v17  ;;  %v597_v22 = vadd.f32 %v939_v12, %v476_v18 }
  0xdd   : > { %v636_v23 = vmax.f32 %v604_v19, 0.0  ;;  %v644_v24 = vmax.f32 %v612_v20, 0.0 }
  0xde   : > { %v621_v25 = vmax.f32 %v589_v21, 0.0  ;;  %v629_v27 = vmax.f32 %v597_v22, 0.0 }
  0xdf   : > { %v668_v28 = vpack.c.bf16 %v636_v23, %v636_v23  ;;  %v676_v29 = vpack.c.bf16 %v644_v24, %v644_v24 }
  0xe0   : > { %v653_v32 = vpack.c.bf16 %v621_v25, %v621_v25  ;;  %v661_v33 = vpack.c.bf16 %v629_v27, %v629_v27  ;;  %v495_v34 = vpop.f32.mrf.mxu2  ;;  %v515_v35 = vpop.f32.mrf.mxu3 }
  0xe1   : > { %701 = vst.msk [vmem:[%s1128_s13 + $0x58] sm:$0xf] %vm678_vm2, %v668_v28  ;;  %v496_v36 = vadd.f32 %v1118_v26, %v495_v34  ;;  %v516_v37 = vadd.f32 %v1118_v26, %v515_v35 }
  0xe2   : > { %709 = vst.msk [vmem:[%s1128_s13 + $0x78] sm:$0xf] %vm678_vm2, %v676_v29 }
  0xe3   : > { %686 = vst.msk [vmem:[%s1128_s13 + $0x1c] sm:$0xf] %vm678_vm2, %v653_v32  ;;  %v605_v38 = vadd.f32 %v955_v30, %v496_v36  ;;  %v613_v39 = vadd.f32 %v971_v31, %v516_v37 }
  0xe4   : > { %694 = vst.msk [vmem:[%s1128_s13 + $0x3c] sm:$0xf] %vm678_vm2, %v661_v33 }
  0xe5   : > { %v637_v40 = vmax.f32 %v605_v38, 0.0  ;;  %v645_v41 = vmax.f32 %v613_v39, 0.0 }
  0xe7   : > { %v669_v42 = vpack.c.bf16 %v637_v40, %v637_v40  ;;  %v677_v43 = vpack.c.bf16 %v645_v41, %v645_v41 }
  0xe9   : > { %702 = vst.msk [vmem:[%s1128_s13 + $0x5c] sm:$0xf] %vm678_vm2, %v669_v42 }
  0xea   : > { %710 = vst.msk [vmem:[%s1128_s13 + $0x7c] sm:$0xf] %vm678_vm2, %v677_v43 }
  0xeb PF: > { %s14_s15 = sadd.s32 1, %s1017_s15  }
  0xec   : > { %p11_p4 = scmp.ge.s32.totalorder %s14_s15, 4  }
  0xee   :  { %13 = sbr.rel (!%p11_p4) target bundleno = 1 (0x1), region = 69 }

// kernel: flexible_resunet_forward.21
= control target key start
LH: loop header
LB: loop body
LE: loop exit
PB: predicated region body
PF: predicated region fallthrough
CT: control target
= control target key end

     0   :  { %s477_s12 = smov 0   ;;  %s533_s0 = inlined_call_operand.vmem [shape: bf16[128,72], index: 0, kind: input, shape index: {}]   ;;  %s534_s1 = inlined_call_operand.vmem [shape: bf16[72,16], index: 1, kind: input, shape index: {}]   ;;  %s535_s2 = inlined_call_operand.vmem [shape: f32[1,16], index: 2, kind: input, shape index: {}]   ;;  %s536_s3 = inlined_call_operand.vmem [shape: bf16[128,16], index: 3, kind: output, shape index: {}]  }
   0x1 LB: > { %s370_s13 = sadd.s32 4294967295, %s455_s12   ;;  %p374_p0 = scmp.ge.s32.totalorder %s455_s12, 1  ;;  %s455_s12 = sphi %s477_s12, %s13_s12  }
   0x2   : > { %p138_p1 = scmp.lt.s32.totalorder %s455_s12, 3 }
   0x4   : > { %p139_p2 = pnand %p374_p0, %p138_p1 }
   0x5   : > { %s375_s16 = sshll.u32 (!%p139_p2), %s370_s13, 3 }
   0x6   : > { %142 = sbr.rel (%p139_p2) target bundleno = 185 (0xb9), region = 32  ;;  %p163_p3 = scmp.lt.s32.totalorder (!%p139_p2), %s375_s16, 15 }
   0xb   : > { %v191_v0 = vld [vmem:[%s534_s1 + $0x20] sm:$0xf]  ;;  %vm256_vm0 = vcmask 1043456   ;;  %v424_v4 = vld [vmem:[%s534_s1 + $0x18] sm:$0xff]  ;;  %v423_v5 = vld [vmem:[%s534_s1 + $0x10] sm:$0xff]  ;;  %s538_s16 = smov (!%p163_p3, %s375_s16), 15 }
   0xc   : > { %v233_v1 = vunpack.c.l.b16 %v191_v0  ;;  %v422_v6 = vld [vmem:[%s534_s1 + $0x8] sm:$0xff]  ;;  %s376_s23 = sshll.u32 %s538_s16, 2  ;;  %v421_v7 = vld [vmem:[%s534_s1] sm:$0xff]  ;;  %vm243_vm1 = vcmask 588800   ;;  %vm305_vm2 = vcmask 125952  }
   0xd   : > { %s166_s28 = scalar_lea.vmem %s533_s0, %s376_s23  ;;  %v448_v12 = vld [vmem:[%s535_s2] ss:$0 sm:$0xff]  ;;  %s512_s6 = scalar_lea.vmem %s536_s3, %s376_s23 }
   0xe   : > { %v238_v2 = vpack.c.b16 %v233_v1, %v233_v1  ;;  %v417_v8 = vld [vmem:[%s166_s28] sm:$0xff]  ;;  %v418_v9 = vld [vmem:[%s166_s28 + $0x8] sm:$0xff]  ;;  %v419_v10 = vld [vmem:[%s166_s28 + $0x10] sm:$0xff] }
   0xf   : > { %v420_v11 = vld [vmem:[%s166_s28 + $0x18] sm:$0xff] }
  0x10   : > { %v258_v3 = vsel %vm256_vm0, %v238_v2, 0 }
  0x11   : > { %263 = vmatpush.bf16.msra.mxu0 %v258_v3  ;;  %425 = vmatpush.bf16.msra.mxu1 %v258_v3 }
  0x12   : > { %426 = vmatpush.bf16.msra.mxu2 %v258_v3  ;;  %427 = vmatpush.bf16.msra.mxu3 %v258_v3 }
  0x15   : > { %264 = vmatpush.bf16.msra.mxu0 %v424_v4  ;;  %428 = vmatpush.bf16.msra.mxu1 %v424_v4 }
  0x16   : > { %429 = vmatpush.bf16.msra.mxu2 %v424_v4  ;;  %430 = vmatpush.bf16.msra.mxu3 %v424_v4 }
  0x19   : > { %265 = vmatpush.bf16.msra.mxu0 %v423_v5  ;;  %431 = vmatpush.bf16.msra.mxu1 %v423_v5 }
  0x1a   : > { %432 = vmatpush.bf16.msra.mxu2 %v423_v5  ;;  %433 = vmatpush.bf16.msra.mxu3 %v423_v5 }
  0x1d   : > { %266 = vmatpush.bf16.msra.mxu0 %v422_v6  ;;  %434 = vmatpush.bf16.msra.mxu1 %v422_v6 }
  0x1e   : > { %435 = vmatpush.bf16.msra.mxu2 %v422_v6  ;;  %436 = vmatpush.bf16.msra.mxu3 %v422_v6 }
  0x21   : > { %267 = vmatpush.bf16.msra.mxu0 %v421_v7  ;;  %437 = vmatpush.bf16.msra.mxu1 %v421_v7 }
  0x22   : > { %438 = vmatpush.bf16.msra.mxu2 %v421_v7  ;;  %439 = vmatpush.bf16.msra.mxu3 %v421_v7 }
  0x24   : > { %411 = vmatmul.msk.bf16.vlgmr.msra.gmra.mxu0 %vm243_vm1, %v417_v8  ;;  %412 = vmatmul.msk.bf16.vlgmr.msra.gmra.mxu1 %vm243_vm1, %v418_v9 }
  0x25   : > { %413 = vmatmul.msk.bf16.vlgmr.msra.gmra.mxu2 %vm243_vm1, %v419_v10  ;;  %414 = vmatmul.msk.bf16.vlgmr.msra.gmra.mxu3 %vm243_vm1, %v420_v11 }
  0xa1   : > { %v269_v13 = vpop.f32.mrf.mxu0  ;;  %v274_v14 = vpop.f32.mrf.mxu1 }
  0xa2   : > { %v270_v15 = vadd.f32 %v448_v12, %v269_v13  ;;  %v275_v16 = vadd.f32 %v448_v12, %v274_v14 }
  0xa4   : > { %v289_v17 = vmax.f32 %v270_v15, 0.0  ;;  %v291_v18 = vmax.f32 %v275_v16, 0.0 }
  0xa6   : > { %v297_v19 = vpack.c.bf16 %v289_v17, %v289_v17  ;;  %v299_v20 = vpack.c.bf16 %v291_v18, %v291_v18 }
  0xa8   : > { %306 = vst.msk [vmem:[%s512_s6] sm:$0xf] %vm305_vm2, %v297_v19  ;;  %v279_v21 = vpop.f32.mrf.mxu2  ;;  %v284_v22 = vpop.f32.mrf.mxu3 }
  0xa9   : > { %308 = vst.msk [vmem:[%s512_s6 + $0x8] sm:$0xf] %vm305_vm2, %v299_v20  ;;  %v280_v23 = vadd.f32 %v448_v12, %v279_v21  ;;  %v285_v24 = vadd.f32 %v448_v12, %v284_v22  ;;  %v271_v25 = vpop.f32.mrf.mxu0  ;;  %v276_v26 = vpop.f32.mrf.mxu1 }
  0xaa   : > { %v272_v27 = vadd.f32 %v448_v12, %v271_v25  ;;  %v277_v28 = vadd.f32 %v448_v12, %v276_v26 }
  0xab   : > { %v293_v29 = vmax.f32 %v280_v23, 0.0  ;;  %v295_v30 = vmax.f32 %v285_v24, 0.0 }
  0xac   : > { %v290_v31 = vmax.f32 %v272_v27, 0.0  ;;  %v292_v32 = vmax.f32 %v277_v28, 0.0 }
  0xad   : > { %v301_v33 = vpack.c.bf16 %v293_v29, %v293_v29  ;;  %v303_v34 = vpack.c.bf16 %v295_v30, %v295_v30 }
  0xae   : > { %v298_v35 = vpack.c.bf16 %v290_v31, %v290_v31  ;;  %v300_v36 = vpack.c.bf16 %v292_v32, %v292_v32 }
  0xaf   : > { %310 = vst.msk [vmem:[%s512_s6 + $0x10] sm:$0xf] %vm305_vm2, %v301_v33 }
  0xb0   : > { %312 = vst.msk [vmem:[%s512_s6 + $0x18] sm:$0xf] %vm305_vm2, %v303_v34  ;;  %v281_v37 = vpop.f32.mrf.mxu2  ;;  %v286_v38 = vpop.f32.mrf.mxu3 }
  0xb1   : > { %307 = vst.msk [vmem:[%s512_s6 + $0x4] sm:$0xf] %vm305_vm2, %v298_v35  ;;  %v282_v39 = vadd.f32 %v448_v12, %v281_v37  ;;  %v287_v40 = vadd.f32 %v448_v12, %v286_v38 }
  0xb2   : > { %309 = vst.msk [vmem:[%s512_s6 + $0xc] sm:$0xf] %vm305_vm2, %v300_v36 }
  0xb3   : > { %v294_v41 = vmax.f32 %v282_v39, 0.0  ;;  %v296_v42 = vmax.f32 %v287_v40, 0.0 }
  0xb5   : > { %v302_v43 = vpack.c.bf16 %v294_v41, %v294_v41  ;;  %v304_v44 = vpack.c.bf16 %v296_v42, %v296_v42 }
  0xb7   : > { %311 = vst.msk [vmem:[%s512_s6 + $0x14] sm:$0xf] %vm305_vm2, %v302_v43 }
  0xb8   : > { %313 = vst.msk [vmem:[%s512_s6 + $0x1c] sm:$0xf] %vm305_vm2, %v304_v44 }
  0xb9 PF: > { %s13_s12 = sadd.s32 1, %s455_s12  }
  0xba   : > { %p10_p4 = scmp.ge.s32.totalorder %s13_s12, 4  }
  0xbc   :  { %12 = sbr.rel (!%p10_p4) target bundleno = 1 (0x1), region = 62 }

// kernel: flexible_resunet_forward.22
= control target key start
LH: loop header
LB: loop body
LE: loop exit
PB: predicated region body
PF: predicated region fallthrough
CT: control target
= control target key end

     0   :  { %s402_s12 = smov 0   ;;  %s433_s0 = inlined_call_operand.vmem [shape: bf16[128,8], index: 0, kind: input, shape index: {}]   ;;  %s434_s1 = inlined_call_operand.vmem [shape: bf16[8,16], index: 1, kind: input, shape index: {}]   ;;  %s435_s2 = inlined_call_operand.vmem [shape: f32[1,16], index: 2, kind: input, shape index: {}]   ;;  %s436_s3 = inlined_call_operand.vmem [shape: bf16[128,16], index: 3, kind: output, shape index: {}]  }
   0x1 LB: > { %s327_s13 = sadd.s32 4294967295, %s380_s12   ;;  %p331_p0 = scmp.ge.s32.totalorder %s380_s12, 1  ;;  %s380_s12 = sphi %s402_s12, %s13_s12  }
   0x2   : > { %p138_p1 = scmp.lt.s32.totalorder %s380_s12, 3 }
   0x4   : > { %p139_p2 = pnand %p331_p0, %p138_p1 }
   0x5   : > { %s332_s16 = sshll.u32 (!%p139_p2), %s327_s13, 3 }
   0x6   : > { %142 = sbr.rel (%p139_p2) target bundleno = 163 (0xa3), region = 32  ;;  %p163_p3 = scmp.lt.s32.totalorder (!%p139_p2), %s332_s16, 15 }
   0xb   : > { %v183_v0 = vld [vmem:[%s434_s1] sm:$0xf]  ;;  %vm221_vm0 = vcmask 1043456   ;;  %s438_s16 = smov (!%p163_p3, %s332_s16), 15  ;;  %vm208_vm1 = vcmask 64512   ;;  %vm262_vm2 = vcmask 125952  }
   0xc   : > { %v223_v1 = vsel %vm221_vm0, %v183_v0, 0  ;;  %s333_s17 = sshll.u32 %s438_s16, 2  ;;  %v373_v6 = vld [vmem:[%s435_s2] ss:$0 sm:$0xff] }
   0xd   : > { %232 = vmatpush.bf16.msra.mxu0 %v223_v1  ;;  %362 = vmatpush.bf16.msra.mxu1 %v223_v1  ;;  %s166_s20 = scalar_lea.vmem %s433_s0, %s333_s17  ;;  %s172_s25 = scalar_lea.vmem %s436_s3, %s333_s17 }
   0xe   : > { %363 = vmatpush.bf16.msra.mxu2 %v223_v1  ;;  %364 = vmatpush.bf16.msra.mxu3 %v223_v1  ;;  %v358_v2 = vld [vmem:[%s166_s20] sm:$0xff]  ;;  %v359_v3 = vld [vmem:[%s166_s20 + $0x8] sm:$0xff]  ;;  %v360_v4 = vld [vmem:[%s166_s20 + $0x10] sm:$0xff] }
   0xf   : > { %v361_v5 = vld [vmem:[%s166_s20 + $0x18] sm:$0xff] }
  0x10   : > { %352 = vmatmul.msk.bf16.vlgmr.msra.gmra.mxu0 %vm208_vm1, %v358_v2  ;;  %353 = vmatmul.msk.bf16.vlgmr.msra.gmra.mxu1 %vm208_vm1, %v359_v3 }
  0x11   : > { %354 = vmatmul.msk.bf16.vlgmr.msra.gmra.mxu2 %vm208_vm1, %v360_v4  ;;  %355 = vmatmul.msk.bf16.vlgmr.msra.gmra.mxu3 %vm208_vm1, %v361_v5 }
  0x8d   : > { %v234_v7 = vpop.f32.mrf.mxu0  ;;  %v239_v8 = vpop.f32.mrf.mxu1 }
  0x8e   : > { %v235_v9 = vadd.f32 %v373_v6, %v234_v7  ;;  %v240_v10 = vadd.f32 %v373_v6, %v239_v8 }
  0x90   : > { %v254_v11 = vpack.c.bf16 %v235_v9, %v235_v9  ;;  %v256_v12 = vpack.c.bf16 %v240_v10, %v240_v10 }
  0x92   : > { %263 = vst.msk [vmem:[%s172_s25] sm:$0xf] %vm262_vm2, %v254_v11 }
  0x93   : > { %265 = vst.msk [vmem:[%s172_s25 + $0x8] sm:$0xf] %vm262_vm2, %v256_v12 }
  0x94   : > { %v244_v13 = vpop.f32.mrf.mxu2  ;;  %v249_v14 = vpop.f32.mrf.mxu3 }
  0x95   : > { %v245_v15 = vadd.f32 %v373_v6, %v244_v13  ;;  %v250_v16 = vadd.f32 %v373_v6, %v249_v14  ;;  %v236_v17 = vpop.f32.mrf.mxu0  ;;  %v241_v18 = vpop.f32.mrf.mxu1 }
  0x96   : > { %v237_v19 = vadd.f32 %v373_v6, %v236_v17  ;;  %v242_v20 = vadd.f32 %v373_v6, %v241_v18 }
  0x97   : > { %v258_v21 = vpack.c.bf16 %v245_v15, %v245_v15  ;;  %v260_v22 = vpack.c.bf16 %v250_v16, %v250_v16 }
  0x98   : > { %v255_v23 = vpack.c.bf16 %v237_v19, %v237_v19  ;;  %v257_v24 = vpack.c.bf16 %v242_v20, %v242_v20 }
  0x99   : > { %267 = vst.msk [vmem:[%s172_s25 + $0x10] sm:$0xf] %vm262_vm2, %v258_v21 }
  0x9a   : > { %269 = vst.msk [vmem:[%s172_s25 + $0x18] sm:$0xf] %vm262_vm2, %v260_v22 }
  0x9b   : > { %264 = vst.msk [vmem:[%s172_s25 + $0x4] sm:$0xf] %vm262_vm2, %v255_v23 }
  0x9c   : > { %266 = vst.msk [vmem:[%s172_s25 + $0xc] sm:$0xf] %vm262_vm2, %v257_v24  ;;  %v246_v25 = vpop.f32.mrf.mxu2  ;;  %v251_v26 = vpop.f32.mrf.mxu3 }
  0x9d   : > { %v247_v27 = vadd.f32 %v373_v6, %v246_v25  ;;  %v252_v28 = vadd.f32 %v373_v6, %v251_v26 }
  0x9f   : > { %v259_v29 = vpack.c.bf16 %v247_v27, %v247_v27  ;;  %v261_v30 = vpack.c.bf16 %v252_v28, %v252_v28 }
  0xa1   : > { %268 = vst.msk [vmem:[%s172_s25 + $0x14] sm:$0xf] %vm262_vm2, %v259_v29 }
  0xa2   : > { %270 = vst.msk [vmem:[%s172_s25 + $0x1c] sm:$0xf] %vm262_vm2, %v261_v30 }
  0xa3 PF: > { %s13_s12 = sadd.s32 1, %s380_s12  }
  0xa4   : > { %p10_p4 = scmp.ge.s32.totalorder %s13_s12, 4  }
  0xa6   :  { %12 = sbr.rel (!%p10_p4) target bundleno = 1 (0x1), region = 62 }

// kernel: flexible_resunet_forward.23
= control target key start
LH: loop header
LB: loop body
LE: loop exit
PB: predicated region body
PF: predicated region fallthrough
CT: control target
= control target key end

     0   :  { %s709_s15 = smov 0   ;;  %s822_s0 = inlined_call_operand.vmem [shape: bf16[128,144], index: 0, kind: input, shape index: {}]   ;;  %s823_s1 = inlined_call_operand.vmem [shape: bf16[144,16], index: 1, kind: input, shape index: {}]   ;;  %s824_s2 = inlined_call_operand.vmem [shape: f32[1,16], index: 2, kind: input, shape index: {}]   ;;  %s825_s3 = inlined_call_operand.vmem [shape: bf16[128,16], index: 3, kind: input, shape index: {}]   ;;  %s826_s4 = inlined_call_operand.vmem [shape: bf16[128,16], index: 4, kind: output, shape index: {}]  }
   0x1 LB: > { %s535_s16 = sadd.s32 4294967295, %s682_s15   ;;  %p539_p0 = scmp.ge.s32.totalorder %s682_s15, 1  ;;  %s682_s15 = sphi %s709_s15, %s14_s15  }
   0x2   : > { %p175_p1 = scmp.lt.s32.totalorder %s682_s15, 3 }
   0x4   : > { %p176_p2 = pnand %p539_p0, %p175_p1 }
   0x5   : > { %s540_s21 = sshll.u32 (!%p176_p2), %s535_s16, 3 }
   0x6   : > { %179 = sbr.rel (%p176_p2) target bundleno = 210 (0xd2), region = 36  ;;  %p208_p3 = scmp.lt.s32.totalorder (!%p176_p2), %s540_s21, 15 }
   0xb   : > { %v637_v0 = vld [vmem:[%s823_s1 + $0x38] sm:$0xff]  ;;  %v638_v1 = vld [vmem:[%s823_s1 + $0x40] sm:$0xff]  ;;  %v636_v2 = vld [vmem:[%s823_s1 + $0x30] sm:$0xff]  ;;  %s828_s21 = smov (!%p208_p3, %s540_s21), 15  ;;  %vm347_vm0 = vcmask 130048   ;;  %vm458_vm1 = vcmask 125952  }
   0xc   : > { %360 = vmatpush.bf16.msra.mxu0 %v637_v0  ;;  %658 = vmatpush.bf16.msra.mxu2 %v637_v0  ;;  %s621_s24 = sshll.u32 %s828_s21, 3  ;;  %v635_v3 = vld [vmem:[%s823_s1 + $0x28] sm:$0xff]  ;;  %v634_v8 = vld [vmem:[%s823_s1 + $0x20] sm:$0xff]  ;;  %v633_v11 = vld [vmem:[%s823_s1 + $0x18] sm:$0xff]  ;;  %s544_s14 = sshll.u32 %s828_s21, 2 }
   0xd   : > { %666 = vmatpush.bf16.msra.mxu3 %v638_v1  ;;  %396 = vmatpush.bf16.msra.mxu1 %v638_v1  ;;  %s735_s29 = scalar_lea.vmem %s822_s0, %s621_s24  ;;  %v632_v12 = vld [vmem:[%s823_s1 + $0x10] sm:$0xff]  ;;  %v631_v15 = vld [vmem:[%s823_s1 + $0x8] sm:$0xff]  ;;  %v630_v17 = vld [vmem:[%s823_s1] sm:$0xff]  ;;  %s778_s18 = scalar_lea.vmem %s825_s3, %s544_s14 }
   0xe   : > { %v624_v4 = vld [vmem:[%s735_s29 + $0x14] sm:$0xf]  ;;  %v559_v5 = vld [vmem:[%s735_s29 + $0x18] sm:$0xf0]  ;;  %v622_v7 = vld [vmem:[%s735_s29 + $0x4] sm:$0xf]  ;;  %s792_s23 = scalar_lea.vmem %s826_s4, %s544_s14 }
   0xf   : > { %v562_v6 = vor.u32 %v624_v4, %v559_v5  ;;  %v551_v9 = vld [vmem:[%s735_s29 + $0x8] sm:$0xf0]  ;;  %v626_v13 = vld [vmem:[%s735_s29 + $0x24] sm:$0xf]  ;;  %v549_v18 = vld [vmem:[%s735_s29] sm:$0xf] }
  0x10   : > { %361 = vmatpush.bf16.msra.mxu0 %v636_v2  ;;  %659 = vmatpush.bf16.msra.mxu2 %v636_v2  ;;  %v554_v10 = vor.u32 %v622_v7, %v551_v9  ;;  %v567_v14 = vld [vmem:[%s735_s29 + $0x28] sm:$0xf0]  ;;  %v623_v19 = vld [vmem:[%s735_s29 + $0x4] sm:$0xf0]  ;;  %v565_v20 = vld [vmem:[%s735_s29 + $0x20] sm:$0xf] }
  0x11   : > { %616 = vmatmul.msk.bf16.vlgmr.msra.gmra.mxu3 %vm347_vm0, %v562_v6  ;;  %v570_v16 = vor.u32 %v626_v13, %v567_v14  ;;  %v627_v21 = vld [vmem:[%s735_s29 + $0x24] sm:$0xf0]  ;;  %v550_v22 = vor.u32 %v623_v19, %v549_v18  ;;  %v628_v24 = vld [vmem:[%s735_s29 + $0x34] sm:$0xf]  ;;  %v575_v25 = vld [vmem:[%s735_s29 + $0x38] sm:$0xf0] }
  0x12   : > { %615 = vmatmul.msk.bf16.vlgmr.msra.gmra.mxu1 %vm347_vm0, %v554_v10  ;;  %v566_v23 = vor.u32 %v627_v21, %v565_v20  ;;  %v578_v26 = vor.u32 %v628_v24, %v575_v25  ;;  %v557_v27 = vld [vmem:[%s735_s29 + $0x10] sm:$0xf]  ;;  %v625_v28 = vld [vmem:[%s735_s29 + $0x14] sm:$0xf0]  ;;  %v783_v35 = vld [vmem:[%s824_s2] ss:$0 sm:$0xff] }
  0x13   : > { %v573_v29 = vld [vmem:[%s735_s29 + $0x30] sm:$0xf]  ;;  %v629_v30 = vld [vmem:[%s735_s29 + $0x34] sm:$0xf0]  ;;  %v558_v31 = vor.u32 %v625_v28, %v557_v27  ;;  %v640_v37 = vld [vmem:[%s778_s18] sm:$0xff]  }
  0x14   : > { %362 = vmatpush.bf16.msra.mxu0 %v635_v3  ;;  %660 = vmatpush.bf16.msra.mxu2 %v635_v3  ;;  %v574_v32 = vor.u32 %v629_v30, %v573_v29  ;;  %v641_v40 = vunpack.c.l.bf16 %v640_v37  ;;  %v656_v43 = vld [vmem:[%s778_s18 + $0x10] sm:$0xff]   ;;  %v642_v54 = vunpack.c.h.bf16 %v640_v37  ;;  %v655_v61 = vld [vmem:[%s778_s18 + $0x8] sm:$0xff]   ;;  %v657_v9 = vld [vmem:[%s778_s18 + $0x18] sm:$0xff]  }
  0x15   : > { %v649_v48 = vunpack.c.l.bf16 %v656_v43  ;;  %v650_v1 = vunpack.c.h.bf16 %v656_v43  ;;  %v645_v6 = vunpack.c.l.bf16 %v655_v61 }
  0x18   : > { %363 = vmatpush.bf16.msra.mxu0 %v634_v8  ;;  %661 = vmatpush.bf16.msra.mxu2 %v634_v8 }
  0x1c   : > { %364 = vmatpush.bf16.msra.mxu0 %v633_v11  ;;  %662 = vmatpush.bf16.msra.mxu2 %v633_v11 }
  0x20   : > { %365 = vmatpush.bf16.msra.mxu0 %v632_v12  ;;  %663 = vmatpush.bf16.msra.mxu2 %v632_v12 }
  0x21   : > { %617 = vmatmul.msk.bf16.gmra.mxu3 %vm347_vm0, %v570_v16 }
  0x24   : > { %366 = vmatpush.bf16.msra.mxu0 %v631_v15  ;;  %664 = vmatpush.bf16.msra.mxu2 %v631_v15 }
  0x28   : > { %367 = vmatpush.bf16.msra.mxu0 %v630_v17  ;;  %665 = vmatpush.bf16.msra.mxu2 %v630_v17  ;;  %v653_v17 = vunpack.c.l.bf16 %v657_v9 }
  0x2b   : > { %368 = vmatmul.bf16.vlgmr.msra.gmra.mxu0 %v550_v22  ;;  %378 = vmatmul.bf16.vlgmr.msra.gmra.mxu2 %v566_v23  ;;  %v646_v22 = vunpack.c.h.bf16 %v655_v61 }
  0x31   : > { %618 = vmatmul.msk.bf16.gmra.mxu3 %vm347_vm0, %v578_v26 }
  0x3b   : > { %373 = vmatmul.bf16.gmra.mxu0 %v558_v31  ;;  %383 = vmatmul.bf16.gmra.mxu2 %v574_v32  ;;  %v654_v31 = vunpack.c.h.bf16 %v657_v9 }
  0x8f   : > { %v398_v36 = vpop.f32.mrf.mxu1 }
  0x94   : > { %v403_v33 = vpop.f32.mrf.mxu3 }
  0x97   : > { %v400_v50 = vpop.f32.mrf.mxu1 }
  0x9c   : > { %v772_v34 = vpop.f32.mrf.mxu3 }
  0xa4   : > { %v408_v41 = vpop.f32.mrf.mxu3 }
  0xa8   : > { %v369_v38 = vpop.f32.mrf.mxu0 }
  0xa9   : > { %v370_v39 = vadd.f32 %v783_v35, %v369_v38 }
  0xab   : > { %v399_v42 = vadd.f32 %v398_v36, %v370_v39 }
  0xac   : > { %v410_v57 = vpop.f32.mrf.mxu3 }
  0xad   : > { %v434_v44 = vadd.f32 %v641_v40, %v399_v42 }
  0xae   : > { %v379_v45 = vpop.f32.mrf.mxu2 }
  0xaf   : > { %v442_v46 = vmax.f32 %v434_v44, 0.0  ;;  %v380_v47 = vadd.f32 %v783_v35, %v379_v45 }
  0xb0   : > { %v371_v49 = vpop.f32.mrf.mxu0 }
  0xb1   : > { %v450_v51 = vpack.c.bf16 %v442_v46, %v442_v46  ;;  %v409_v52 = vadd.f32 %v408_v41, %v380_v47  ;;  %v372_v53 = vadd.f32 %v783_v35, %v371_v49 }
  0xb3   : > { %459 = vst.msk [vmem:[%s792_s23] sm:$0xf] %vm458_vm1, %v450_v51  ;;  %v438_v55 = vadd.f32 %v649_v48, %v409_v52  ;;  %v401_v56 = vadd.f32 %v400_v50, %v372_v53 }
  0xb4   : > { %v413_v12 = vpop.f32.mrf.mxu3 }
  0xb5   : > { %v446_v58 = vmax.f32 %v438_v55, 0.0  ;;  %v435_v59 = vadd.f32 %v642_v54, %v401_v56 }
  0xb6   : > { %v381_v60 = vpop.f32.mrf.mxu2 }
  0xb7   : > { %v454_v62 = vpack.c.bf16 %v446_v58, %v446_v58  ;;  %v443_v63 = vmax.f32 %v435_v59, 0.0  ;;  %v382_v0 = vadd.f32 %v783_v35, %v381_v60 }
  0xb8   : > { %v374_v2 = vpop.f32.mrf.mxu0 }
  0xb9   : > { %463 = vst.msk [vmem:[%s792_s23 + $0x10] sm:$0xf] %vm458_vm1, %v454_v62  ;;  %v451_v3 = vpack.c.bf16 %v443_v63, %v443_v63  ;;  %v411_v4 = vadd.f32 %v410_v57, %v382_v0  ;;  %v375_v5 = vadd.f32 %v783_v35, %v374_v2 }
  0xbb   : > { %460 = vst.msk [vmem:[%s792_s23 + $0x4] sm:$0xf] %vm458_vm1, %v451_v3  ;;  %v439_v7 = vadd.f32 %v650_v1, %v411_v4  ;;  %v404_v8 = vadd.f32 %v403_v33, %v375_v5 }
  0xbc   : > { %v415_v32 = vpop.f32.mrf.mxu3 }
  0xbd   : > { %v447_v10 = vmax.f32 %v439_v7, 0.0  ;;  %v436_v11 = vadd.f32 %v645_v6, %v404_v8 }
  0xbe   : > { %v384_v13 = vpop.f32.mrf.mxu2 }
  0xbf   : > { %v455_v14 = vpack.c.bf16 %v447_v10, %v447_v10  ;;  %v444_v15 = vmax.f32 %v436_v11, 0.0  ;;  %v385_v16 = vadd.f32 %v783_v35, %v384_v13 }
  0xc0   : > { %v376_v18 = vpop.f32.mrf.mxu0 }
  0xc1   : > { %464 = vst.msk [vmem:[%s792_s23 + $0x14] sm:$0xf] %vm458_vm1, %v455_v14  ;;  %v452_v19 = vpack.c.bf16 %v444_v15, %v444_v15  ;;  %v414_v20 = vadd.f32 %v413_v12, %v385_v16  ;;  %v377_v21 = vadd.f32 %v783_v35, %v376_v18 }
  0xc3   : > { %461 = vst.msk [vmem:[%s792_s23 + $0x8] sm:$0xf] %vm458_vm1, %v452_v19  ;;  %v440_v23 = vadd.f32 %v653_v17, %v414_v20  ;;  %v406_v24 = vadd.f32 %v772_v34, %v377_v21 }
  0xc5   : > { %v448_v25 = vmax.f32 %v440_v23, 0.0  ;;  %v437_v26 = vadd.f32 %v646_v22, %v406_v24 }
  0xc6   : > { %v386_v27 = vpop.f32.mrf.mxu2 }
  0xc7   : > { %v456_v28 = vpack.c.bf16 %v448_v25, %v448_v25  ;;  %v445_v29 = vmax.f32 %v437_v26, 0.0  ;;  %v387_v30 = vadd.f32 %v783_v35, %v386_v27 }
  0xc9   : > { %465 = vst.msk [vmem:[%s792_s23 + $0x18] sm:$0xf] %vm458_vm1, %v456_v28  ;;  %v453_v33 = vpack.c.bf16 %v445_v29, %v445_v29  ;;  %v416_v36 = vadd.f32 %v415_v32, %v387_v30 }
  0xcb   : > { %462 = vst.msk [vmem:[%s792_s23 + $0xc] sm:$0xf] %vm458_vm1, %v453_v33  ;;  %v441_v37 = vadd.f32 %v654_v31, %v416_v36 }
  0xcd   : > { %v449_v38 = vmax.f32 %v441_v37, 0.0 }
  0xcf   : > { %v457_v39 = vpack.c.bf16 %v449_v38, %v449_v38 }
  0xd1   : > { %466 = vst.msk [vmem:[%s792_s23 + $0x1c] sm:$0xf] %vm458_vm1, %v457_v39 }
  0xd2 PF: > { %s14_s15 = sadd.s32 1, %s682_s15  }
  0xd3   : > { %p11_p4 = scmp.ge.s32.totalorder %s14_s15, 4  }
  0xd5   :  { %13 = sbr.rel (!%p11_p4) target bundleno = 1 (0x1), region = 69 }

// kernel: flexible_resunet_forward.24
= control target key start
LH: loop header
LB: loop body
LE: loop exit
PB: predicated region body
PF: predicated region fallthrough
CT: control target
= control target key end

     0   :  { %s466_s12 = smov 0   ;;  %s517_s0 = inlined_call_operand.vmem [shape: bf16[32,144], index: 0, kind: input, shape index: {}]   ;;  %s518_s1 = inlined_call_operand.vmem [shape: bf16[144,32], index: 1, kind: input, shape index: {}]   ;;  %s519_s2 = inlined_call_operand.vmem [shape: f32[1,32], index: 2, kind: input, shape index: {}]   ;;  %s520_s3 = inlined_call_operand.vmem [shape: bf16[32,32], index: 3, kind: output, shape index: {}]  }
   0x1 LB: > { %s360_s13 = sadd.s32 4294967295, %s444_s12   ;;  %p364_p0 = scmp.ge.s32.totalorder %s444_s12, 1  ;;  %s444_s12 = sphi %s466_s12, %s13_s12  }
   0x2   : > { %p139_p1 = scmp.lt.s32.totalorder %s444_s12, 3 }
   0x4   : > { %p140_p2 = pnand %p364_p0, %p139_p1 }
   0x5   : > { %s365_s16 = sshll.u32 (!%p140_p2), %s360_s13, 1 }
   0x6   : > { %143 = sbr.rel (%p140_p2) target bundleno = 186 (0xba), region = 32  ;;  %p165_p3 = scmp.lt.s32.totalorder (!%p140_p2), %s365_s16, 3 }
   0xb   : > { %v427_v0 = vld [vmem:[%s518_s1 + $0x38] sm:$0xff]  ;;  %v426_v1 = vld [vmem:[%s518_s1 + $0x30] sm:$0xff]  ;;  %v428_v2 = vld [vmem:[%s518_s1 + $0x40] sm:$0xff]  ;;  %s522_s16 = smov (!%p165_p3, %s365_s16), 3  ;;  %vm265_vm0 = vcmask 130048   ;;  %vm301_vm1 = vcmask 257024  }
   0xc   : > { %269 = vmatpush.bf16.msra.mxu0 %v427_v0  ;;  %290 = vmatpush.bf16.msra.mxu1 %v428_v2  ;;  %s417_s21 = sshll.u32 %s522_s16, 3  ;;  %v425_v3 = vld [vmem:[%s518_s1 + $0x28] sm:$0xff]  ;;  %v424_v7 = vld [vmem:[%s518_s1 + $0x20] sm:$0xff]  ;;  %v423_v8 = vld [vmem:[%s518_s1 + $0x18] sm:$0xff]  ;;  %s369_s13 = sshll.u32 %s522_s16, 2 }
   0xd   : > { %s169_s26 = scalar_lea.vmem %s517_s0, %s417_s21  ;;  %v422_v9 = vld [vmem:[%s518_s1 + $0x10] sm:$0xff]  ;;  %v421_v10 = vld [vmem:[%s518_s1 + $0x8] sm:$0xff]  ;;  %v420_v11 = vld [vmem:[%s518_s1] sm:$0xff]  ;;  %s175_s17 = scalar_lea.vmem %s520_s3, %s369_s13 }
   0xe   : > { %v418_v4 = vld [vmem:[%s169_s26 + $0x4] sm:$0xf]  ;;  %v374_v5 = vld [vmem:[%s169_s26 + $0x8] sm:$0xf0]  ;;  %v372_v12 = vld [vmem:[%s169_s26] sm:$0xf] }
   0xf   : > { %v377_v6 = vor.u32 %v418_v4, %v374_v5  ;;  %v419_v13 = vld [vmem:[%s169_s26 + $0x4] sm:$0xf0]  ;;  %v437_v15 = vld [vmem:[%s519_s2] ss:$0 sm:$0xff] }
  0x10   : > { %270 = vmatpush.bf16.msra.mxu0 %v426_v1  ;;  %v373_v14 = vor.u32 %v419_v13, %v372_v12 }
  0x11   : > { %414 = vmatmul.msk.bf16.vlgmr.msra.gmra.mxu1 %vm265_vm0, %v377_v6 }
  0x14   : > { %271 = vmatpush.bf16.msra.mxu0 %v425_v3 }
  0x18   : > { %272 = vmatpush.bf16.msra.mxu0 %v424_v7 }
  0x1c   : > { %273 = vmatpush.bf16.msra.mxu0 %v423_v8 }
  0x20   : > { %274 = vmatpush.bf16.msra.mxu0 %v422_v9 }
  0x24   : > { %275 = vmatpush.bf16.msra.mxu0 %v421_v10 }
  0x28   : > { %276 = vmatpush.bf16.msra.mxu0 %v420_v11 }
  0x2b   : > { %277 = vmatmul.bf16.vlgmr.msra.gmra.mxu0 %v373_v14 }
  0x8e   : > { %v292_v16 = vpop.f32.mrf.mxu1 }
  0x96   : > { %v294_v24 = vpop.f32.mrf.mxu1 }
  0xa8   : > { %v278_v17 = vpop.f32.mrf.mxu0 }
  0xa9   : > { %v279_v18 = vadd.f32 %v437_v15, %v278_v17 }
  0xab   : > { %v293_v19 = vadd.f32 %v292_v16, %v279_v18 }
  0xad   : > { %v297_v20 = vmax.f32 %v293_v19, 0.0 }
  0xaf   : > { %v299_v21 = vpack.c.bf16 %v297_v20, %v297_v20 }
  0xb0   : > { %v280_v22 = vpop.f32.mrf.mxu0 }
  0xb1   : > { %302 = vst.msk [vmem:[%s175_s17] sm:$0xf] %vm301_vm1, %v299_v21  ;;  %v281_v23 = vadd.f32 %v437_v15, %v280_v22 }
  0xb3   : > { %v295_v25 = vadd.f32 %v294_v24, %v281_v23 }
  0xb5   : > { %v298_v26 = vmax.f32 %v295_v25, 0.0 }
  0xb7   : > { %v300_v27 = vpack.c.bf16 %v298_v26, %v298_v26 }
  0xb9   : > { %303 = vst.msk [vmem:[%s175_s17 + $0x4] sm:$0xf] %vm301_vm1, %v300_v27 }
  0xba PF: > { %s13_s12 = sadd.s32 1, %s444_s12  }
  0xbb   : > { %p10_p4 = scmp.ge.s32.totalorder %s13_s12, 4  }
  0xbd   :  { %12 = sbr.rel (!%p10_p4) target bundleno = 1 (0x1), region = 62 }

// kernel: flexible_resunet_forward.25
= control target key start
LH: loop header
LB: loop body
LE: loop exit
PB: predicated region body
PF: predicated region fallthrough
CT: control target
= control target key end

     0   :  { %s332_s12 = smov 0   ;;  %s355_s0 = inlined_call_operand.vmem [shape: bf16[32,16], index: 0, kind: input, shape index: {}]   ;;  %s356_s1 = inlined_call_operand.vmem [shape: bf16[16,32], index: 1, kind: input, shape index: {}]   ;;  %s357_s2 = inlined_call_operand.vmem [shape: f32[1,32], index: 2, kind: input, shape index: {}]   ;;  %s358_s3 = inlined_call_operand.vmem [shape: bf16[32,32], index: 3, kind: output, shape index: {}]  }
   0x1 LB: > { %s273_s13 = sadd.s32 4294967295, %s310_s12   ;;  %p277_p0 = scmp.ge.s32.totalorder %s310_s12, 1  ;;  %s310_s12 = sphi %s332_s12, %s13_s12  }
   0x2   : > { %p138_p1 = scmp.lt.s32.totalorder %s310_s12, 3 }
   0x4   : > { %p139_p2 = pnand %p277_p0, %p138_p1 }
   0x5   : > { %s278_s16 = sshll.u32 (!%p139_p2), %s273_s13, 1 }
   0x6   : > { %142 = sbr.rel (%p139_p2) target bundleno = 154 (0x9a), region = 32  ;;  %p163_p3 = scmp.lt.s32.totalorder (!%p139_p2), %s278_s16, 3 }
   0xb   : > { %v294_v0 = vld [vmem:[%s356_s1] sm:$0xff]  ;;  %s360_s16 = smov (!%p163_p3, %s278_s16), 3  ;;  %vm194_vm0 = vcmask 130048   ;;  %vm214_vm1 = vcmask 257024  }
   0xc   : > { %205 = vmatpush.bf16.msra.mxu0 %v294_v0  ;;  %s279_s17 = sshll.u32 %s360_s16, 2  ;;  %v303_v2 = vld [vmem:[%s357_s2] ss:$0 sm:$0xff] }
   0xd   : > { %s166_s20 = scalar_lea.vmem %s355_s0, %s279_s17  ;;  %s172_s25 = scalar_lea.vmem %s358_s3, %s279_s17 }
   0xe   : > { %v293_v1 = vld [vmem:[%s166_s20] sm:$0xff] }
   0xf   : > { %290 = vmatmul.msk.bf16.vlgmr.msra.gmra.mxu0 %vm194_vm0, %v293_v1 }
  0x8c   : > { %v207_v3 = vpop.f32.mrf.mxu0 }
  0x8d   : > { %v208_v4 = vadd.f32 %v303_v2, %v207_v3 }
  0x8f   : > { %v212_v5 = vpack.c.bf16 %v208_v4, %v208_v4 }
  0x91   : > { %215 = vst.msk [vmem:[%s172_s25] sm:$0xf] %vm214_vm1, %v212_v5 }
  0x94   : > { %v209_v6 = vpop.f32.mrf.mxu0 }
  0x95   : > { %v210_v7 = vadd.f32 %v303_v2, %v209_v6 }
  0x97   : > { %v213_v8 = vpack.c.bf16 %v210_v7, %v210_v7 }
  0x99   : > { %216 = vst.msk [vmem:[%s172_s25 + $0x4] sm:$0xf] %vm214_vm1, %v213_v8 }
  0x9a PF: > { %s13_s12 = sadd.s32 1, %s310_s12  }
  0x9b   : > { %p10_p4 = scmp.ge.s32.totalorder %s13_s12, 4  }
  0x9d   :  { %12 = sbr.rel (!%p10_p4) target bundleno = 1 (0x1), region = 62 }

// kernel: flexible_resunet_forward.27
= control target key start
LH: loop header
LB: loop body
LE: loop exit
PB: predicated region body
PF: predicated region fallthrough
CT: control target
= control target key end

     0   :  { %s345_s12 = smov 0   ;;  %s371_s0 = inlined_call_operand.vmem [shape: bf16[32,32], index: 0, kind: input, shape index: {}]   ;;  %s372_s1 = inlined_call_operand.vmem [shape: bf16[32,64], index: 1, kind: input, shape index: {}]   ;;  %s373_s2 = inlined_call_operand.vmem [shape: f32[1,64], index: 2, kind: input, shape index: {}]   ;;  %s374_s3 = inlined_call_operand.vmem [shape: bf16[32,64], index: 3, kind: output, shape index: {}]  }
   0x1 LB: > { %s281_s13 = sadd.s32 4294967295, %s323_s12   ;;  %p285_p0 = scmp.ge.s32.totalorder %s323_s12, 1  ;;  %s323_s12 = sphi %s345_s12, %s13_s12  }
   0x2   : > { %p138_p1 = scmp.lt.s32.totalorder %s323_s12, 3 }
   0x4   : > { %p139_p2 = pnand %p285_p0, %p138_p1 }
   0x5   : > { %s286_s16 = sshll.u32 (!%p139_p2), %s281_s13, 1 }
   0x6   : > { %142 = sbr.rel (%p139_p2) target bundleno = 158 (0x9e), region = 32  ;;  %p163_p3 = scmp.lt.s32.totalorder (!%p139_p2), %s286_s16, 3 }
   0xb   : > { %v307_v0 = vld [vmem:[%s372_s1 + $0x8] sm:$0xff]  ;;  %v306_v1 = vld [vmem:[%s372_s1] sm:$0xff]  ;;  %s376_s16 = smov (!%p163_p3, %s286_s16), 3  ;;  %vm202_vm0 = vcmask 261120   ;;  %vm222_vm1 = vcmask 519168  }
   0xc   : > { %212 = vmatpush.bf16.msra.mxu0 %v307_v0  ;;  %s287_s19 = sshll.u32 %s376_s16, 2  ;;  %v316_v3 = vld [vmem:[%s373_s2] ss:$0 sm:$0xff] }
   0xd   : > { %s166_s22 = scalar_lea.vmem %s371_s0, %s287_s19  ;;  %s172_s27 = scalar_lea.vmem %s374_s3, %s287_s19 }
   0xe   : > { %v305_v2 = vld [vmem:[%s166_s22] sm:$0xff] }
  0x10   : > { %213 = vmatpush.bf16.msra.mxu0 %v306_v1 }
  0x13   : > { %302 = vmatmul.msk.bf16.vlgmr.msra.gmra.mxu0 %vm202_vm0, %v305_v2 }
  0x90   : > { %v215_v4 = vpop.f32.mrf.mxu0 }
  0x91   : > { %v216_v5 = vadd.f32 %v316_v3, %v215_v4 }
  0x93   : > { %v220_v6 = vpack.c.bf16 %v216_v5, %v216_v5 }
  0x95   : > { %223 = vst.msk [vmem:[%s172_s27] sm:$0xf] %vm222_vm1, %v220_v6 }
  0x98   : > { %v217_v7 = vpop.f32.mrf.mxu0 }
  0x99   : > { %v218_v8 = vadd.f32 %v316_v3, %v217_v7 }
  0x9b   : > { %v221_v9 = vpack.c.bf16 %v218_v8, %v218_v8 }
  0x9d   : > { %224 = vst.msk [vmem:[%s172_s27 + $0x4] sm:$0xf] %vm222_vm1, %v221_v9 }
  0x9e PF: > { %s13_s12 = sadd.s32 1, %s323_s12  }
  0x9f   : > { %p10_p4 = scmp.ge.s32.totalorder %s13_s12, 4  }
  0xa1   :  { %12 = sbr.rel (!%p10_p4) target bundleno = 1 (0x1), region = 62 }

// kernel: flexible_resunet_forward.26
= control target key start
LH: loop header
LB: loop body
LE: loop exit
PB: predicated region body
PF: predicated region fallthrough
CT: control target
= control target key end

     0   :  { %s687_s15 = smov 0   ;;  %s768_s0 = inlined_call_operand.vmem [shape: bf16[32,288], index: 0, kind: input, shape index: {}]   ;;  %s769_s1 = inlined_call_operand.vmem [shape: bf16[288,32], index: 1, kind: input, shape index: {}]   ;;  %s770_s2 = inlined_call_operand.vmem [shape: f32[1,32], index: 2, kind: input, shape index: {}]   ;;  %s771_s3 = inlined_call_operand.vmem [shape: bf16[32,32], index: 3, kind: input, shape index: {}]   ;;  %s772_s4 = inlined_call_operand.vmem [shape: bf16[32,32], index: 4, kind: output, shape index: {}]  }
   0x1 LB: > { %s521_s16 = sadd.s32 4294967295, %s660_s15   ;;  %p525_p0 = scmp.ge.s32.totalorder %s660_s15, 1  ;;  %s660_s15 = sphi %s687_s15, %s14_s15  }
   0x2   : > { %p175_p1 = scmp.lt.s32.totalorder %s660_s15, 3 }
   0x4   : > { %p176_p2 = pnand %p525_p0, %p175_p1 }
   0x5   : > { %s526_s21 = sshll.u32 (!%p176_p2), %s521_s16, 1 }
   0x6   : > { %179 = sbr.rel (%p176_p2) target bundleno = 190 (0xbe), region = 36  ;;  %p208_p3 = scmp.lt.s32.totalorder (!%p176_p2), %s526_s21, 3 }
   0xb   : > { %v629_v0 = vld [vmem:[%s769_s1 + $0x38] sm:$0xff]  ;;  %v628_v2 = vld [vmem:[%s769_s1 + $0x30] sm:$0xff]  ;;  %v639_v4 = vld [vmem:[%s769_s1 + $0x88] sm:$0xff]  ;;  %s774_s21 = smov (!%p208_p3, %s526_s21), 3  ;;  %vm394_vm0 = vcmask 261120   ;;  %vm450_vm1 = vcmask 257024  }
   0xc   : > { %v637_v1 = vld [vmem:[%s769_s1 + $0x78] sm:$0xff]  ;;  %398 = vmatpush.bf16.msra.mxu0 %v629_v0  ;;  %v636_v3 = vld [vmem:[%s769_s1 + $0x70] sm:$0xff]  ;;  %432 = vmatpush.bf16.msra.mxu2 %v639_v4  ;;  %v638_v5 = vld [vmem:[%s769_s1 + $0x80] sm:$0xff]  ;;  %s644_s30 = smul.u32 12, %s774_s21  ;;  %s529_s8 = sshll.u32 %s774_s21, 2 }
   0xd   : > { %412 = vmatpush.bf16.msra.mxu1 %v637_v1  ;;  %v627_v6 = vld [vmem:[%s769_s1 + $0x28] sm:$0xff]  ;;  %v626_v11 = vld [vmem:[%s769_s1 + $0x20] sm:$0xff]  ;;  %v625_v13 = vld [vmem:[%s769_s1 + $0x18] sm:$0xff]  ;;  %s218_s14 = scalar_lea.vmem %s771_s3, %s529_s8  ;;  %s224_s16 = scalar_lea.vmem %s772_s4, %s529_s8 }
   0xe   : > { %v635_v7 = vld [vmem:[%s769_s1 + $0x68] sm:$0xff]  ;;  %s212_s11 = scalar_lea.vmem %s768_s0, %s644_s30  ;;  %v634_v12 = vld [vmem:[%s769_s1 + $0x60] sm:$0xff]  ;;  %v633_v14 = vld [vmem:[%s769_s1 + $0x58] sm:$0xff] }
   0xf   : > { %v542_v8 = vld [vmem:[%s212_s11 + $0x8] sm:$0xf]  ;;  %v621_v9 = vld [vmem:[%s212_s11 + $0x10] sm:$0xf0]  ;;  %v622_v19 = vld [vmem:[%s769_s1] sm:$0xff] }
  0x10   : > { %399 = vmatpush.bf16.msra.mxu0 %v628_v2  ;;  %433 = vmatpush.bf16.msra.mxu2 %v638_v5  ;;  %v543_v10 = vor.u32 %v621_v9, %v542_v8  ;;  %v624_v15 = vld [vmem:[%s769_s1 + $0x10] sm:$0xff]  ;;  %v623_v17 = vld [vmem:[%s769_s1 + $0x8] sm:$0xff]  ;;  %v630_v20 = vld [vmem:[%s769_s1 + $0x40] sm:$0xff] }
  0x11   : > { %413 = vmatpush.bf16.msra.mxu1 %v636_v3  ;;  %v632_v16 = vld [vmem:[%s769_s1 + $0x50] sm:$0xff]  ;;  %v631_v18 = vld [vmem:[%s769_s1 + $0x48] sm:$0xff]  ;;  %v534_v21 = vld [vmem:[%s212_s11] sm:$0xf] }
  0x12   : > { %v620_v22 = vld [vmem:[%s212_s11 + $0x8] sm:$0xf0]  ;;  %v619_v23 = vld [vmem:[%s212_s11 + $0x4] sm:$0xf]  ;;  %v536_v24 = vld [vmem:[%s212_s11 + $0xc] sm:$0xf0] }
  0x13   : > { %616 = vmatmul.msk.bf16.vlgmr.msra.gmra.mxu2 %vm394_vm0, %v543_v10  ;;  %v535_v25 = vor.u32 %v620_v22, %v534_v21  ;;  %v539_v26 = vor.u32 %v619_v23, %v536_v24  ;;  %v653_v27 = vld [vmem:[%s770_s2] ss:$0 sm:$0xff] }
  0x14   : > { %400 = vmatpush.bf16.msra.mxu0 %v627_v6  ;;  %v641_v30 = vld [vmem:[%s218_s14] sm:$0xff]  }
  0x15   : > { %414 = vmatpush.bf16.msra.mxu1 %v635_v7  ;;  %v642_v34 = vunpack.c.l.bf16 %v641_v30  ;;  %v643_v43 = vunpack.c.h.bf16 %v641_v30 }
  0x18   : > { %401 = vmatpush.bf16.msra.mxu0 %v626_v11 }
  0x19   : > { %415 = vmatpush.bf16.msra.mxu1 %v634_v12 }
  0x1c   : > { %402 = vmatpush.bf16.msra.mxu0 %v625_v13 }
  0x1d   : > { %416 = vmatpush.bf16.msra.mxu1 %v633_v14 }
  0x20   : > { %403 = vmatpush.bf16.msra.mxu0 %v624_v15 }
  0x21   : > { %417 = vmatpush.bf16.msra.mxu1 %v632_v16 }
  0x24   : > { %404 = vmatpush.bf16.msra.mxu0 %v623_v17 }
  0x25   : > { %418 = vmatpush.bf16.msra.mxu1 %v631_v18 }
  0x28   : > { %405 = vmatpush.bf16.msra.mxu0 %v622_v19 }
  0x29   : > { %419 = vmatpush.bf16.msra.mxu1 %v630_v20 }
  0x2b   : > { %406 = vmatmul.bf16.vlgmr.msra.gmra.mxu0 %v535_v25 }
  0x2c   : > { %420 = vmatmul.bf16.vlgmr.msra.gmra.mxu1 %v539_v26 }
  0x96   : > { %v435_v32 = vpop.f32.mrf.mxu2 }
  0x9e   : > { %v437_v44 = vpop.f32.mrf.mxu2 }
  0xa8   : > { %v407_v28 = vpop.f32.mrf.mxu0 }
  0xa9   : > { %v421_v29 = vpop.f32.mrf.mxu1  ;;  %v408_v31 = vadd.f32 %v653_v27, %v407_v28 }
  0xab   : > { %v422_v33 = vadd.f32 %v421_v29, %v408_v31 }
  0xad   : > { %v436_v35 = vadd.f32 %v435_v32, %v422_v33 }
  0xaf   : > { %v444_v36 = vadd.f32 %v642_v34, %v436_v35 }
  0xb0   : > { %v409_v37 = vpop.f32.mrf.mxu0 }
  0xb1   : > { %v446_v38 = vmax.f32 %v444_v36, 0.0  ;;  %v410_v39 = vadd.f32 %v653_v27, %v409_v37  ;;  %v423_v40 = vpop.f32.mrf.mxu1 }
  0xb3   : > { %v448_v41 = vpack.c.bf16 %v446_v38, %v446_v38  ;;  %v424_v42 = vadd.f32 %v423_v40, %v410_v39 }
  0xb5   : > { %451 = vst.msk [vmem:[%s224_s16] sm:$0xf] %vm450_vm1, %v448_v41  ;;  %v438_v45 = vadd.f32 %v437_v44, %v424_v42 }
  0xb7   : > { %v445_v46 = vadd.f32 %v643_v43, %v438_v45 }
  0xb9   : > { %v447_v47 = vmax.f32 %v445_v46, 0.0 }
  0xbb   : > { %v449_v48 = vpack.c.bf16 %v447_v47, %v447_v47 }
  0xbd   : > { %452 = vst.msk [vmem:[%s224_s16 + $0x4] sm:$0xf] %vm450_vm1, %v449_v48 }
  0xbe PF: > { %s14_s15 = sadd.s32 1, %s660_s15  }
  0xbf   : > { %p11_p4 = scmp.ge.s32.totalorder %s14_s15, 4  }
  0xc1   :  { %13 = sbr.rel (!%p11_p4) target bundleno = 1 (0x1), region = 69 }

// kernel: flexible_resunet_forward.29
= control target key start
LH: loop header
LB: loop body
LE: loop exit
PB: predicated region body
PF: predicated region fallthrough
CT: control target
= control target key end

     0   :  { %s623_s18 = smov 0   ;;  %s678_s0 = inlined_call_operand.vmem [shape: bf16[128,16], index: 0, kind: input, shape index: {}]   ;;  %s679_s1 = inlined_call_operand.vmem [shape: bf16[16,16], index: 1, kind: input, shape index: {}]   ;;  %s680_s2 = inlined_call_operand.vmem [shape: bf16[128,16], index: 2, kind: input, shape index: {}]   ;;  %s681_s3 = inlined_call_operand.vmem [shape: bf16[16,16], index: 3, kind: input, shape index: {}]   ;;  %s682_s4 = inlined_call_operand.vmem [shape: f32[1,16], index: 4, kind: input, shape index: {}]   ;;  %s683_s5 = inlined_call_operand.vmem [shape: bf16[128,16], index: 5, kind: output, shape index: {}]  }
   0x1 LB: > { %s503_s19 = sadd.s32 4294967295, %s591_s18   ;;  %p507_p0 = scmp.ge.s32.totalorder %s591_s18, 1  ;;  %s591_s18 = sphi %s623_s18, %s15_s18  }
   0x2   : > { %p199_p1 = scmp.lt.s32.totalorder %s591_s18, 3 }
   0x4   : > { %p200_p2 = pnand %p507_p0, %p199_p1 }
   0x5   : > { %s508_s24 = sshll.u32 (!%p200_p2), %s503_s19, 3 }
   0x6   : > { %203 = sbr.rel (%p200_p2) target bundleno = 179 (0xb3), region = 40  ;;  %p233_p3 = scmp.lt.s32.totalorder (!%p200_p2), %s508_s24, 15 }
   0xb   : > { %v573_v0 = vld [vmem:[%s681_s3] sm:$0xff]  ;;  %s685_s24 = smov (!%p233_p3, %s508_s24), 15  ;;  %vm297_vm0 = vcmask 130048   ;;  %vm426_vm1 = vcmask 125952  }
   0xc   : > { %v568_v1 = vld [vmem:[%s679_s1] sm:$0xff]  ;;  %317 = vmatpush.bf16.msra.mxu0 %v573_v0  ;;  %574 = vmatpush.bf16.msra.mxu2 %v573_v0  ;;  %s509_s25 = sshll.u32 %s685_s24, 2 }
   0xd   : > { %384 = vmatpush.bf16.msra.mxu1 %v568_v1  ;;  %575 = vmatpush.bf16.msra.mxu3 %v568_v1  ;;  %s242_s28 = scalar_lea.vmem %s680_s2, %s509_s25  ;;  %s236_s6 = scalar_lea.vmem %s678_s0, %s509_s25  ;;  %v584_v11 = vld [vmem:[%s682_s4] ss:$0 sm:$0xff] }
   0xe   : > { %v569_v2 = vld [vmem:[%s242_s28] sm:$0xff]  ;;  %v571_v3 = vld [vmem:[%s242_s28 + $0x10] sm:$0xff]  ;;  %v570_v6 = vld [vmem:[%s242_s28 + $0x8] sm:$0xff]  ;;  %s657_s11 = scalar_lea.vmem %s683_s5, %s509_s25 }
   0xf   : > { %v564_v4 = vld [vmem:[%s236_s6] sm:$0xff]  ;;  %v566_v5 = vld [vmem:[%s236_s6 + $0x10] sm:$0xff]  ;;  %534 = vmatmul.msk.bf16.vlgmr.msra.gmra.mxu0 %vm297_vm0, %v569_v2  ;;  %536 = vmatmul.msk.bf16.vlgmr.msra.gmra.mxu2 %vm297_vm0, %v571_v3  ;;  %v572_v7 = vld [vmem:[%s242_s28 + $0x18] sm:$0xff] }
  0x10   : > { %558 = vmatmul.msk.bf16.vlgmr.msra.gmra.mxu1 %vm297_vm0, %v564_v4  ;;  %560 = vmatmul.msk.bf16.vlgmr.msra.gmra.mxu3 %vm297_vm0, %v566_v5  ;;  %v565_v8 = vld [vmem:[%s236_s6 + $0x8] sm:$0xff]  ;;  %v567_v9 = vld [vmem:[%s236_s6 + $0x18] sm:$0xff] }
  0x1f   : > { %535 = vmatmul.msk.bf16.gmra.mxu0 %vm297_vm0, %v570_v6  ;;  %537 = vmatmul.msk.bf16.gmra.mxu2 %vm297_vm0, %v572_v7 }
  0x20   : > { %559 = vmatmul.msk.bf16.gmra.mxu1 %vm297_vm0, %v565_v8  ;;  %561 = vmatmul.msk.bf16.gmra.mxu3 %vm297_vm0, %v567_v9 }
  0x8c   : > { %v319_v10 = vpop.f32.mrf.mxu0 }
  0x8d   : > { %v386_v12 = vpop.f32.mrf.mxu1 }
  0x8e   : > { %v387_v13 = vadd.f32 %v386_v12, %v319_v10 }
  0x90   : > { %v410_v14 = vadd.f32 %v584_v11, %v387_v13 }
  0x92   : > { %v418_v15 = vpack.c.bf16 %v410_v14, %v410_v14  ;;  %v329_v16 = vpop.f32.mrf.mxu2 }
  0x93   : > { %v396_v17 = vpop.f32.mrf.mxu3 }
  0x94   : > { %427 = vst.msk [vmem:[%s657_s11] sm:$0xf] %vm426_vm1, %v418_v15  ;;  %v397_v18 = vadd.f32 %v396_v17, %v329_v16  ;;  %v321_v19 = vpop.f32.mrf.mxu0 }
  0x95   : > { %v388_v20 = vpop.f32.mrf.mxu1 }
  0x96   : > { %v414_v21 = vadd.f32 %v584_v11, %v397_v18  ;;  %v389_v22 = vadd.f32 %v388_v20, %v321_v19 }
  0x98   : > { %v422_v23 = vpack.c.bf16 %v414_v21, %v414_v21  ;;  %v411_v24 = vadd.f32 %v584_v11, %v389_v22 }
  0x9a   : > { %431 = vst.msk [vmem:[%s657_s11 + $0x10] sm:$0xf] %vm426_vm1, %v422_v23  ;;  %v419_v25 = vpack.c.bf16 %v411_v24, %v411_v24  ;;  %v331_v26 = vpop.f32.mrf.mxu2 }
  0x9b   : > { %v398_v27 = vpop.f32.mrf.mxu3 }
  0x9c   : > { %428 = vst.msk [vmem:[%s657_s11 + $0x4] sm:$0xf] %vm426_vm1, %v419_v25  ;;  %v399_v28 = vadd.f32 %v398_v27, %v331_v26  ;;  %v324_v29 = vpop.f32.mrf.mxu0 }
  0x9d   : > { %v391_v30 = vpop.f32.mrf.mxu1 }
  0x9e   : > { %v415_v31 = vadd.f32 %v584_v11, %v399_v28  ;;  %v392_v32 = vadd.f32 %v391_v30, %v324_v29 }
  0xa0   : > { %v423_v33 = vpack.c.bf16 %v415_v31, %v415_v31  ;;  %v412_v34 = vadd.f32 %v584_v11, %v392_v32 }
  0xa2   : > { %432 = vst.msk [vmem:[%s657_s11 + $0x14] sm:$0xf] %vm426_vm1, %v423_v33  ;;  %v420_v35 = vpack.c.bf16 %v412_v34, %v412_v34  ;;  %v334_v36 = vpop.f32.mrf.mxu2 }
  0xa3   : > { %v401_v37 = vpop.f32.mrf.mxu3 }
  0xa4   : > { %429 = vst.msk [vmem:[%s657_s11 + $0x8] sm:$0xf] %vm426_vm1, %v420_v35  ;;  %v402_v38 = vadd.f32 %v401_v37, %v334_v36  ;;  %v326_v39 = vpop.f32.mrf.mxu0 }
  0xa5   : > { %v393_v40 = vpop.f32.mrf.mxu1 }
  0xa6   : > { %v416_v41 = vadd.f32 %v584_v11, %v402_v38  ;;  %v394_v42 = vadd.f32 %v393_v40, %v326_v39 }
  0xa8   : > { %v424_v43 = vpack.c.bf16 %v416_v41, %v416_v41  ;;  %v413_v44 = vadd.f32 %v584_v11, %v394_v42 }
  0xaa   : > { %433 = vst.msk [vmem:[%s657_s11 + $0x18] sm:$0xf] %vm426_vm1, %v424_v43  ;;  %v421_v45 = vpack.c.bf16 %v413_v44, %v413_v44  ;;  %v336_v46 = vpop.f32.mrf.mxu2 }
  0xab   : > { %v403_v47 = vpop.f32.mrf.mxu3 }
  0xac   : > { %430 = vst.msk [vmem:[%s657_s11 + $0xc] sm:$0xf] %vm426_vm1, %v421_v45  ;;  %v404_v48 = vadd.f32 %v403_v47, %v336_v46 }
  0xae   : > { %v417_v49 = vadd.f32 %v584_v11, %v404_v48 }
  0xb0   : > { %v425_v50 = vpack.c.bf16 %v417_v49, %v417_v49 }
  0xb2   : > { %434 = vst.msk [vmem:[%s657_s11 + $0x1c] sm:$0xf] %vm426_vm1, %v425_v50 }
  0xb3 PF: > { %s15_s18 = sadd.s32 1, %s591_s18  }
  0xb4   : > { %p12_p4 = scmp.ge.s32.totalorder %s15_s18, 4  }
  0xb6   :  { %14 = sbr.rel (!%p12_p4) target bundleno = 1 (0x1), region = 73 }

// kernel: flexible_resunet_forward.28
= control target key start
LH: loop header
LB: loop body
LE: loop exit
PB: predicated region body
PF: predicated region fallthrough
CT: control target
= control target key end

     0   :  { %s977_s18 = smov 0   ;;  %s1130_s0 = inlined_call_operand.vmem [shape: bf16[128,144], index: 0, kind: input, shape index: {}]   ;;  %s1131_s1 = inlined_call_operand.vmem [shape: bf16[144,16], index: 1, kind: input, shape index: {}]   ;;  %s1132_s2 = inlined_call_operand.vmem [shape: bf16[128,144], index: 2, kind: input, shape index: {}]   ;;  %s1133_s3 = inlined_call_operand.vmem [shape: bf16[144,16], index: 3, kind: input, shape index: {}]   ;;  %s1134_s4 = inlined_call_operand.vmem [shape: f32[1,16], index: 4, kind: input, shape index: {}]   ;;  %s1135_s5 = inlined_call_operand.vmem [shape: bf16[128,16], index: 5, kind: output, shape index: {}]  }
   0x1 LB: > { %s735_s19 = sadd.s32 4294967295, %s945_s18   ;;  %p739_p0 = scmp.ge.s32.totalorder %s945_s18, 1  ;;  %s945_s18 = sphi %s977_s18, %s15_s18  }
   0x2   : > { %p201_p1 = scmp.lt.s32.totalorder %s945_s18, 3 }
   0x4   : > { %p202_p2 = pnand %p739_p0, %p201_p1 }
   0x5   : > { %s740_s24 = sshll.u32 (!%p202_p2), %s735_s19, 3 }
   0x6   : > { %205 = sbr.rel (%p202_p2) target bundleno = 243 (0xf3), region = 40  ;;  %p237_p3 = scmp.lt.s32.totalorder (!%p202_p2), %s740_s24, 15 }
   0xb   : > { %v928_v0 = vld [vmem:[%s1133_s3 + $0x38] sm:$0xff]  ;;  %v927_v2 = vld [vmem:[%s1133_s3 + $0x30] sm:$0xff]  ;;  %s1137_s24 = smov (!%p237_p3, %s740_s24), 15  ;;  %v912_v4 = vld [vmem:[%s1131_s1 + $0x40] sm:$0xff]  ;;  %vm399_vm0 = vcmask 130048   ;;  %vm658_vm1 = vcmask 125952  }
   0xc   : > { %v911_v1 = vld [vmem:[%s1131_s1 + $0x38] sm:$0xff]  ;;  %412 = vmatpush.bf16.msra.mxu0 %v928_v0  ;;  %v910_v3 = vld [vmem:[%s1131_s1 + $0x30] sm:$0xff]  ;;  %v929_v5 = vld [vmem:[%s1133_s3 + $0x40] sm:$0xff]  ;;  %s894_s8 = sshll.u32 %s1137_s24, 3  ;;  %608 = vmatpush.bf16.msra.mxu3 %v912_v4 }
   0xd   : > { %572 = vmatpush.bf16.msra.mxu2 %v911_v1  ;;  %v926_v6 = vld [vmem:[%s1133_s3 + $0x28] sm:$0xff]  ;;  %s1015_s15 = scalar_lea.vmem %s1130_s0, %s894_s8  ;;  %s1020_s19 = scalar_lea.vmem %s1132_s2, %s894_s8  ;;  %448 = vmatpush.bf16.msra.mxu1 %v929_v5  ;;  %v925_v14 = vld [vmem:[%s1133_s3 + $0x20] sm:$0xff]  ;;  %v924_v16 = vld [vmem:[%s1133_s3 + $0x18] sm:$0xff] }
   0xe   : > { %v909_v7 = vld [vmem:[%s1131_s1 + $0x28] sm:$0xff]  ;;  %v896_v8 = vld [vmem:[%s1015_s15 + $0x4] sm:$0xf]  ;;  %v907_v17 = vld [vmem:[%s1131_s1 + $0x18] sm:$0xff] }
   0xf   : > { %v824_v9 = vld [vmem:[%s1015_s15 + $0x8] sm:$0xf0]  ;;  %v913_v10 = vld [vmem:[%s1020_s19 + $0x4] sm:$0xf]  ;;  %v923_v18 = vld [vmem:[%s1133_s3 + $0x10] sm:$0xff] }
  0x10   : > { %413 = vmatpush.bf16.msra.mxu0 %v927_v2  ;;  %v827_v11 = vor.u32 %v896_v8, %v824_v9  ;;  %v752_v12 = vld [vmem:[%s1020_s19 + $0x8] sm:$0xf0]  ;;  %v908_v15 = vld [vmem:[%s1131_s1 + $0x20] sm:$0xff]  ;;  %v906_v19 = vld [vmem:[%s1131_s1 + $0x10] sm:$0xff] }
  0x11   : > { %573 = vmatpush.bf16.msra.mxu2 %v910_v3  ;;  %v755_v13 = vor.u32 %v913_v10, %v752_v12  ;;  %v898_v20 = vld [vmem:[%s1015_s15 + $0x14] sm:$0xf]  ;;  %v832_v21 = vld [vmem:[%s1015_s15 + $0x18] sm:$0xf0]  ;;  %v922_v24 = vld [vmem:[%s1133_s3 + $0x8] sm:$0xff] }
  0x12   : > { %888 = vmatmul.msk.bf16.vlgmr.msra.gmra.mxu3 %vm399_vm0, %v827_v11  ;;  %v915_v22 = vld [vmem:[%s1020_s19 + $0x14] sm:$0xf]  ;;  %v760_v23 = vld [vmem:[%s1020_s19 + $0x18] sm:$0xf0]  ;;  %v905_v25 = vld [vmem:[%s1131_s1 + $0x8] sm:$0xff]  ;;  %v835_v26 = vor.u32 %v898_v20, %v832_v21 }
  0x13   : > { %816 = vmatmul.msk.bf16.vlgmr.msra.gmra.mxu1 %vm399_vm0, %v755_v13  ;;  %v763_v27 = vor.u32 %v915_v22, %v760_v23  ;;  %v921_v28 = vld [vmem:[%s1133_s3] sm:$0xff]  ;;  %v914_v31 = vld [vmem:[%s1020_s19 + $0x4] sm:$0xf0]  ;;  %v840_v37 = vld [vmem:[%s1015_s15 + $0x28] sm:$0xf0] }
  0x14   : > { %414 = vmatpush.bf16.msra.mxu0 %v926_v6  ;;  %v904_v29 = vld [vmem:[%s1131_s1] sm:$0xff]  ;;  %v897_v33 = vld [vmem:[%s1015_s15 + $0x4] sm:$0xf0]  ;;  %v768_v39 = vld [vmem:[%s1020_s19 + $0x28] sm:$0xf0] }
  0x15   : > { %574 = vmatpush.bf16.msra.mxu2 %v909_v7  ;;  %v750_v30 = vld [vmem:[%s1020_s19] sm:$0xf]  ;;  %v900_v36 = vld [vmem:[%s1015_s15 + $0x24] sm:$0xf]  ;;  %v758_v42 = vld [vmem:[%s1020_s19 + $0x10] sm:$0xf] }
  0x16   : > { %v822_v32 = vld [vmem:[%s1015_s15] sm:$0xf]  ;;  %v751_v34 = vor.u32 %v914_v31, %v750_v30  ;;  %v917_v38 = vld [vmem:[%s1020_s19 + $0x24] sm:$0xf]  ;;  %v843_v40 = vor.u32 %v900_v36, %v840_v37  ;;  %v916_v43 = vld [vmem:[%s1020_s19 + $0x14] sm:$0xf0] }
  0x17   : > { %v823_v35 = vor.u32 %v897_v33, %v822_v32  ;;  %v771_v41 = vor.u32 %v917_v38, %v768_v39  ;;  %v830_v44 = vld [vmem:[%s1015_s15 + $0x10] sm:$0xf]  ;;  %v899_v45 = vld [vmem:[%s1015_s15 + $0x14] sm:$0xf0]  ;;  %v759_v46 = vor.u32 %v916_v43, %v758_v42  ;;  %v902_v48 = vld [vmem:[%s1015_s15 + $0x34] sm:$0xf] }
  0x18   : > { %415 = vmatpush.bf16.msra.mxu0 %v925_v14  ;;  %v831_v47 = vor.u32 %v899_v45, %v830_v44  ;;  %v848_v49 = vld [vmem:[%s1015_s15 + $0x38] sm:$0xf0]  ;;  %v919_v50 = vld [vmem:[%s1020_s19 + $0x34] sm:$0xf]  ;;  %v766_v54 = vld [vmem:[%s1020_s19 + $0x20] sm:$0xf] }
  0x19   : > { %575 = vmatpush.bf16.msra.mxu2 %v908_v15  ;;  %v776_v51 = vld [vmem:[%s1020_s19 + $0x38] sm:$0xf0]  ;;  %v851_v52 = vor.u32 %v902_v48, %v848_v49  ;;  %v918_v55 = vld [vmem:[%s1020_s19 + $0x24] sm:$0xf0]  ;;  %v838_v56 = vld [vmem:[%s1015_s15 + $0x20] sm:$0xf] }
  0x1a   : > { %v779_v53 = vor.u32 %v919_v50, %v776_v51  ;;  %v901_v57 = vld [vmem:[%s1015_s15 + $0x24] sm:$0xf0]  ;;  %v767_v58 = vor.u32 %v918_v55, %v766_v54  ;;  %v774_v60 = vld [vmem:[%s1020_s19 + $0x30] sm:$0xf]  ;;  %v920_v61 = vld [vmem:[%s1020_s19 + $0x34] sm:$0xf0] }
  0x1b   : > { %v839_v59 = vor.u32 %v901_v57, %v838_v56  ;;  %v846_v62 = vld [vmem:[%s1015_s15 + $0x30] sm:$0xf]  ;;  %v903_v63 = vld [vmem:[%s1015_s15 + $0x34] sm:$0xf0]  ;;  %v775_v0 = vor.u32 %v920_v61, %v774_v60  ;;  %v1095_v10 = vld [vmem:[%s1134_s4] ss:$0 sm:$0xff] }
  0x1c   : > { %416 = vmatpush.bf16.msra.mxu0 %v924_v16  ;;  %v847_v1 = vor.u32 %v903_v63, %v846_v62  ;;  %s747_s15 = sshll.u32 %s1137_s24, 2 }
  0x1d   : > { %576 = vmatpush.bf16.msra.mxu2 %v907_v17  ;;  %s1102_s22 = scalar_lea.vmem %s1135_s5, %s747_s15 }
  0x20   : > { %417 = vmatpush.bf16.msra.mxu0 %v923_v18 }
  0x21   : > { %577 = vmatpush.bf16.msra.mxu2 %v906_v19 }
  0x22   : > { %889 = vmatmul.msk.bf16.gmra.mxu3 %vm399_vm0, %v835_v26 }
  0x23   : > { %817 = vmatmul.msk.bf16.gmra.mxu1 %vm399_vm0, %v763_v27 }
  0x24   : > { %418 = vmatpush.bf16.msra.mxu0 %v922_v24 }
  0x25   : > { %578 = vmatpush.bf16.msra.mxu2 %v905_v25 }
  0x28   : > { %419 = vmatpush.bf16.msra.mxu0 %v921_v28 }
  0x29   : > { %579 = vmatpush.bf16.msra.mxu2 %v904_v29 }
  0x2b   : > { %420 = vmatmul.bf16.vlgmr.msra.gmra.mxu0 %v751_v34 }
  0x2c   : > { %580 = vmatmul.bf16.vlgmr.msra.gmra.mxu2 %v823_v35 }
  0x32   : > { %890 = vmatmul.msk.bf16.gmra.mxu3 %vm399_vm0, %v843_v40 }
  0x33   : > { %818 = vmatmul.msk.bf16.gmra.mxu1 %vm399_vm0, %v771_v41 }
  0x3b   : > { %425 = vmatmul.bf16.gmra.mxu0 %v759_v46 }
  0x3c   : > { %585 = vmatmul.bf16.gmra.mxu2 %v831_v47 }
  0x42   : > { %891 = vmatmul.msk.bf16.gmra.mxu3 %vm399_vm0, %v851_v52 }
  0x43   : > { %819 = vmatmul.msk.bf16.gmra.mxu1 %vm399_vm0, %v779_v53 }
  0x4b   : > { %430 = vmatmul.bf16.gmra.mxu0 %v767_v58 }
  0x4c   : > { %590 = vmatmul.bf16.gmra.mxu2 %v839_v59 }
  0x5b   : > { %435 = vmatmul.bf16.gmra.mxu0 %v775_v0 }
  0x5c   : > { %595 = vmatmul.bf16.gmra.mxu2 %v847_v1 }
  0x90   : > { %v450_v2 = vpop.f32.mrf.mxu1 }
  0x95   : > { %v610_v3 = vpop.f32.mrf.mxu3 }
  0x98   : > { %v452_v5 = vpop.f32.mrf.mxu1 }
  0x9d   : > { %v612_v7 = vpop.f32.mrf.mxu3 }
  0xa0   : > { %v455_v13 = vpop.f32.mrf.mxu1 }
  0xa5   : > { %v615_v18 = vpop.f32.mrf.mxu3 }
  0xa8   : > { %v421_v4 = vpop.f32.mrf.mxu0  ;;  %v457_v25 = vpop.f32.mrf.mxu1 }
  0xa9   : > { %v451_v6 = vadd.f32 %v450_v2, %v421_v4 }
  0xad   : > { %v617_v31 = vpop.f32.mrf.mxu3 }
  0xaf   : > { %v581_v8 = vpop.f32.mrf.mxu2 }
  0xb0   : > { %v582_v9 = vadd.f32 %v581_v8, %v451_v6  ;;  %v423_v11 = vpop.f32.mrf.mxu0  ;;  %v460_v36 = vpop.f32.mrf.mxu1 }
  0xb1   : > { %v453_v16 = vadd.f32 %v452_v5, %v423_v11 }
  0xb2   : > { %v611_v12 = vadd.f32 %v610_v3, %v582_v9 }
  0xb4   : > { %v634_v14 = vadd.f32 %v1095_v10, %v611_v12 }
  0xb5   : > { %v620_v42 = vpop.f32.mrf.mxu3 }
  0xb6   : > { %v642_v15 = vmax.f32 %v634_v14, 0.0 }
  0xb7   : > { %v583_v17 = vpop.f32.mrf.mxu2 }
  0xb8   : > { %v650_v19 = vpack.c.bf16 %v642_v15, %v642_v15  ;;  %v584_v20 = vadd.f32 %v583_v17, %v453_v16  ;;  %v426_v21 = vpop.f32.mrf.mxu0  ;;  %v462_v49 = vpop.f32.mrf.mxu1 }
  0xb9   : > { %v456_v24 = vadd.f32 %v455_v13, %v426_v21 }
  0xba   : > { %659 = vst.msk [vmem:[%s1102_s22] sm:$0xf] %vm658_vm1, %v650_v19  ;;  %v613_v22 = vadd.f32 %v612_v7, %v584_v20 }
  0xbc   : > { %v635_v23 = vadd.f32 %v1095_v10, %v613_v22 }
  0xbd   : > { %v622_v53 = vpop.f32.mrf.mxu3 }
  0xbe   : > { %v643_v26 = vmax.f32 %v635_v23, 0.0 }
  0xbf   : > { %v586_v27 = vpop.f32.mrf.mxu2 }
  0xc0   : > { %v651_v28 = vpack.c.bf16 %v643_v26, %v643_v26  ;;  %v587_v29 = vadd.f32 %v586_v27, %v456_v24  ;;  %v428_v30 = vpop.f32.mrf.mxu0  ;;  %v465_v61 = vpop.f32.mrf.mxu1 }
  0xc1   : > { %v458_v35 = vadd.f32 %v457_v25, %v428_v30 }
  0xc2   : > { %660 = vst.msk [vmem:[%s1102_s22 + $0x4] sm:$0xf] %vm658_vm1, %v651_v28  ;;  %v616_v32 = vadd.f32 %v615_v18, %v587_v29 }
  0xc4   : > { %v636_v33 = vadd.f32 %v1095_v10, %v616_v32 }
  0xc5   : > { %v625_v1 = vpop.f32.mrf.mxu3 }
  0xc6   : > { %v644_v34 = vmax.f32 %v636_v33, 0.0 }
  0xc7   : > { %v588_v37 = vpop.f32.mrf.mxu2 }
  0xc8   : > { %v652_v38 = vpack.c.bf16 %v644_v34, %v644_v34  ;;  %v589_v39 = vadd.f32 %v588_v37, %v458_v35  ;;  %v431_v40 = vpop.f32.mrf.mxu0  ;;  %v467_v8 = vpop.f32.mrf.mxu1 }
  0xc9   : > { %v461_v44 = vadd.f32 %v460_v36, %v431_v40 }
  0xca   : > { %661 = vst.msk [vmem:[%s1102_s22 + $0x8] sm:$0xf] %vm658_vm1, %v652_v38  ;;  %v618_v41 = vadd.f32 %v617_v31, %v589_v39 }
  0xcc   : > { %v637_v43 = vadd.f32 %v1095_v10, %v618_v41 }
  0xcd   : > { %v627_v15 = vpop.f32.mrf.mxu3 }
  0xce   : > { %v645_v45 = vmax.f32 %v637_v43, 0.0 }
  0xcf   : > { %v591_v46 = vpop.f32.mrf.mxu2 }
  0xd0   : > { %v653_v47 = vpack.c.bf16 %v645_v45, %v645_v45  ;;  %v592_v48 = vadd.f32 %v591_v46, %v461_v44  ;;  %v433_v50 = vpop.f32.mrf.mxu0 }
  0xd1   : > { %v463_v55 = vadd.f32 %v462_v49, %v433_v50 }
  0xd2   : > { %662 = vst.msk [vmem:[%s1102_s22 + $0xc] sm:$0xf] %vm658_vm1, %v653_v47  ;;  %v621_v51 = vadd.f32 %v620_v42, %v592_v48 }
  0xd4   : > { %v638_v52 = vadd.f32 %v1095_v10, %v621_v51 }
  0xd6   : > { %v646_v54 = vmax.f32 %v638_v52, 0.0 }
  0xd7   : > { %v593_v56 = vpop.f32.mrf.mxu2 }
  0xd8   : > { %v654_v57 = vpack.c.bf16 %v646_v54, %v646_v54  ;;  %v594_v58 = vadd.f32 %v593_v56, %v463_v55  ;;  %v436_v59 = vpop.f32.mrf.mxu0 }
  0xd9   : > { %v466_v63 = vadd.f32 %v465_v61, %v436_v59 }
  0xda   : > { %663 = vst.msk [vmem:[%s1102_s22 + $0x10] sm:$0xf] %vm658_vm1, %v654_v57  ;;  %v623_v60 = vadd.f32 %v622_v53, %v594_v58 }
  0xdc   : > { %v639_v62 = vadd.f32 %v1095_v10, %v623_v60 }
  0xde   : > { %v647_v0 = vmax.f32 %v639_v62, 0.0 }
  0xdf   : > { %v596_v2 = vpop.f32.mrf.mxu2 }
  0xe0   : > { %v655_v3 = vpack.c.bf16 %v647_v0, %v647_v0  ;;  %v597_v4 = vadd.f32 %v596_v2, %v466_v63  ;;  %v438_v6 = vpop.f32.mrf.mxu0 }
  0xe1   : > { %v468_v11 = vadd.f32 %v467_v8, %v438_v6 }
  0xe2   : > { %664 = vst.msk [vmem:[%s1102_s22 + $0x14] sm:$0xf] %vm658_vm1, %v655_v3  ;;  %v626_v5 = vadd.f32 %v625_v1, %v597_v4 }
  0xe4   : > { %v640_v7 = vadd.f32 %v1095_v10, %v626_v5 }
  0xe6   : > { %v648_v9 = vmax.f32 %v640_v7, 0.0 }
  0xe7   : > { %v598_v12 = vpop.f32.mrf.mxu2 }
  0xe8   : > { %v656_v13 = vpack.c.bf16 %v648_v9, %v648_v9  ;;  %v599_v14 = vadd.f32 %v598_v12, %v468_v11 }
  0xea   : > { %665 = vst.msk [vmem:[%s1102_s22 + $0x18] sm:$0xf] %vm658_vm1, %v656_v13  ;;  %v628_v16 = vadd.f32 %v627_v15, %v599_v14 }
  0xec   : > { %v641_v17 = vadd.f32 %v1095_v10, %v628_v16 }
  0xee   : > { %v649_v18 = vmax.f32 %v641_v17, 0.0 }
  0xf0   : > { %v657_v19 = vpack.c.bf16 %v649_v18, %v649_v18 }
  0xf2   : > { %666 = vst.msk [vmem:[%s1102_s22 + $0x1c] sm:$0xf] %vm658_vm1, %v657_v19 }
  0xf3 PF: > { %s15_s18 = sadd.s32 1, %s945_s18  }
  0xf4   : > { %p12_p4 = scmp.ge.s32.totalorder %s15_s18, 4  }
  0xf6   :  { %14 = sbr.rel (!%p12_p4) target bundleno = 1 (0x1), region = 73 }

// kernel: flexible_resunet_forward.31
= control target key start
LH: loop header
LB: loop body
LE: loop exit
PB: predicated region body
PF: predicated region fallthrough
CT: control target
= control target key end

     0   :  { %s410_s12 = smov 0   ;;  %s441_s0 = inlined_call_operand.vmem [shape: bf16[128,16], index: 0, kind: input, shape index: {}]   ;;  %s442_s1 = inlined_call_operand.vmem [shape: bf16[16,32], index: 1, kind: input, shape index: {}]   ;;  %s443_s2 = inlined_call_operand.vmem [shape: f32[1,32], index: 2, kind: input, shape index: {}]   ;;  %s444_s3 = inlined_call_operand.vmem [shape: bf16[128,32], index: 3, kind: output, shape index: {}]  }
   0x1 LB: > { %s330_s13 = sadd.s32 4294967295, %s388_s12   ;;  %p334_p0 = scmp.ge.s32.totalorder %s388_s12, 1  ;;  %s388_s12 = sphi %s410_s12, %s13_s12  }
   0x2   : > { %p138_p1 = scmp.lt.s32.totalorder %s388_s12, 3 }
   0x4   : > { %p139_p2 = pnand %p334_p0, %p138_p1 }
   0x5   : > { %s335_s16 = sshll.u32 (!%p139_p2), %s330_s13, 3 }
   0x6   : > { %142 = sbr.rel (%p139_p2) target bundleno = 162 (0xa2), region = 32  ;;  %p163_p3 = scmp.lt.s32.totalorder (!%p139_p2), %s335_s16, 15 }
   0xb   : > { %v369_v0 = vld [vmem:[%s442_s1] sm:$0xff]  ;;  %s446_s16 = smov (!%p163_p3, %s335_s16), 15  ;;  %vm215_vm0 = vcmask 130048   ;;  %vm265_vm1 = vcmask 257024  }
   0xc   : > { %235 = vmatpush.bf16.msra.mxu0 %v369_v0  ;;  %370 = vmatpush.bf16.msra.mxu1 %v369_v0  ;;  %s336_s17 = sshll.u32 %s446_s16, 2  ;;  %v381_v5 = vld [vmem:[%s443_s2] ss:$0 sm:$0xff] }
   0xd   : > { %371 = vmatpush.bf16.msra.mxu2 %v369_v0  ;;  %372 = vmatpush.bf16.msra.mxu3 %v369_v0  ;;  %s166_s20 = scalar_lea.vmem %s441_s0, %s336_s17  ;;  %s172_s25 = scalar_lea.vmem %s444_s3, %s336_s17 }
   0xe   : > { %v365_v1 = vld [vmem:[%s166_s20] sm:$0xff]  ;;  %v366_v2 = vld [vmem:[%s166_s20 + $0x8] sm:$0xff]  ;;  %v367_v3 = vld [vmem:[%s166_s20 + $0x10] sm:$0xff] }
   0xf   : > { %v368_v4 = vld [vmem:[%s166_s20 + $0x18] sm:$0xff]  ;;  %359 = vmatmul.msk.bf16.vlgmr.msra.gmra.mxu0 %vm215_vm0, %v365_v1  ;;  %360 = vmatmul.msk.bf16.vlgmr.msra.gmra.mxu1 %vm215_vm0, %v366_v2 }
  0x10   : > { %361 = vmatmul.msk.bf16.vlgmr.msra.gmra.mxu2 %vm215_vm0, %v367_v3  ;;  %362 = vmatmul.msk.bf16.vlgmr.msra.gmra.mxu3 %vm215_vm0, %v368_v4 }
  0x8c   : > { %v237_v6 = vpop.f32.mrf.mxu0  ;;  %v242_v7 = vpop.f32.mrf.mxu1 }
  0x8d   : > { %v238_v8 = vadd.f32 %v381_v5, %v237_v6  ;;  %v243_v9 = vadd.f32 %v381_v5, %v242_v7 }
  0x8f   : > { %v257_v10 = vpack.c.bf16 %v238_v8, %v238_v8  ;;  %v259_v11 = vpack.c.bf16 %v243_v9, %v243_v9 }
  0x91   : > { %266 = vst.msk [vmem:[%s172_s25] sm:$0xf] %vm265_vm1, %v257_v10 }
  0x92   : > { %268 = vst.msk [vmem:[%s172_s25 + $0x8] sm:$0xf] %vm265_vm1, %v259_v11 }
  0x93   : > { %v247_v12 = vpop.f32.mrf.mxu2  ;;  %v252_v13 = vpop.f32.mrf.mxu3 }
  0x94   : > { %v248_v14 = vadd.f32 %v381_v5, %v247_v12  ;;  %v253_v15 = vadd.f32 %v381_v5, %v252_v13  ;;  %v239_v16 = vpop.f32.mrf.mxu0  ;;  %v244_v17 = vpop.f32.mrf.mxu1 }
  0x95   : > { %v240_v18 = vadd.f32 %v381_v5, %v239_v16  ;;  %v245_v19 = vadd.f32 %v381_v5, %v244_v17 }
  0x96   : > { %v261_v20 = vpack.c.bf16 %v248_v14, %v248_v14  ;;  %v263_v21 = vpack.c.bf16 %v253_v15, %v253_v15 }
  0x97   : > { %v258_v22 = vpack.c.bf16 %v240_v18, %v240_v18  ;;  %v260_v23 = vpack.c.bf16 %v245_v19, %v245_v19 }
  0x98   : > { %270 = vst.msk [vmem:[%s172_s25 + $0x10] sm:$0xf] %vm265_vm1, %v261_v20 }
  0x99   : > { %272 = vst.msk [vmem:[%s172_s25 + $0x18] sm:$0xf] %vm265_vm1, %v263_v21 }
  0x9a   : > { %267 = vst.msk [vmem:[%s172_s25 + $0x4] sm:$0xf] %vm265_vm1, %v258_v22 }
  0x9b   : > { %269 = vst.msk [vmem:[%s172_s25 + $0xc] sm:$0xf] %vm265_vm1, %v260_v23  ;;  %v249_v24 = vpop.f32.mrf.mxu2  ;;  %v254_v25 = vpop.f32.mrf.mxu3 }
  0x9c   : > { %v250_v26 = vadd.f32 %v381_v5, %v249_v24  ;;  %v255_v27 = vadd.f32 %v381_v5, %v254_v25 }
  0x9e   : > { %v262_v28 = vpack.c.bf16 %v250_v26, %v250_v26  ;;  %v264_v29 = vpack.c.bf16 %v255_v27, %v255_v27 }
  0xa0   : > { %271 = vst.msk [vmem:[%s172_s25 + $0x14] sm:$0xf] %vm265_vm1, %v262_v28 }
  0xa1   : > { %273 = vst.msk [vmem:[%s172_s25 + $0x1c] sm:$0xf] %vm265_vm1, %v264_v29 }
  0xa2 PF: > { %s13_s12 = sadd.s32 1, %s388_s12  }
  0xa3   : > { %p10_p4 = scmp.ge.s32.totalorder %s13_s12, 4  }
  0xa5   :  { %12 = sbr.rel (!%p10_p4) target bundleno = 1 (0x1), region = 62 }

// kernel: flexible_resunet_forward.33
= control target key start
LH: loop header
LB: loop body
LE: loop exit
PB: predicated region body
PF: predicated region fallthrough
CT: control target
= control target key end

     0   :  { %s1182_s18 = smov 0   ;;  %s1384_s0 = inlined_call_operand.vmem [shape: bf16[512,8], index: 0, kind: input, shape index: {}]   ;;  %s1385_s1 = inlined_call_operand.vmem [shape: bf16[8,8], index: 1, kind: input, shape index: {}]   ;;  %s1386_s2 = inlined_call_operand.vmem [shape: bf16[512,8], index: 2, kind: input, shape index: {}]   ;;  %s1387_s3 = inlined_call_operand.vmem [shape: bf16[8,8], index: 3, kind: input, shape index: {}]   ;;  %s1388_s4 = inlined_call_operand.vmem [shape: f32[1,8], index: 4, kind: input, shape index: {}]   ;;  %s1389_s5 = inlined_call_operand.vmem [shape: bf16[512,8], index: 5, kind: output, shape index: {}]  }
   0x1 LB: > { %s928_s19 = sadd.s32 4294967295, %s1150_s18   ;;  %p932_p0 = scmp.ge.s32.totalorder %s1150_s18, 1  ;;  %s1150_s18 = sphi %s1182_s18, %s15_s18  }
   0x2   : > { %p199_p1 = scmp.lt.s32.totalorder %s1150_s18, 3 }
   0x4   : > { %p200_p2 = pnand %p932_p0, %p199_p1 }
   0x5   : > { %s933_s24 = sshll.u32 (!%p200_p2), %s928_s19, 5 }
   0x6   : > { %203 = sbr.rel (%p200_p2) target bundleno = 277 (0x115), region = 40  ;;  %p233_p3 = scmp.lt.s32.totalorder (!%p200_p2), %s933_s24, 63 }
   0xb   : > { %v316_v0 = vld [vmem:[%s1387_s3] sm:$0xf]  ;;  %vm446_vm0 = vcmask 1043456   ;;  %s1391_s24 = smov (!%p233_p3, %s933_s24), 63  ;;  %vm397_vm1 = vcmask 64512   ;;  %vm827_vm2 = vcmask 60416  }
   0xc   : > { %v283_v1 = vld [vmem:[%s1385_s1] sm:$0xf]  ;;  %v448_v2 = vsel %vm446_vm0, %v316_v0, 0  ;;  %s1196_s25 = sshll.u32 %s1391_s24, 2 }
   0xd   : > { %v668_v3 = vsel %vm446_vm0, %v283_v1, 0  ;;  %457 = vmatpush.bf16.msra.mxu0 %v448_v2  ;;  %1133 = vmatpush.bf16.msra.mxu2 %v448_v2  ;;  %s1202_s28 = scalar_lea.vmem %s1386_s2, %s1196_s25  ;;  %s1208_s6 = scalar_lea.vmem %s1384_s0, %s1196_s25  ;;  %v1277_v37 = vld [vmem:[%s1388_s4] ss:$0 sm:$0xff] }
   0xe   : > { %677 = vmatpush.bf16.msra.mxu1 %v668_v3  ;;  %1134 = vmatpush.bf16.msra.mxu3 %v668_v3  ;;  %v1117_v4 = vld [vmem:[%s1202_s28] sm:$0xff]  ;;  %v1118_v8 = vld [vmem:[%s1202_s28 + $0x8] sm:$0xff]  ;;  %v1119_v12 = vld [vmem:[%s1202_s28 + $0x10] sm:$0xff]  ;;  %s1284_s11 = scalar_lea.vmem %s1389_s5, %s1196_s25 }
   0xf   : > { %v1125_v5 = vld [vmem:[%s1202_s28 + $0x40] sm:$0xff]  ;;  %v1126_v9 = vld [vmem:[%s1202_s28 + $0x48] sm:$0xff]  ;;  %v1127_v13 = vld [vmem:[%s1202_s28 + $0x50] sm:$0xff] }
  0x10   : > { %v1101_v6 = vld [vmem:[%s1208_s6] sm:$0xff]  ;;  %1003 = vmatmul.msk.bf16.vlgmr.msra.gmra.mxu0 %vm397_vm1, %v1117_v4  ;;  %1011 = vmatmul.msk.bf16.vlgmr.msra.gmra.mxu2 %vm397_vm1, %v1125_v5  ;;  %v1102_v10 = vld [vmem:[%s1208_s6 + $0x8] sm:$0xff]  ;;  %v1103_v14 = vld [vmem:[%s1208_s6 + $0x10] sm:$0xff] }
  0x11   : > { %v1109_v7 = vld [vmem:[%s1208_s6 + $0x40] sm:$0xff]  ;;  %1083 = vmatmul.msk.bf16.vlgmr.msra.gmra.mxu1 %vm397_vm1, %v1101_v6  ;;  %v1110_v11 = vld [vmem:[%s1208_s6 + $0x48] sm:$0xff]  ;;  %v1111_v15 = vld [vmem:[%s1208_s6 + $0x50] sm:$0xff] }
  0x12   : > { %1091 = vmatmul.msk.bf16.vlgmr.msra.gmra.mxu3 %vm397_vm1, %v1109_v7  ;;  %v1120_v16 = vld [vmem:[%s1202_s28 + $0x18] sm:$0xff]  ;;  %v1121_v20 = vld [vmem:[%s1202_s28 + $0x20] sm:$0xff]  ;;  %v1122_v24 = vld [vmem:[%s1202_s28 + $0x28] sm:$0xff] }
  0x13   : > { %v1128_v17 = vld [vmem:[%s1202_s28 + $0x58] sm:$0xff]  ;;  %v1129_v21 = vld [vmem:[%s1202_s28 + $0x60] sm:$0xff]  ;;  %v1130_v25 = vld [vmem:[%s1202_s28 + $0x68] sm:$0xff] }
  0x14   : > { %v1104_v18 = vld [vmem:[%s1208_s6 + $0x18] sm:$0xff]  ;;  %v1105_v22 = vld [vmem:[%s1208_s6 + $0x20] sm:$0xff]  ;;  %v1106_v26 = vld [vmem:[%s1208_s6 + $0x28] sm:$0xff] }
  0x15   : > { %v1112_v19 = vld [vmem:[%s1208_s6 + $0x58] sm:$0xff]  ;;  %v1113_v23 = vld [vmem:[%s1208_s6 + $0x60] sm:$0xff]  ;;  %v1114_v27 = vld [vmem:[%s1208_s6 + $0x68] sm:$0xff] }
  0x16   : > { %v1123_v28 = vld [vmem:[%s1202_s28 + $0x30] sm:$0xff]  ;;  %v1124_v32 = vld [vmem:[%s1202_s28 + $0x38] sm:$0xff] }
  0x17   : > { %v1131_v29 = vld [vmem:[%s1202_s28 + $0x70] sm:$0xff]  ;;  %v1132_v33 = vld [vmem:[%s1202_s28 + $0x78] sm:$0xff] }
  0x18   : > { %v1107_v30 = vld [vmem:[%s1208_s6 + $0x30] sm:$0xff]  ;;  %v1108_v34 = vld [vmem:[%s1208_s6 + $0x38] sm:$0xff] }
  0x19   : > { %v1115_v31 = vld [vmem:[%s1208_s6 + $0x70] sm:$0xff]  ;;  %v1116_v35 = vld [vmem:[%s1208_s6 + $0x78] sm:$0xff] }
  0x20   : > { %1004 = vmatmul.msk.bf16.gmra.mxu0 %vm397_vm1, %v1118_v8  ;;  %1012 = vmatmul.msk.bf16.gmra.mxu2 %vm397_vm1, %v1126_v9 }
  0x21   : > { %1084 = vmatmul.msk.bf16.gmra.mxu1 %vm397_vm1, %v1102_v10 }
  0x22   : > { %1092 = vmatmul.msk.bf16.gmra.mxu3 %vm397_vm1, %v1110_v11 }
  0x30   : > { %1005 = vmatmul.msk.bf16.gmra.mxu0 %vm397_vm1, %v1119_v12  ;;  %1013 = vmatmul.msk.bf16.gmra.mxu2 %vm397_vm1, %v1127_v13 }
  0x31   : > { %1085 = vmatmul.msk.bf16.gmra.mxu1 %vm397_vm1, %v1103_v14 }
  0x32   : > { %1093 = vmatmul.msk.bf16.gmra.mxu3 %vm397_vm1, %v1111_v15 }
  0x40   : > { %1006 = vmatmul.msk.bf16.gmra.mxu0 %vm397_vm1, %v1120_v16  ;;  %1014 = vmatmul.msk.bf16.gmra.mxu2 %vm397_vm1, %v1128_v17 }
  0x41   : > { %1086 = vmatmul.msk.bf16.gmra.mxu1 %vm397_vm1, %v1104_v18 }
  0x42   : > { %1094 = vmatmul.msk.bf16.gmra.mxu3 %vm397_vm1, %v1112_v19 }
  0x50   : > { %1007 = vmatmul.msk.bf16.gmra.mxu0 %vm397_vm1, %v1121_v20  ;;  %1015 = vmatmul.msk.bf16.gmra.mxu2 %vm397_vm1, %v1129_v21 }
  0x51   : > { %1087 = vmatmul.msk.bf16.gmra.mxu1 %vm397_vm1, %v1105_v22 }
  0x52   : > { %1095 = vmatmul.msk.bf16.gmra.mxu3 %vm397_vm1, %v1113_v23 }
  0x60   : > { %1008 = vmatmul.msk.bf16.gmra.mxu0 %vm397_vm1, %v1122_v24  ;;  %1016 = vmatmul.msk.bf16.gmra.mxu2 %vm397_vm1, %v1130_v25 }
  0x61   : > { %1088 = vmatmul.msk.bf16.gmra.mxu1 %vm397_vm1, %v1106_v26 }
  0x62   : > { %1096 = vmatmul.msk.bf16.gmra.mxu3 %vm397_vm1, %v1114_v27 }
  0x70   : > { %1009 = vmatmul.msk.bf16.gmra.mxu0 %vm397_vm1, %v1123_v28  ;;  %1017 = vmatmul.msk.bf16.gmra.mxu2 %vm397_vm1, %v1131_v29 }
  0x71   : > { %1089 = vmatmul.msk.bf16.gmra.mxu1 %vm397_vm1, %v1107_v30 }
  0x72   : > { %1097 = vmatmul.msk.bf16.gmra.mxu3 %vm397_vm1, %v1115_v31 }
  0x80   : > { %1010 = vmatmul.msk.bf16.gmra.mxu0 %vm397_vm1, %v1124_v32  ;;  %1018 = vmatmul.msk.bf16.gmra.mxu2 %vm397_vm1, %v1132_v33 }
  0x81   : > { %1090 = vmatmul.msk.bf16.gmra.mxu1 %vm397_vm1, %v1108_v34 }
  0x82   : > { %1098 = vmatmul.msk.bf16.gmra.mxu3 %vm397_vm1, %v1116_v35 }
  0x8d   : > { %v459_v36 = vpop.f32.mrf.mxu0 }
  0x8e   : > { %v679_v38 = vpop.f32.mrf.mxu1 }
  0x8f   : > { %v680_v39 = vadd.f32 %v679_v38, %v459_v36 }
  0x91   : > { %v763_v40 = vadd.f32 %v1277_v37, %v680_v39 }
  0x93   : > { %v795_v41 = vpack.c.bf16 %v763_v40, %v763_v40  ;;  %v499_v42 = vpop.f32.mrf.mxu2 }
  0x95   : > { %v719_v43 = vpop.f32.mrf.mxu3  ;;  %828 = vst.msk [vmem:[%s1284_s11] sm:$0xf] %vm827_vm2, %v795_v41  ;;  %v461_v45 = vpop.f32.mrf.mxu0 }
  0x96   : > { %v720_v44 = vadd.f32 %v719_v43, %v499_v42  ;;  %v681_v46 = vpop.f32.mrf.mxu1 }
  0x97   : > { %v682_v48 = vadd.f32 %v681_v46, %v461_v45 }
  0x98   : > { %v779_v47 = vadd.f32 %v1277_v37, %v720_v44 }
  0x99   : > { %v764_v50 = vadd.f32 %v1277_v37, %v682_v48 }
  0x9a   : > { %v811_v49 = vpack.c.bf16 %v779_v47, %v779_v47 }
  0x9b   : > { %v796_v51 = vpack.c.bf16 %v764_v50, %v764_v50  ;;  %v501_v52 = vpop.f32.mrf.mxu2 }
  0x9c   : > { %844 = vst.msk [vmem:[%s1284_s11 + $0x40] sm:$0xf] %vm827_vm2, %v811_v49 }
  0x9d   : > { %v721_v53 = vpop.f32.mrf.mxu3  ;;  %829 = vst.msk [vmem:[%s1284_s11 + $0x4] sm:$0xf] %vm827_vm2, %v796_v51  ;;  %v464_v55 = vpop.f32.mrf.mxu0 }
  0x9e   : > { %v722_v54 = vadd.f32 %v721_v53, %v501_v52  ;;  %v684_v56 = vpop.f32.mrf.mxu1 }
  0x9f   : > { %v685_v58 = vadd.f32 %v684_v56, %v464_v55 }
  0xa0   : > { %v780_v57 = vadd.f32 %v1277_v37, %v722_v54 }
  0xa1   : > { %v765_v60 = vadd.f32 %v1277_v37, %v685_v58 }
  0xa2   : > { %v812_v59 = vpack.c.bf16 %v780_v57, %v780_v57 }
  0xa3   : > { %v797_v61 = vpack.c.bf16 %v765_v60, %v765_v60  ;;  %v504_v62 = vpop.f32.mrf.mxu2 }
  0xa4   : > { %845 = vst.msk [vmem:[%s1284_s11 + $0x44] sm:$0xf] %vm827_vm2, %v812_v59 }
  0xa5   : > { %v724_v63 = vpop.f32.mrf.mxu3  ;;  %830 = vst.msk [vmem:[%s1284_s11 + $0x8] sm:$0xf] %vm827_vm2, %v797_v61  ;;  %v466_v1 = vpop.f32.mrf.mxu0 }
  0xa6   : > { %v725_v0 = vadd.f32 %v724_v63, %v504_v62  ;;  %v686_v2 = vpop.f32.mrf.mxu1 }
  0xa7   : > { %v687_v4 = vadd.f32 %v686_v2, %v466_v1 }
  0xa8   : > { %v781_v3 = vadd.f32 %v1277_v37, %v725_v0 }
  0xa9   : > { %v766_v6 = vadd.f32 %v1277_v37, %v687_v4 }
  0xaa   : > { %v813_v5 = vpack.c.bf16 %v781_v3, %v781_v3 }
  0xab   : > { %v798_v7 = vpack.c.bf16 %v766_v6, %v766_v6  ;;  %v506_v8 = vpop.f32.mrf.mxu2 }
  0xac   : > { %846 = vst.msk [vmem:[%s1284_s11 + $0x48] sm:$0xf] %vm827_vm2, %v813_v5 }
  0xad   : > { %v726_v9 = vpop.f32.mrf.mxu3  ;;  %831 = vst.msk [vmem:[%s1284_s11 + $0xc] sm:$0xf] %vm827_vm2, %v798_v7  ;;  %v469_v11 = vpop.f32.mrf.mxu0 }
  0xae   : > { %v727_v10 = vadd.f32 %v726_v9, %v506_v8  ;;  %v689_v12 = vpop.f32.mrf.mxu1 }
  0xaf   : > { %v690_v14 = vadd.f32 %v689_v12, %v469_v11 }
  0xb0   : > { %v782_v13 = vadd.f32 %v1277_v37, %v727_v10 }
  0xb1   : > { %v767_v16 = vadd.f32 %v1277_v37, %v690_v14 }
  0xb2   : > { %v814_v15 = vpack.c.bf16 %v782_v13, %v782_v13 }
  0xb3   : > { %v799_v17 = vpack.c.bf16 %v767_v16, %v767_v16  ;;  %v509_v18 = vpop.f32.mrf.mxu2 }
  0xb4   : > { %847 = vst.msk [vmem:[%s1284_s11 + $0x4c] sm:$0xf] %vm827_vm2, %v814_v15 }
  0xb5   : > { %v729_v19 = vpop.f32.mrf.mxu3  ;;  %832 = vst.msk [vmem:[%s1284_s11 + $0x10] sm:$0xf] %vm827_vm2, %v799_v17  ;;  %v471_v21 = vpop.f32.mrf.mxu0 }
  0xb6   : > { %v730_v20 = vadd.f32 %v729_v19, %v509_v18  ;;  %v691_v22 = vpop.f32.mrf.mxu1 }
  0xb7   : > { %v692_v24 = vadd.f32 %v691_v22, %v471_v21 }
  0xb8   : > { %v783_v23 = vadd.f32 %v1277_v37, %v730_v20 }
  0xb9   : > { %v768_v26 = vadd.f32 %v1277_v37, %v692_v24 }
  0xba   : > { %v815_v25 = vpack.c.bf16 %v783_v23, %v783_v23 }
  0xbb   : > { %v800_v27 = vpack.c.bf16 %v768_v26, %v768_v26  ;;  %v511_v28 = vpop.f32.mrf.mxu2 }
  0xbc   : > { %848 = vst.msk [vmem:[%s1284_s11 + $0x50] sm:$0xf] %vm827_vm2, %v815_v25 }
  0xbd   : > { %v731_v29 = vpop.f32.mrf.mxu3  ;;  %833 = vst.msk [vmem:[%s1284_s11 + $0x14] sm:$0xf] %vm827_vm2, %v800_v27  ;;  %v474_v31 = vpop.f32.mrf.mxu0 }
  0xbe   : > { %v732_v30 = vadd.f32 %v731_v29, %v511_v28  ;;  %v694_v32 = vpop.f32.mrf.mxu1 }
  0xbf   : > { %v695_v34 = vadd.f32 %v694_v32, %v474_v31 }
  0xc0   : > { %v784_v33 = vadd.f32 %v1277_v37, %v732_v30 }
  0xc1   : > { %v769_v36 = vadd.f32 %v1277_v37, %v695_v34 }
  0xc2   : > { %v816_v35 = vpack.c.bf16 %v784_v33, %v784_v33 }
  0xc3   : > { %v801_v38 = vpack.c.bf16 %v769_v36, %v769_v36  ;;  %v514_v39 = vpop.f32.mrf.mxu2 }
  0xc4   : > { %849 = vst.msk [vmem:[%s1284_s11 + $0x54] sm:$0xf] %vm827_vm2, %v816_v35 }
  0xc5   : > { %v734_v40 = vpop.f32.mrf.mxu3  ;;  %834 = vst.msk [vmem:[%s1284_s11 + $0x18] sm:$0xf] %vm827_vm2, %v801_v38  ;;  %v476_v42 = vpop.f32.mrf.mxu0 }
  0xc6   : > { %v735_v41 = vadd.f32 %v734_v40, %v514_v39  ;;  %v696_v43 = vpop.f32.mrf.mxu1 }
  0xc7   : > { %v697_v45 = vadd.f32 %v696_v43, %v476_v42 }
  0xc8   : > { %v785_v44 = vadd.f32 %v1277_v37, %v735_v41 }
  0xc9   : > { %v770_v47 = vadd.f32 %v1277_v37, %v697_v45 }
  0xca   : > { %v817_v46 = vpack.c.bf16 %v785_v44, %v785_v44 }
  0xcb   : > { %v802_v48 = vpack.c.bf16 %v770_v47, %v770_v47  ;;  %v516_v49 = vpop.f32.mrf.mxu2 }
  0xcc   : > { %850 = vst.msk [vmem:[%s1284_s11 + $0x58] sm:$0xf] %vm827_vm2, %v817_v46 }
  0xcd   : > { %v736_v50 = vpop.f32.mrf.mxu3  ;;  %835 = vst.msk [vmem:[%s1284_s11 + $0x1c] sm:$0xf] %vm827_vm2, %v802_v48  ;;  %v479_v52 = vpop.f32.mrf.mxu0 }
  0xce   : > { %v737_v51 = vadd.f32 %v736_v50, %v516_v49  ;;  %v699_v53 = vpop.f32.mrf.mxu1 }
  0xcf   : > { %v700_v55 = vadd.f32 %v699_v53, %v479_v52 }
  0xd0   : > { %v786_v54 = vadd.f32 %v1277_v37, %v737_v51 }
  0xd1   : > { %v771_v57 = vadd.f32 %v1277_v37, %v700_v55 }
  0xd2   : > { %v818_v56 = vpack.c.bf16 %v786_v54, %v786_v54 }
  0xd3   : > { %v803_v58 = vpack.c.bf16 %v771_v57, %v771_v57  ;;  %v519_v59 = vpop.f32.mrf.mxu2 }
  0xd4   : > { %851 = vst.msk [vmem:[%s1284_s11 + $0x5c] sm:$0xf] %vm827_vm2, %v818_v56 }
  0xd5   : > { %v739_v60 = vpop.f32.mrf.mxu3  ;;  %836 = vst.msk [vmem:[%s1284_s11 + $0x20] sm:$0xf] %vm827_vm2, %v803_v58  ;;  %v481_v62 = vpop.f32.mrf.mxu0 }
  0xd6   : > { %v740_v61 = vadd.f32 %v739_v60, %v519_v59  ;;  %v701_v63 = vpop.f32.mrf.mxu1 }
  0xd7   : > { %v702_v1 = vadd.f32 %v701_v63, %v481_v62 }
  0xd8   : > { %v787_v0 = vadd.f32 %v1277_v37, %v740_v61 }
  0xd9   : > { %v772_v3 = vadd.f32 %v1277_v37, %v702_v1 }
  0xda   : > { %v819_v2 = vpack.c.bf16 %v787_v0, %v787_v0 }
  0xdb   : > { %v804_v4 = vpack.c.bf16 %v772_v3, %v772_v3  ;;  %v521_v5 = vpop.f32.mrf.mxu2 }
  0xdc   : > { %852 = vst.msk [vmem:[%s1284_s11 + $0x60] sm:$0xf] %vm827_vm2, %v819_v2 }
  0xdd   : > { %v741_v6 = vpop.f32.mrf.mxu3  ;;  %837 = vst.msk [vmem:[%s1284_s11 + $0x24] sm:$0xf] %vm827_vm2, %v804_v4  ;;  %v484_v8 = vpop.f32.mrf.mxu0 }
  0xde   : > { %v742_v7 = vadd.f32 %v741_v6, %v521_v5  ;;  %v704_v9 = vpop.f32.mrf.mxu1 }
  0xdf   : > { %v705_v11 = vadd.f32 %v704_v9, %v484_v8 }
  0xe0   : > { %v788_v10 = vadd.f32 %v1277_v37, %v742_v7 }
  0xe1   : > { %v773_v13 = vadd.f32 %v1277_v37, %v705_v11 }
  0xe2   : > { %v820_v12 = vpack.c.bf16 %v788_v10, %v788_v10 }
  0xe3   : > { %v805_v14 = vpack.c.bf16 %v773_v13, %v773_v13  ;;  %v524_v15 = vpop.f32.mrf.mxu2 }
  0xe4   : > { %853 = vst.msk [vmem:[%s1284_s11 + $0x64] sm:$0xf] %vm827_vm2, %v820_v12 }
  0xe5   : > { %v744_v16 = vpop.f32.mrf.mxu3  ;;  %838 = vst.msk [vmem:[%s1284_s11 + $0x28] sm:$0xf] %vm827_vm2, %v805_v14  ;;  %v486_v18 = vpop.f32.mrf.mxu0 }
  0xe6   : > { %v745_v17 = vadd.f32 %v744_v16, %v524_v15  ;;  %v706_v19 = vpop.f32.mrf.mxu1 }
  0xe7   : > { %v707_v21 = vadd.f32 %v706_v19, %v486_v18 }
  0xe8   : > { %v789_v20 = vadd.f32 %v1277_v37, %v745_v17 }
  0xe9   : > { %v774_v23 = vadd.f32 %v1277_v37, %v707_v21 }
  0xea   : > { %v821_v22 = vpack.c.bf16 %v789_v20, %v789_v20 }
  0xeb   : > { %v806_v24 = vpack.c.bf16 %v774_v23, %v774_v23  ;;  %v526_v25 = vpop.f32.mrf.mxu2 }
  0xec   : > { %854 = vst.msk [vmem:[%s1284_s11 + $0x68] sm:$0xf] %vm827_vm2, %v821_v22 }
  0xed   : > { %v746_v26 = vpop.f32.mrf.mxu3  ;;  %839 = vst.msk [vmem:[%s1284_s11 + $0x2c] sm:$0xf] %vm827_vm2, %v806_v24  ;;  %v489_v28 = vpop.f32.mrf.mxu0 }
  0xee   : > { %v747_v27 = vadd.f32 %v746_v26, %v526_v25  ;;  %v709_v29 = vpop.f32.mrf.mxu1 }
  0xef   : > { %v710_v31 = vadd.f32 %v709_v29, %v489_v28 }
  0xf0   : > { %v790_v30 = vadd.f32 %v1277_v37, %v747_v27 }
  0xf1   : > { %v775_v33 = vadd.f32 %v1277_v37, %v710_v31 }
  0xf2   : > { %v822_v32 = vpack.c.bf16 %v790_v30, %v790_v30 }
  0xf3   : > { %v807_v34 = vpack.c.bf16 %v775_v33, %v775_v33  ;;  %v529_v35 = vpop.f32.mrf.mxu2 }
  0xf4   : > { %855 = vst.msk [vmem:[%s1284_s11 + $0x6c] sm:$0xf] %vm827_vm2, %v822_v32 }
  0xf5   : > { %v749_v36 = vpop.f32.mrf.mxu3  ;;  %840 = vst.msk [vmem:[%s1284_s11 + $0x30] sm:$0xf] %vm827_vm2, %v807_v34  ;;  %v491_v39 = vpop.f32.mrf.mxu0 }
  0xf6   : > { %v750_v38 = vadd.f32 %v749_v36, %v529_v35  ;;  %v711_v40 = vpop.f32.mrf.mxu1 }
  0xf7   : > { %v712_v42 = vadd.f32 %v711_v40, %v491_v39 }
  0xf8   : > { %v791_v41 = vadd.f32 %v1277_v37, %v750_v38 }
  0xf9   : > { %v776_v44 = vadd.f32 %v1277_v37, %v712_v42 }
  0xfa   : > { %v823_v43 = vpack.c.bf16 %v791_v41, %v791_v41 }
  0xfb   : > { %v808_v45 = vpack.c.bf16 %v776_v44, %v776_v44  ;;  %v531_v46 = vpop.f32.mrf.mxu2 }
  0xfc   : > { %856 = vst.msk [vmem:[%s1284_s11 + $0x70] sm:$0xf] %vm827_vm2, %v823_v43 }
  0xfd   : > { %v751_v47 = vpop.f32.mrf.mxu3  ;;  %841 = vst.msk [vmem:[%s1284_s11 + $0x34] sm:$0xf] %vm827_vm2, %v808_v45  ;;  %v494_v49 = vpop.f32.mrf.mxu0 }
  0xfe   : > { %v752_v48 = vadd.f32 %v751_v47, %v531_v46  ;;  %v714_v50 = vpop.f32.mrf.mxu1 }
  0xff   : > { %v715_v52 = vadd.f32 %v714_v50, %v494_v49 }
 0x100   : > { %v792_v51 = vadd.f32 %v1277_v37, %v752_v48 }
 0x101   : > { %v777_v54 = vadd.f32 %v1277_v37, %v715_v52 }
 0x102   : > { %v824_v53 = vpack.c.bf16 %v792_v51, %v792_v51 }
 0x103   : > { %v809_v55 = vpack.c.bf16 %v777_v54, %v777_v54  ;;  %v534_v56 = vpop.f32.mrf.mxu2 }
 0x104   : > { %857 = vst.msk [vmem:[%s1284_s11 + $0x74] sm:$0xf] %vm827_vm2, %v824_v53 }
 0x105   : > { %v754_v57 = vpop.f32.mrf.mxu3  ;;  %842 = vst.msk [vmem:[%s1284_s11 + $0x38] sm:$0xf] %vm827_vm2, %v809_v55  ;;  %v496_v59 = vpop.f32.mrf.mxu0 }
 0x106   : > { %v755_v58 = vadd.f32 %v754_v57, %v534_v56  ;;  %v716_v60 = vpop.f32.mrf.mxu1 }
 0x107   : > { %v717_v62 = vadd.f32 %v716_v60, %v496_v59 }
 0x108   : > { %v793_v61 = vadd.f32 %v1277_v37, %v755_v58 }
 0x109   : > { %v778_v0 = vadd.f32 %v1277_v37, %v717_v62 }
 0x10a   : > { %v825_v63 = vpack.c.bf16 %v793_v61, %v793_v61 }
 0x10b   : > { %v810_v1 = vpack.c.bf16 %v778_v0, %v778_v0  ;;  %v536_v2 = vpop.f32.mrf.mxu2 }
 0x10c   : > { %858 = vst.msk [vmem:[%s1284_s11 + $0x78] sm:$0xf] %vm827_vm2, %v825_v63 }
 0x10d   : > { %v756_v3 = vpop.f32.mrf.mxu3  ;;  %843 = vst.msk [vmem:[%s1284_s11 + $0x3c] sm:$0xf] %vm827_vm2, %v810_v1 }
 0x10e   : > { %v757_v4 = vadd.f32 %v756_v3, %v536_v2 }
 0x110   : > { %v794_v5 = vadd.f32 %v1277_v37, %v757_v4 }
 0x112   : > { %v826_v6 = vpack.c.bf16 %v794_v5, %v794_v5 }
 0x114   : > { %859 = vst.msk [vmem:[%s1284_s11 + $0x7c] sm:$0xf] %vm827_vm2, %v826_v6 }
 0x115 PF: > { %s15_s18 = sadd.s32 1, %s1150_s18  }
 0x116   : > { %p12_p4 = scmp.ge.s32.totalorder %s15_s18, 4  }
 0x118   :  { %14 = sbr.rel (!%p12_p4) target bundleno = 1 (0x1), region = 73 }

// kernel: flexible_resunet_forward.35
= control target key start
LH: loop header
LB: loop body
LE: loop exit
PB: predicated region body
PF: predicated region fallthrough
CT: control target
= control target key end

     0   :  { %s670_s12 = smov 0   ;;  %s813_s0 = inlined_call_operand.vmem [shape: bf16[512,8], index: 0, kind: input, shape index: {}]   ;;  %s814_s1 = inlined_call_operand.vmem [shape: bf16[8,3], index: 1, kind: input, shape index: {}]   ;;  %s815_s2 = inlined_call_operand.vmem [shape: f32[1,3], index: 2, kind: input, shape index: {}]   ;;  %s816_s3 = inlined_call_operand.vmem [shape: f32[512,3], index: 3, kind: output, shape index: {}]  }
   0x1 LB: > { %s523_s13 = sadd.s32 4294967295, %s648_s12   ;;  %p527_p0 = scmp.ge.s32.totalorder %s648_s12, 1  ;;  %s648_s12 = sphi %s670_s12, %s13_s12  }
   0x2   : > { %p138_p1 = scmp.lt.s32.totalorder %s648_s12, 3 }
   0x4   : > { %p139_p2 = pnand %p527_p0, %p138_p1 }
   0x5   : > { %s528_s16 = sshll.u32 (!%p139_p2), %s523_s13, 5 }
   0x6   : > { %142 = sbr.rel (%p139_p2) target bundleno = 209 (0xd1), region = 32  ;;  %p163_p3 = scmp.lt.s32.totalorder (!%p139_p2), %s528_s16, 63 }
   0xb   : > { %v207_v0 = vld [vmem:[%s814_s1] sm:$0xf]  ;;  %vm341_vm0 = vcmask 1043456   ;;  %s818_s16 = smov (!%p163_p3, %s528_s16), 63  ;;  %vm292_vm1 = vcmask 64512   ;;  %vm434_vm2 = vcmask 23552  }
   0xc   : > { %v343_v1 = vsel %vm341_vm0, %v207_v0, 0  ;;  %s529_s17 = sshll.u32 %s818_s16, 2  ;;  %s531_s21 = sshll.u32 %s818_s16, 3  ;;  %v707_v18 = vld [vmem:[%s815_s2] ss:$0 sm:$0xff] }
   0xd   : > { %352 = vmatpush.bf16.msra.mxu0 %v343_v1  ;;  %630 = vmatpush.bf16.msra.mxu1 %v343_v1  ;;  %s166_s20 = scalar_lea.vmem %s813_s0, %s529_s17  ;;  %s712_s26 = scalar_lea.vmem %s816_s3, %s531_s21 }
   0xe   : > { %631 = vmatpush.bf16.msra.mxu2 %v343_v1  ;;  %632 = vmatpush.bf16.msra.mxu3 %v343_v1  ;;  %v614_v2 = vld [vmem:[%s166_s20] sm:$0xff]  ;;  %v615_v6 = vld [vmem:[%s166_s20 + $0x8] sm:$0xff]  ;;  %v616_v10 = vld [vmem:[%s166_s20 + $0x10] sm:$0xff] }
   0xf   : > { %v618_v3 = vld [vmem:[%s166_s20 + $0x20] sm:$0xff]  ;;  %v619_v7 = vld [vmem:[%s166_s20 + $0x28] sm:$0xff]  ;;  %v620_v11 = vld [vmem:[%s166_s20 + $0x30] sm:$0xff] }
  0x10   : > { %v622_v4 = vld [vmem:[%s166_s20 + $0x40] sm:$0xff]  ;;  %596 = vmatmul.msk.bf16.vlgmr.msra.gmra.mxu0 %vm292_vm1, %v614_v2  ;;  %600 = vmatmul.msk.bf16.vlgmr.msra.gmra.mxu1 %vm292_vm1, %v618_v3  ;;  %v623_v8 = vld [vmem:[%s166_s20 + $0x48] sm:$0xff]  ;;  %v624_v12 = vld [vmem:[%s166_s20 + $0x50] sm:$0xff] }
  0x11   : > { %v626_v5 = vld [vmem:[%s166_s20 + $0x60] sm:$0xff]  ;;  %604 = vmatmul.msk.bf16.vlgmr.msra.gmra.mxu2 %vm292_vm1, %v622_v4  ;;  %v627_v9 = vld [vmem:[%s166_s20 + $0x68] sm:$0xff]  ;;  %v628_v13 = vld [vmem:[%s166_s20 + $0x70] sm:$0xff] }
  0x12   : > { %608 = vmatmul.msk.bf16.vlgmr.msra.gmra.mxu3 %vm292_vm1, %v626_v5  ;;  %v617_v14 = vld [vmem:[%s166_s20 + $0x18] sm:$0xff] }
  0x13   : > { %v621_v15 = vld [vmem:[%s166_s20 + $0x38] sm:$0xff] }
  0x14   : > { %v625_v16 = vld [vmem:[%s166_s20 + $0x58] sm:$0xff] }
  0x15   : > { %v629_v17 = vld [vmem:[%s166_s20 + $0x78] sm:$0xff] }
  0x20   : > { %597 = vmatmul.msk.bf16.gmra.mxu0 %vm292_vm1, %v615_v6  ;;  %601 = vmatmul.msk.bf16.gmra.mxu1 %vm292_vm1, %v619_v7 }
  0x21   : > { %605 = vmatmul.msk.bf16.gmra.mxu2 %vm292_vm1, %v623_v8 }
  0x22   : > { %609 = vmatmul.msk.bf16.gmra.mxu3 %vm292_vm1, %v627_v9 }
  0x30   : > { %598 = vmatmul.msk.bf16.gmra.mxu0 %vm292_vm1, %v616_v10  ;;  %602 = vmatmul.msk.bf16.gmra.mxu1 %vm292_vm1, %v620_v11 }
  0x31   : > { %606 = vmatmul.msk.bf16.gmra.mxu2 %vm292_vm1, %v624_v12 }
  0x32   : > { %610 = vmatmul.msk.bf16.gmra.mxu3 %vm292_vm1, %v628_v13 }
  0x40   : > { %599 = vmatmul.msk.bf16.gmra.mxu0 %vm292_vm1, %v617_v14  ;;  %603 = vmatmul.msk.bf16.gmra.mxu1 %vm292_vm1, %v621_v15 }
  0x41   : > { %607 = vmatmul.msk.bf16.gmra.mxu2 %vm292_vm1, %v625_v16 }
  0x42   : > { %611 = vmatmul.msk.bf16.gmra.mxu3 %vm292_vm1, %v629_v17 }
  0x8d   : > { %v354_v19 = vpop.f32.mrf.mxu0  ;;  %v374_v20 = vpop.f32.mrf.mxu1 }
  0x8e   : > { %v355_v21 = vadd.f32 %v707_v18, %v354_v19  ;;  %v375_v22 = vadd.f32 %v707_v18, %v374_v20 }
  0x90   : > { %435 = vst.msk [vmem:[%s712_s26] sm:$0xff] %vm434_vm2, %v355_v21 }
  0x91   : > { %443 = vst.msk [vmem:[%s712_s26 + $0x40] sm:$0xff] %vm434_vm2, %v375_v22 }
  0x94   : > { %v394_v23 = vpop.f32.mrf.mxu2 }
  0x95   : > { %v414_v24 = vpop.f32.mrf.mxu3  ;;  %v395_v25 = vadd.f32 %v707_v18, %v394_v23  ;;  %v356_v27 = vpop.f32.mrf.mxu0 }
  0x96   : > { %v415_v26 = vadd.f32 %v707_v18, %v414_v24  ;;  %v376_v28 = vpop.f32.mrf.mxu1  ;;  %v357_v29 = vadd.f32 %v707_v18, %v356_v27 }
  0x97   : > { %v377_v30 = vadd.f32 %v707_v18, %v376_v28  ;;  %451 = vst.msk [vmem:[%s712_s26 + $0x80] sm:$0xff] %vm434_vm2, %v395_v25 }
  0x98   : > { %459 = vst.msk [vmem:[%s712_s26 + $0xc0] sm:$0xff] %vm434_vm2, %v415_v26 }
  0x99   : > { %436 = vst.msk [vmem:[%s712_s26 + $0x8] sm:$0xff] %vm434_vm2, %v357_v29 }
  0x9a   : > { %444 = vst.msk [vmem:[%s712_s26 + $0x48] sm:$0xff] %vm434_vm2, %v377_v30 }
  0x9c   : > { %v396_v31 = vpop.f32.mrf.mxu2 }
  0x9d   : > { %v416_v32 = vpop.f32.mrf.mxu3  ;;  %v397_v33 = vadd.f32 %v707_v18, %v396_v31  ;;  %v359_v35 = vpop.f32.mrf.mxu0 }
  0x9e   : > { %v417_v34 = vadd.f32 %v707_v18, %v416_v32  ;;  %v379_v36 = vpop.f32.mrf.mxu1  ;;  %v360_v37 = vadd.f32 %v707_v18, %v359_v35 }
  0x9f   : > { %v380_v38 = vadd.f32 %v707_v18, %v379_v36  ;;  %452 = vst.msk [vmem:[%s712_s26 + $0x88] sm:$0xff] %vm434_vm2, %v397_v33 }
  0xa0   : > { %460 = vst.msk [vmem:[%s712_s26 + $0xc8] sm:$0xff] %vm434_vm2, %v417_v34 }
  0xa1   : > { %437 = vst.msk [vmem:[%s712_s26 + $0x10] sm:$0xff] %vm434_vm2, %v360_v37 }
  0xa2   : > { %445 = vst.msk [vmem:[%s712_s26 + $0x50] sm:$0xff] %vm434_vm2, %v380_v38 }
  0xa4   : > { %v399_v39 = vpop.f32.mrf.mxu2 }
  0xa5   : > { %v419_v40 = vpop.f32.mrf.mxu3  ;;  %v400_v41 = vadd.f32 %v707_v18, %v399_v39  ;;  %v361_v43 = vpop.f32.mrf.mxu0 }
  0xa6   : > { %v420_v42 = vadd.f32 %v707_v18, %v419_v40  ;;  %v381_v44 = vpop.f32.mrf.mxu1  ;;  %v362_v45 = vadd.f32 %v707_v18, %v361_v43 }
  0xa7   : > { %v382_v46 = vadd.f32 %v707_v18, %v381_v44  ;;  %453 = vst.msk [vmem:[%s712_s26 + $0x90] sm:$0xff] %vm434_vm2, %v400_v41 }
  0xa8   : > { %461 = vst.msk [vmem:[%s712_s26 + $0xd0] sm:$0xff] %vm434_vm2, %v420_v42 }
  0xa9   : > { %438 = vst.msk [vmem:[%s712_s26 + $0x18] sm:$0xff] %vm434_vm2, %v362_v45 }
  0xaa   : > { %446 = vst.msk [vmem:[%s712_s26 + $0x58] sm:$0xff] %vm434_vm2, %v382_v46 }
  0xac   : > { %v401_v47 = vpop.f32.mrf.mxu2 }
  0xad   : > { %v421_v48 = vpop.f32.mrf.mxu3  ;;  %v402_v49 = vadd.f32 %v707_v18, %v401_v47  ;;  %v364_v51 = vpop.f32.mrf.mxu0 }
  0xae   : > { %v422_v50 = vadd.f32 %v707_v18, %v421_v48  ;;  %v384_v52 = vpop.f32.mrf.mxu1  ;;  %v365_v53 = vadd.f32 %v707_v18, %v364_v51 }
  0xaf   : > { %v385_v54 = vadd.f32 %v707_v18, %v384_v52  ;;  %454 = vst.msk [vmem:[%s712_s26 + $0x98] sm:$0xff] %vm434_vm2, %v402_v49 }
  0xb0   : > { %462 = vst.msk [vmem:[%s712_s26 + $0xd8] sm:$0xff] %vm434_vm2, %v422_v50 }
  0xb1   : > { %439 = vst.msk [vmem:[%s712_s26 + $0x20] sm:$0xff] %vm434_vm2, %v365_v53 }
  0xb2   : > { %447 = vst.msk [vmem:[%s712_s26 + $0x60] sm:$0xff] %vm434_vm2, %v385_v54 }
  0xb4   : > { %v404_v55 = vpop.f32.mrf.mxu2 }
  0xb5   : > { %v424_v56 = vpop.f32.mrf.mxu3  ;;  %v405_v57 = vadd.f32 %v707_v18, %v404_v55  ;;  %v366_v59 = vpop.f32.mrf.mxu0 }
  0xb6   : > { %v425_v58 = vadd.f32 %v707_v18, %v424_v56  ;;  %v386_v60 = vpop.f32.mrf.mxu1  ;;  %v367_v61 = vadd.f32 %v707_v18, %v366_v59 }
  0xb7   : > { %v387_v62 = vadd.f32 %v707_v18, %v386_v60  ;;  %455 = vst.msk [vmem:[%s712_s26 + $0xa0] sm:$0xff] %vm434_vm2, %v405_v57 }
  0xb8   : > { %463 = vst.msk [vmem:[%s712_s26 + $0xe0] sm:$0xff] %vm434_vm2, %v425_v58 }
  0xb9   : > { %440 = vst.msk [vmem:[%s712_s26 + $0x28] sm:$0xff] %vm434_vm2, %v367_v61 }
  0xba   : > { %448 = vst.msk [vmem:[%s712_s26 + $0x68] sm:$0xff] %vm434_vm2, %v387_v62 }
  0xbc   : > { %v406_v63 = vpop.f32.mrf.mxu2 }
  0xbd   : > { %v426_v0 = vpop.f32.mrf.mxu3  ;;  %v407_v1 = vadd.f32 %v707_v18, %v406_v63  ;;  %v369_v3 = vpop.f32.mrf.mxu0 }
  0xbe   : > { %v427_v2 = vadd.f32 %v707_v18, %v426_v0  ;;  %v389_v4 = vpop.f32.mrf.mxu1  ;;  %v370_v5 = vadd.f32 %v707_v18, %v369_v3 }
  0xbf   : > { %v390_v6 = vadd.f32 %v707_v18, %v389_v4  ;;  %456 = vst.msk [vmem:[%s712_s26 + $0xa8] sm:$0xff] %vm434_vm2, %v407_v1 }
  0xc0   : > { %464 = vst.msk [vmem:[%s712_s26 + $0xe8] sm:$0xff] %vm434_vm2, %v427_v2 }
  0xc1   : > { %441 = vst.msk [vmem:[%s712_s26 + $0x30] sm:$0xff] %vm434_vm2, %v370_v5 }
  0xc2   : > { %449 = vst.msk [vmem:[%s712_s26 + $0x70] sm:$0xff] %vm434_vm2, %v390_v6 }
  0xc4   : > { %v409_v7 = vpop.f32.mrf.mxu2 }
  0xc5   : > { %v429_v8 = vpop.f32.mrf.mxu3  ;;  %v410_v9 = vadd.f32 %v707_v18, %v409_v7  ;;  %v371_v11 = vpop.f32.mrf.mxu0 }
  0xc6   : > { %v430_v10 = vadd.f32 %v707_v18, %v429_v8  ;;  %v391_v12 = vpop.f32.mrf.mxu1  ;;  %v372_v13 = vadd.f32 %v707_v18, %v371_v11 }
  0xc7   : > { %v392_v14 = vadd.f32 %v707_v18, %v391_v12  ;;  %457 = vst.msk [vmem:[%s712_s26 + $0xb0] sm:$0xff] %vm434_vm2, %v410_v9 }
  0xc8   : > { %465 = vst.msk [vmem:[%s712_s26 + $0xf0] sm:$0xff] %vm434_vm2, %v430_v10 }
  0xc9   : > { %442 = vst.msk [vmem:[%s712_s26 + $0x38] sm:$0xff] %vm434_vm2, %v372_v13 }
  0xca   : > { %450 = vst.msk [vmem:[%s712_s26 + $0x78] sm:$0xff] %vm434_vm2, %v392_v14 }
  0xcc   : > { %v411_v15 = vpop.f32.mrf.mxu2 }
  0xcd   : > { %v431_v16 = vpop.f32.mrf.mxu3  ;;  %v412_v17 = vadd.f32 %v707_v18, %v411_v15 }
  0xce   : > { %v432_v19 = vadd.f32 %v707_v18, %v431_v16 }
  0xcf   : > { %458 = vst.msk [vmem:[%s712_s26 + $0xb8] sm:$0xff] %vm434_vm2, %v412_v17 }
  0xd0   : > { %466 = vst.msk [vmem:[%s712_s26 + $0xf8] sm:$0xff] %vm434_vm2, %v432_v19 }
  0xd1 PF: > { %s13_s12 = sadd.s32 1, %s648_s12  }
  0xd2   : > { %p10_p4 = scmp.ge.s32.totalorder %s13_s12, 4  }
  0xd4   :  { %12 = sbr.rel (!%p10_p4) target bundleno = 1 (0x1), region = 62 }

// kernel: flexible_resunet_forward.32
= control target key start
LH: loop header
LB: loop body
LE: loop exit
PB: predicated region body
PF: predicated region fallthrough
CT: control target
= control target key end

     0   :  { %s1332_s18 = smov 0   ;;  %s1558_s0 = inlined_call_operand.vmem [shape: bf16[512,72], index: 0, kind: input, shape index: {}]   ;;  %s1559_s1 = inlined_call_operand.vmem [shape: bf16[72,8], index: 1, kind: input, shape index: {}]   ;;  %s1560_s2 = inlined_call_operand.vmem [shape: bf16[512,72], index: 2, kind: input, shape index: {}]   ;;  %s1561_s3 = inlined_call_operand.vmem [shape: bf16[72,8], index: 3, kind: input, shape index: {}]   ;;  %s1562_s4 = inlined_call_operand.vmem [shape: f32[1,8], index: 4, kind: input, shape index: {}]   ;;  %s1563_s5 = inlined_call_operand.vmem [shape: bf16[512,8], index: 5, kind: output, shape index: {}]  }
   0x1 LB: > { %s1030_s19 = sadd.s32 4294967295, %s1300_s18   ;;  %p1034_p0 = scmp.ge.s32.totalorder %s1300_s18, 1  ;;  %s1300_s18 = sphi %s1332_s18, %s15_s18  }
   0x2   : > { %p199_p1 = scmp.lt.s32.totalorder %s1300_s18, 3 }
   0x4   : > { %p200_p2 = pnand %p1034_p0, %p199_p1 }
   0x5   : > { %s1035_s24 = sshll.u32 (!%p200_p2), %s1030_s19, 5 }
   0x6   : > { %203 = sbr.rel (%p200_p2) target bundleno = 298 (0x12a), region = 40  ;;  %p233_p3 = scmp.lt.s32.totalorder (!%p200_p2), %s1035_s24, 63 }
   0xb   : > { %v332_v0 = vld [vmem:[%s1561_s3 + $0x20] sm:$0xf]  ;;  %vm489_vm0 = vcmask 1043456   ;;  %v1274_v8 = vld [vmem:[%s1561_s3 + $0x18] sm:$0xff]  ;;  %v1273_v10 = vld [vmem:[%s1561_s3 + $0x10] sm:$0xff]  ;;  %s1565_s24 = smov (!%p233_p3, %s1035_s24), 63 }
   0xc   : > { %v291_v1 = vld [vmem:[%s1559_s1 + $0x20] sm:$0xf]  ;;  %v430_v2 = vunpack.c.l.b16 %v332_v0  ;;  %v1254_v9 = vld [vmem:[%s1559_s1 + $0x18] sm:$0xff]  ;;  %v1253_v11 = vld [vmem:[%s1559_s1 + $0x10] sm:$0xff]  ;;  %s1364_s12 = sshll.u32 %s1565_s24, 2  ;;  %vm440_vm1 = vcmask 588800  }
   0xd   : > { %v679_v3 = vunpack.c.l.b16 %v291_v1  ;;  %v1272_v12 = vld [vmem:[%s1561_s3 + $0x8] sm:$0xff]  ;;  %v1271_v14 = vld [vmem:[%s1561_s3] sm:$0xff]  ;;  %s1373_s17 = scalar_lea.vmem %s1560_s2, %s1364_s12  ;;  %s1382_s23 = scalar_lea.vmem %s1558_s0, %s1364_s12  ;;  %vm929_vm2 = vcmask 60416  }
   0xe   : > { %v435_v4 = vpack.c.b16 %v430_v2, %v430_v2  ;;  %v1252_v13 = vld [vmem:[%s1559_s1 + $0x8] sm:$0xff]  ;;  %v1251_v15 = vld [vmem:[%s1559_s1] sm:$0xff]  ;;  %v1257_v24 = vld [vmem:[%s1373_s17 + $0x10] sm:$0xff]  ;;  %s1458_s28 = scalar_lea.vmem %s1563_s5, %s1364_s12 }
   0xf   : > { %v684_v5 = vpack.c.b16 %v679_v3, %v679_v3  ;;  %v1255_v16 = vld [vmem:[%s1373_s17] sm:$0xff]  ;;  %v1256_v20 = vld [vmem:[%s1373_s17 + $0x8] sm:$0xff]  ;;  %v1265_v25 = vld [vmem:[%s1373_s17 + $0x50] sm:$0xff] }
  0x10   : > { %v491_v6 = vsel %vm489_vm0, %v435_v4, 0  ;;  %v1263_v17 = vld [vmem:[%s1373_s17 + $0x40] sm:$0xff]  ;;  %v1264_v21 = vld [vmem:[%s1373_s17 + $0x48] sm:$0xff]  ;;  %v1237_v26 = vld [vmem:[%s1382_s23 + $0x10] sm:$0xff] }
  0x11   : > { %v738_v7 = vsel %vm489_vm0, %v684_v5, 0  ;;  %496 = vmatpush.bf16.msra.mxu0 %v491_v6  ;;  %1275 = vmatpush.bf16.msra.mxu2 %v491_v6  ;;  %v1235_v18 = vld [vmem:[%s1382_s23] sm:$0xff]  ;;  %v1236_v22 = vld [vmem:[%s1382_s23 + $0x8] sm:$0xff]  ;;  %v1245_v27 = vld [vmem:[%s1382_s23 + $0x50] sm:$0xff] }
  0x12   : > { %743 = vmatpush.bf16.msra.mxu1 %v738_v7  ;;  %1280 = vmatpush.bf16.msra.mxu3 %v738_v7  ;;  %v1243_v19 = vld [vmem:[%s1382_s23 + $0x40] sm:$0xff]  ;;  %v1244_v23 = vld [vmem:[%s1382_s23 + $0x48] sm:$0xff]  ;;  %v1258_v28 = vld [vmem:[%s1373_s17 + $0x18] sm:$0xff] }
  0x13   : > { %v1266_v29 = vld [vmem:[%s1373_s17 + $0x58] sm:$0xff]  ;;  %v1259_v32 = vld [vmem:[%s1373_s17 + $0x20] sm:$0xff]  ;;  %v1260_v36 = vld [vmem:[%s1373_s17 + $0x28] sm:$0xff] }
  0x14   : > { %v1238_v30 = vld [vmem:[%s1382_s23 + $0x18] sm:$0xff]  ;;  %v1267_v33 = vld [vmem:[%s1373_s17 + $0x60] sm:$0xff]  ;;  %v1268_v37 = vld [vmem:[%s1373_s17 + $0x68] sm:$0xff] }
  0x15   : > { %497 = vmatpush.bf16.msra.mxu0 %v1274_v8  ;;  %1276 = vmatpush.bf16.msra.mxu2 %v1274_v8  ;;  %v1246_v31 = vld [vmem:[%s1382_s23 + $0x58] sm:$0xff]  ;;  %v1239_v34 = vld [vmem:[%s1382_s23 + $0x20] sm:$0xff]  ;;  %v1240_v38 = vld [vmem:[%s1382_s23 + $0x28] sm:$0xff] }
  0x16   : > { %744 = vmatpush.bf16.msra.mxu1 %v1254_v9  ;;  %1281 = vmatpush.bf16.msra.mxu3 %v1254_v9  ;;  %v1247_v35 = vld [vmem:[%s1382_s23 + $0x60] sm:$0xff]  ;;  %v1248_v39 = vld [vmem:[%s1382_s23 + $0x68] sm:$0xff]  ;;  %v1261_v40 = vld [vmem:[%s1373_s17 + $0x30] sm:$0xff] }
  0x17   : > { %v1269_v41 = vld [vmem:[%s1373_s17 + $0x70] sm:$0xff]  ;;  %v1262_v44 = vld [vmem:[%s1373_s17 + $0x38] sm:$0xff]  ;;  %v1451_v49 = vld [vmem:[%s1562_s4] ss:$0 sm:$0xff] }
  0x18   : > { %v1241_v42 = vld [vmem:[%s1382_s23 + $0x30] sm:$0xff]  ;;  %v1270_v45 = vld [vmem:[%s1373_s17 + $0x78] sm:$0xff] }
  0x19   : > { %498 = vmatpush.bf16.msra.mxu0 %v1273_v10  ;;  %1277 = vmatpush.bf16.msra.mxu2 %v1273_v10  ;;  %v1249_v43 = vld [vmem:[%s1382_s23 + $0x70] sm:$0xff]  ;;  %v1242_v46 = vld [vmem:[%s1382_s23 + $0x38] sm:$0xff] }
  0x1a   : > { %745 = vmatpush.bf16.msra.mxu1 %v1253_v11  ;;  %1282 = vmatpush.bf16.msra.mxu3 %v1253_v11  ;;  %v1250_v47 = vld [vmem:[%s1382_s23 + $0x78] sm:$0xff] }
  0x1d   : > { %499 = vmatpush.bf16.msra.mxu0 %v1272_v12  ;;  %1278 = vmatpush.bf16.msra.mxu2 %v1272_v12 }
  0x1e   : > { %746 = vmatpush.bf16.msra.mxu1 %v1252_v13  ;;  %1283 = vmatpush.bf16.msra.mxu3 %v1252_v13 }
  0x21   : > { %500 = vmatpush.bf16.msra.mxu0 %v1271_v14  ;;  %1279 = vmatpush.bf16.msra.mxu2 %v1271_v14 }
  0x22   : > { %747 = vmatpush.bf16.msra.mxu1 %v1251_v15  ;;  %1284 = vmatpush.bf16.msra.mxu3 %v1251_v15 }
  0x24   : > { %1121 = vmatmul.msk.bf16.vlgmr.msra.gmra.mxu0 %vm440_vm1, %v1255_v16  ;;  %1129 = vmatmul.msk.bf16.vlgmr.msra.gmra.mxu2 %vm440_vm1, %v1263_v17 }
  0x25   : > { %1217 = vmatmul.msk.bf16.vlgmr.msra.gmra.mxu1 %vm440_vm1, %v1235_v18  ;;  %1225 = vmatmul.msk.bf16.vlgmr.msra.gmra.mxu3 %vm440_vm1, %v1243_v19 }
  0x34   : > { %1122 = vmatmul.msk.bf16.gmra.mxu0 %vm440_vm1, %v1256_v20  ;;  %1130 = vmatmul.msk.bf16.gmra.mxu2 %vm440_vm1, %v1264_v21 }
  0x35   : > { %1218 = vmatmul.msk.bf16.gmra.mxu1 %vm440_vm1, %v1236_v22  ;;  %1226 = vmatmul.msk.bf16.gmra.mxu3 %vm440_vm1, %v1244_v23 }
  0x44   : > { %1123 = vmatmul.msk.bf16.gmra.mxu0 %vm440_vm1, %v1257_v24  ;;  %1131 = vmatmul.msk.bf16.gmra.mxu2 %vm440_vm1, %v1265_v25 }
  0x45   : > { %1219 = vmatmul.msk.bf16.gmra.mxu1 %vm440_vm1, %v1237_v26  ;;  %1227 = vmatmul.msk.bf16.gmra.mxu3 %vm440_vm1, %v1245_v27 }
  0x54   : > { %1124 = vmatmul.msk.bf16.gmra.mxu0 %vm440_vm1, %v1258_v28  ;;  %1132 = vmatmul.msk.bf16.gmra.mxu2 %vm440_vm1, %v1266_v29 }
  0x55   : > { %1220 = vmatmul.msk.bf16.gmra.mxu1 %vm440_vm1, %v1238_v30  ;;  %1228 = vmatmul.msk.bf16.gmra.mxu3 %vm440_vm1, %v1246_v31 }
  0x64   : > { %1125 = vmatmul.msk.bf16.gmra.mxu0 %vm440_vm1, %v1259_v32  ;;  %1133 = vmatmul.msk.bf16.gmra.mxu2 %vm440_vm1, %v1267_v33 }
  0x65   : > { %1221 = vmatmul.msk.bf16.gmra.mxu1 %vm440_vm1, %v1239_v34  ;;  %1229 = vmatmul.msk.bf16.gmra.mxu3 %vm440_vm1, %v1247_v35 }
  0x74   : > { %1126 = vmatmul.msk.bf16.gmra.mxu0 %vm440_vm1, %v1260_v36  ;;  %1134 = vmatmul.msk.bf16.gmra.mxu2 %vm440_vm1, %v1268_v37 }
  0x75   : > { %1222 = vmatmul.msk.bf16.gmra.mxu1 %vm440_vm1, %v1240_v38  ;;  %1230 = vmatmul.msk.bf16.gmra.mxu3 %vm440_vm1, %v1248_v39 }
  0x84   : > { %1127 = vmatmul.msk.bf16.gmra.mxu0 %vm440_vm1, %v1261_v40  ;;  %1135 = vmatmul.msk.bf16.gmra.mxu2 %vm440_vm1, %v1269_v41 }
  0x85   : > { %1223 = vmatmul.msk.bf16.gmra.mxu1 %vm440_vm1, %v1241_v42  ;;  %1231 = vmatmul.msk.bf16.gmra.mxu3 %vm440_vm1, %v1249_v43 }
  0x94   : > { %1128 = vmatmul.msk.bf16.gmra.mxu0 %vm440_vm1, %v1262_v44  ;;  %1136 = vmatmul.msk.bf16.gmra.mxu2 %vm440_vm1, %v1270_v45 }
  0x95   : > { %1224 = vmatmul.msk.bf16.gmra.mxu1 %vm440_vm1, %v1242_v46  ;;  %1232 = vmatmul.msk.bf16.gmra.mxu3 %vm440_vm1, %v1250_v47 }
  0xa1   : > { %v502_v48 = vpop.f32.mrf.mxu0 }
  0xa2   : > { %v749_v50 = vpop.f32.mrf.mxu1 }
  0xa3   : > { %v750_v51 = vadd.f32 %v749_v50, %v502_v48 }
  0xa5   : > { %v833_v52 = vadd.f32 %v1451_v49, %v750_v51 }
  0xa7   : > { %v865_v53 = vmax.f32 %v833_v52, 0.0  ;;  %v542_v54 = vpop.f32.mrf.mxu2 }
  0xa8   : > { %v789_v55 = vpop.f32.mrf.mxu3 }
  0xa9   : > { %v897_v56 = vpack.c.bf16 %v865_v53, %v865_v53  ;;  %v790_v57 = vadd.f32 %v789_v55, %v542_v54  ;;  %v504_v58 = vpop.f32.mrf.mxu0 }
  0xaa   : > { %v751_v59 = vpop.f32.mrf.mxu1 }
  0xab   : > { %930 = vst.msk [vmem:[%s1458_s28] sm:$0xf] %vm929_vm2, %v897_v56  ;;  %v849_v60 = vadd.f32 %v1451_v49, %v790_v57  ;;  %v752_v61 = vadd.f32 %v751_v59, %v504_v58 }
  0xad   : > { %v881_v62 = vmax.f32 %v849_v60, 0.0  ;;  %v834_v63 = vadd.f32 %v1451_v49, %v752_v61 }
  0xaf   : > { %v913_v0 = vpack.c.bf16 %v881_v62, %v881_v62  ;;  %v866_v1 = vmax.f32 %v834_v63, 0.0  ;;  %v544_v2 = vpop.f32.mrf.mxu2 }
  0xb0   : > { %v791_v3 = vpop.f32.mrf.mxu3 }
  0xb1   : > { %946 = vst.msk [vmem:[%s1458_s28 + $0x40] sm:$0xf] %vm929_vm2, %v913_v0  ;;  %v898_v4 = vpack.c.bf16 %v866_v1, %v866_v1  ;;  %v792_v5 = vadd.f32 %v791_v3, %v544_v2  ;;  %v507_v6 = vpop.f32.mrf.mxu0 }
  0xb2   : > { %v754_v7 = vpop.f32.mrf.mxu1 }
  0xb3   : > { %931 = vst.msk [vmem:[%s1458_s28 + $0x4] sm:$0xf] %vm929_vm2, %v898_v4  ;;  %v850_v8 = vadd.f32 %v1451_v49, %v792_v5  ;;  %v755_v9 = vadd.f32 %v754_v7, %v507_v6 }
  0xb5   : > { %v882_v10 = vmax.f32 %v850_v8, 0.0  ;;  %v835_v11 = vadd.f32 %v1451_v49, %v755_v9 }
  0xb7   : > { %v914_v12 = vpack.c.bf16 %v882_v10, %v882_v10  ;;  %v867_v13 = vmax.f32 %v835_v11, 0.0  ;;  %v547_v14 = vpop.f32.mrf.mxu2 }
  0xb8   : > { %v794_v15 = vpop.f32.mrf.mxu3 }
  0xb9   : > { %947 = vst.msk [vmem:[%s1458_s28 + $0x44] sm:$0xf] %vm929_vm2, %v914_v12  ;;  %v899_v16 = vpack.c.bf16 %v867_v13, %v867_v13  ;;  %v795_v17 = vadd.f32 %v794_v15, %v547_v14  ;;  %v509_v18 = vpop.f32.mrf.mxu0 }
  0xba   : > { %v756_v19 = vpop.f32.mrf.mxu1 }
  0xbb   : > { %932 = vst.msk [vmem:[%s1458_s28 + $0x8] sm:$0xf] %vm929_vm2, %v899_v16  ;;  %v851_v20 = vadd.f32 %v1451_v49, %v795_v17  ;;  %v757_v21 = vadd.f32 %v756_v19, %v509_v18 }
  0xbd   : > { %v883_v22 = vmax.f32 %v851_v20, 0.0  ;;  %v836_v23 = vadd.f32 %v1451_v49, %v757_v21 }
  0xbf   : > { %v915_v24 = vpack.c.bf16 %v883_v22, %v883_v22  ;;  %v868_v25 = vmax.f32 %v836_v23, 0.0  ;;  %v549_v26 = vpop.f32.mrf.mxu2 }
  0xc0   : > { %v796_v27 = vpop.f32.mrf.mxu3 }
  0xc1   : > { %948 = vst.msk [vmem:[%s1458_s28 + $0x48] sm:$0xf] %vm929_vm2, %v915_v24  ;;  %v900_v28 = vpack.c.bf16 %v868_v25, %v868_v25  ;;  %v797_v29 = vadd.f32 %v796_v27, %v549_v26  ;;  %v512_v30 = vpop.f32.mrf.mxu0 }
  0xc2   : > { %v759_v31 = vpop.f32.mrf.mxu1 }
  0xc3   : > { %933 = vst.msk [vmem:[%s1458_s28 + $0xc] sm:$0xf] %vm929_vm2, %v900_v28  ;;  %v852_v32 = vadd.f32 %v1451_v49, %v797_v29  ;;  %v760_v33 = vadd.f32 %v759_v31, %v512_v30 }
  0xc5   : > { %v884_v34 = vmax.f32 %v852_v32, 0.0  ;;  %v837_v35 = vadd.f32 %v1451_v49, %v760_v33 }
  0xc7   : > { %v916_v36 = vpack.c.bf16 %v884_v34, %v884_v34  ;;  %v869_v37 = vmax.f32 %v837_v35, 0.0  ;;  %v552_v38 = vpop.f32.mrf.mxu2 }
  0xc8   : > { %v799_v39 = vpop.f32.mrf.mxu3 }
  0xc9   : > { %949 = vst.msk [vmem:[%s1458_s28 + $0x4c] sm:$0xf] %vm929_vm2, %v916_v36  ;;  %v901_v40 = vpack.c.bf16 %v869_v37, %v869_v37  ;;  %v800_v41 = vadd.f32 %v799_v39, %v552_v38  ;;  %v514_v42 = vpop.f32.mrf.mxu0 }
  0xca   : > { %v761_v43 = vpop.f32.mrf.mxu1 }
  0xcb   : > { %934 = vst.msk [vmem:[%s1458_s28 + $0x10] sm:$0xf] %vm929_vm2, %v901_v40  ;;  %v853_v44 = vadd.f32 %v1451_v49, %v800_v41  ;;  %v762_v45 = vadd.f32 %v761_v43, %v514_v42 }
  0xcd   : > { %v885_v46 = vmax.f32 %v853_v44, 0.0  ;;  %v838_v47 = vadd.f32 %v1451_v49, %v762_v45 }
  0xcf   : > { %v917_v48 = vpack.c.bf16 %v885_v46, %v885_v46  ;;  %v870_v50 = vmax.f32 %v838_v47, 0.0  ;;  %v554_v51 = vpop.f32.mrf.mxu2 }
  0xd0   : > { %v801_v52 = vpop.f32.mrf.mxu3 }
  0xd1   : > { %950 = vst.msk [vmem:[%s1458_s28 + $0x50] sm:$0xf] %vm929_vm2, %v917_v48  ;;  %v902_v53 = vpack.c.bf16 %v870_v50, %v870_v50  ;;  %v802_v54 = vadd.f32 %v801_v52, %v554_v51  ;;  %v517_v55 = vpop.f32.mrf.mxu0 }
  0xd2   : > { %v764_v56 = vpop.f32.mrf.mxu1 }
  0xd3   : > { %935 = vst.msk [vmem:[%s1458_s28 + $0x14] sm:$0xf] %vm929_vm2, %v902_v53  ;;  %v854_v57 = vadd.f32 %v1451_v49, %v802_v54  ;;  %v765_v58 = vadd.f32 %v764_v56, %v517_v55 }
  0xd5   : > { %v886_v59 = vmax.f32 %v854_v57, 0.0  ;;  %v839_v60 = vadd.f32 %v1451_v49, %v765_v58 }
  0xd7   : > { %v918_v61 = vpack.c.bf16 %v886_v59, %v886_v59  ;;  %v871_v62 = vmax.f32 %v839_v60, 0.0  ;;  %v557_v63 = vpop.f32.mrf.mxu2 }
  0xd8   : > { %v804_v0 = vpop.f32.mrf.mxu3 }
  0xd9   : > { %951 = vst.msk [vmem:[%s1458_s28 + $0x54] sm:$0xf] %vm929_vm2, %v918_v61  ;;  %v903_v1 = vpack.c.bf16 %v871_v62, %v871_v62  ;;  %v805_v2 = vadd.f32 %v804_v0, %v557_v63  ;;  %v519_v3 = vpop.f32.mrf.mxu0 }
  0xda   : > { %v766_v4 = vpop.f32.mrf.mxu1 }
  0xdb   : > { %936 = vst.msk [vmem:[%s1458_s28 + $0x18] sm:$0xf] %vm929_vm2, %v903_v1  ;;  %v855_v5 = vadd.f32 %v1451_v49, %v805_v2  ;;  %v767_v6 = vadd.f32 %v766_v4, %v519_v3 }
  0xdd   : > { %v887_v7 = vmax.f32 %v855_v5, 0.0  ;;  %v840_v8 = vadd.f32 %v1451_v49, %v767_v6 }
  0xdf   : > { %v919_v9 = vpack.c.bf16 %v887_v7, %v887_v7  ;;  %v872_v10 = vmax.f32 %v840_v8, 0.0  ;;  %v559_v11 = vpop.f32.mrf.mxu2 }
  0xe0   : > { %v806_v12 = vpop.f32.mrf.mxu3 }
  0xe1   : > { %952 = vst.msk [vmem:[%s1458_s28 + $0x58] sm:$0xf] %vm929_vm2, %v919_v9  ;;  %v904_v13 = vpack.c.bf16 %v872_v10, %v872_v10  ;;  %v807_v14 = vadd.f32 %v806_v12, %v559_v11  ;;  %v522_v15 = vpop.f32.mrf.mxu0 }
  0xe2   : > { %v769_v16 = vpop.f32.mrf.mxu1 }
  0xe3   : > { %937 = vst.msk [vmem:[%s1458_s28 + $0x1c] sm:$0xf] %vm929_vm2, %v904_v13  ;;  %v856_v17 = vadd.f32 %v1451_v49, %v807_v14  ;;  %v770_v18 = vadd.f32 %v769_v16, %v522_v15 }
  0xe5   : > { %v888_v19 = vmax.f32 %v856_v17, 0.0  ;;  %v841_v20 = vadd.f32 %v1451_v49, %v770_v18 }
  0xe7   : > { %v920_v21 = vpack.c.bf16 %v888_v19, %v888_v19  ;;  %v873_v22 = vmax.f32 %v841_v20, 0.0  ;;  %v562_v23 = vpop.f32.mrf.mxu2 }
  0xe8   : > { %v809_v24 = vpop.f32.mrf.mxu3 }
  0xe9   : > { %953 = vst.msk [vmem:[%s1458_s28 + $0x5c] sm:$0xf] %vm929_vm2, %v920_v21  ;;  %v905_v25 = vpack.c.bf16 %v873_v22, %v873_v22  ;;  %v810_v26 = vadd.f32 %v809_v24, %v562_v23  ;;  %v524_v27 = vpop.f32.mrf.mxu0 }
  0xea   : > { %v771_v28 = vpop.f32.mrf.mxu1 }
  0xeb   : > { %938 = vst.msk [vmem:[%s1458_s28 + $0x20] sm:$0xf] %vm929_vm2, %v905_v25  ;;  %v857_v29 = vadd.f32 %v1451_v49, %v810_v26  ;;  %v772_v30 = vadd.f32 %v771_v28, %v524_v27 }
  0xed   : > { %v889_v31 = vmax.f32 %v857_v29, 0.0  ;;  %v842_v32 = vadd.f32 %v1451_v49, %v772_v30 }
  0xef   : > { %v921_v33 = vpack.c.bf16 %v889_v31, %v889_v31  ;;  %v874_v34 = vmax.f32 %v842_v32, 0.0  ;;  %v564_v35 = vpop.f32.mrf.mxu2 }
  0xf0   : > { %v811_v36 = vpop.f32.mrf.mxu3 }
  0xf1   : > { %954 = vst.msk [vmem:[%s1458_s28 + $0x60] sm:$0xf] %vm929_vm2, %v921_v33  ;;  %v906_v37 = vpack.c.bf16 %v874_v34, %v874_v34  ;;  %v812_v38 = vadd.f32 %v811_v36, %v564_v35  ;;  %v527_v39 = vpop.f32.mrf.mxu0 }
  0xf2   : > { %v774_v40 = vpop.f32.mrf.mxu1 }
  0xf3   : > { %939 = vst.msk [vmem:[%s1458_s28 + $0x24] sm:$0xf] %vm929_vm2, %v906_v37  ;;  %v858_v41 = vadd.f32 %v1451_v49, %v812_v38  ;;  %v775_v42 = vadd.f32 %v774_v40, %v527_v39 }
  0xf5   : > { %v890_v43 = vmax.f32 %v858_v41, 0.0  ;;  %v843_v44 = vadd.f32 %v1451_v49, %v775_v42 }
  0xf7   : > { %v922_v45 = vpack.c.bf16 %v890_v43, %v890_v43  ;;  %v875_v46 = vmax.f32 %v843_v44, 0.0  ;;  %v567_v47 = vpop.f32.mrf.mxu2 }
  0xf8   : > { %v814_v48 = vpop.f32.mrf.mxu3 }
  0xf9   : > { %955 = vst.msk [vmem:[%s1458_s28 + $0x64] sm:$0xf] %vm929_vm2, %v922_v45  ;;  %v907_v50 = vpack.c.bf16 %v875_v46, %v875_v46  ;;  %v815_v51 = vadd.f32 %v814_v48, %v567_v47  ;;  %v529_v52 = vpop.f32.mrf.mxu0 }
  0xfa   : > { %v776_v53 = vpop.f32.mrf.mxu1 }
  0xfb   : > { %940 = vst.msk [vmem:[%s1458_s28 + $0x28] sm:$0xf] %vm929_vm2, %v907_v50  ;;  %v859_v54 = vadd.f32 %v1451_v49, %v815_v51  ;;  %v777_v55 = vadd.f32 %v776_v53, %v529_v52 }
  0xfd   : > { %v891_v56 = vmax.f32 %v859_v54, 0.0  ;;  %v844_v57 = vadd.f32 %v1451_v49, %v777_v55 }
  0xff   : > { %v923_v58 = vpack.c.bf16 %v891_v56, %v891_v56  ;;  %v876_v59 = vmax.f32 %v844_v57, 0.0  ;;  %v569_v60 = vpop.f32.mrf.mxu2 }
 0x100   : > { %v816_v61 = vpop.f32.mrf.mxu3 }
 0x101   : > { %956 = vst.msk [vmem:[%s1458_s28 + $0x68] sm:$0xf] %vm929_vm2, %v923_v58  ;;  %v908_v62 = vpack.c.bf16 %v876_v59, %v876_v59  ;;  %v817_v63 = vadd.f32 %v816_v61, %v569_v60  ;;  %v532_v0 = vpop.f32.mrf.mxu0 }
 0x102   : > { %v779_v1 = vpop.f32.mrf.mxu1 }
 0x103   : > { %941 = vst.msk [vmem:[%s1458_s28 + $0x2c] sm:$0xf] %vm929_vm2, %v908_v62  ;;  %v860_v2 = vadd.f32 %v1451_v49, %v817_v63  ;;  %v780_v3 = vadd.f32 %v779_v1, %v532_v0 }
 0x105   : > { %v892_v4 = vmax.f32 %v860_v2, 0.0  ;;  %v845_v5 = vadd.f32 %v1451_v49, %v780_v3 }
 0x107   : > { %v924_v6 = vpack.c.bf16 %v892_v4, %v892_v4  ;;  %v877_v7 = vmax.f32 %v845_v5, 0.0  ;;  %v572_v8 = vpop.f32.mrf.mxu2 }
 0x108   : > { %v819_v9 = vpop.f32.mrf.mxu3 }
 0x109   : > { %957 = vst.msk [vmem:[%s1458_s28 + $0x6c] sm:$0xf] %vm929_vm2, %v924_v6  ;;  %v909_v10 = vpack.c.bf16 %v877_v7, %v877_v7  ;;  %v820_v11 = vadd.f32 %v819_v9, %v572_v8  ;;  %v534_v12 = vpop.f32.mrf.mxu0 }
 0x10a   : > { %v781_v13 = vpop.f32.mrf.mxu1 }
 0x10b   : > { %942 = vst.msk [vmem:[%s1458_s28 + $0x30] sm:$0xf] %vm929_vm2, %v909_v10  ;;  %v861_v14 = vadd.f32 %v1451_v49, %v820_v11  ;;  %v782_v15 = vadd.f32 %v781_v13, %v534_v12 }
 0x10d   : > { %v893_v16 = vmax.f32 %v861_v14, 0.0  ;;  %v846_v17 = vadd.f32 %v1451_v49, %v782_v15 }
 0x10f   : > { %v925_v18 = vpack.c.bf16 %v893_v16, %v893_v16  ;;  %v878_v19 = vmax.f32 %v846_v17, 0.0  ;;  %v574_v20 = vpop.f32.mrf.mxu2 }
 0x110   : > { %v821_v21 = vpop.f32.mrf.mxu3 }
 0x111   : > { %958 = vst.msk [vmem:[%s1458_s28 + $0x70] sm:$0xf] %vm929_vm2, %v925_v18  ;;  %v910_v22 = vpack.c.bf16 %v878_v19, %v878_v19  ;;  %v822_v23 = vadd.f32 %v821_v21, %v574_v20  ;;  %v537_v24 = vpop.f32.mrf.mxu0 }
 0x112   : > { %v784_v25 = vpop.f32.mrf.mxu1 }
 0x113   : > { %943 = vst.msk [vmem:[%s1458_s28 + $0x34] sm:$0xf] %vm929_vm2, %v910_v22  ;;  %v862_v26 = vadd.f32 %v1451_v49, %v822_v23  ;;  %v785_v27 = vadd.f32 %v784_v25, %v537_v24 }
 0x115   : > { %v894_v28 = vmax.f32 %v862_v26, 0.0  ;;  %v847_v29 = vadd.f32 %v1451_v49, %v785_v27 }
 0x117   : > { %v926_v30 = vpack.c.bf16 %v894_v28, %v894_v28  ;;  %v879_v31 = vmax.f32 %v847_v29, 0.0  ;;  %v577_v32 = vpop.f32.mrf.mxu2 }
 0x118   : > { %v824_v33 = vpop.f32.mrf.mxu3 }
 0x119   : > { %959 = vst.msk [vmem:[%s1458_s28 + $0x74] sm:$0xf] %vm929_vm2, %v926_v30  ;;  %v911_v34 = vpack.c.bf16 %v879_v31, %v879_v31  ;;  %v825_v35 = vadd.f32 %v824_v33, %v577_v32  ;;  %v539_v36 = vpop.f32.mrf.mxu0 }
 0x11a   : > { %v786_v37 = vpop.f32.mrf.mxu1 }
 0x11b   : > { %944 = vst.msk [vmem:[%s1458_s28 + $0x38] sm:$0xf] %vm929_vm2, %v911_v34  ;;  %v863_v38 = vadd.f32 %v1451_v49, %v825_v35  ;;  %v787_v39 = vadd.f32 %v786_v37, %v539_v36 }
 0x11d   : > { %v895_v40 = vmax.f32 %v863_v38, 0.0  ;;  %v848_v41 = vadd.f32 %v1451_v49, %v787_v39 }
 0x11f   : > { %v927_v42 = vpack.c.bf16 %v895_v40, %v895_v40  ;;  %v880_v43 = vmax.f32 %v848_v41, 0.0  ;;  %v579_v44 = vpop.f32.mrf.mxu2 }
 0x120   : > { %v826_v45 = vpop.f32.mrf.mxu3 }
 0x121   : > { %960 = vst.msk [vmem:[%s1458_s28 + $0x78] sm:$0xf] %vm929_vm2, %v927_v42  ;;  %v912_v46 = vpack.c.bf16 %v880_v43, %v880_v43  ;;  %v827_v47 = vadd.f32 %v826_v45, %v579_v44 }
 0x123   : > { %945 = vst.msk [vmem:[%s1458_s28 + $0x3c] sm:$0xf] %vm929_vm2, %v912_v46  ;;  %v864_v48 = vadd.f32 %v1451_v49, %v827_v47 }
 0x125   : > { %v896_v50 = vmax.f32 %v864_v48, 0.0 }
 0x127   : > { %v928_v51 = vpack.c.bf16 %v896_v50, %v896_v50 }
 0x129   : > { %961 = vst.msk [vmem:[%s1458_s28 + $0x7c] sm:$0xf] %vm929_vm2, %v928_v51 }
 0x12a PF: > { %s15_s18 = sadd.s32 1, %s1300_s18  }
 0x12b   : > { %p12_p4 = scmp.ge.s32.totalorder %s15_s18, 4  }
 0x12d   :  { %14 = sbr.rel (!%p12_p4) target bundleno = 1 (0x1), region = 73 }

</bundles_post_ra>
